<compile_context>
chip_gen: v5e
topology: v5e:2x2
jax: 0.10.0
libtpu: 0.0.40
codegen_flags: <defaults>
</compile_context>

<pallas_src>
import functools

import jax
import jax.numpy as jnp
from jax.experimental import pallas as pl
from jax.experimental.pallas import tpu as pltpu

KS = 3
PAD = 1
BN_EPS = 1e-5
LANE = 128


def _round_up(x, m):
    return (x + m - 1) // m * m


def _conv_tile(x_ref, w_ref):
    """3x3 conv of one padded row-block tile via 9 shifted MXU matmuls (f32 accumulate).

    x_ref: (1, tr+2, w+2, cin)   padded input tile (bf16)
    w_ref: (9, cin, cout_pad)    weight taps, [kh*3+kw] major, zero-padded channels (bf16)
    returns (tr*w, cout_pad) float32
    """
    _, trp, wsp, cin = x_ref.shape
    tr, w_sp = trp - 2 * PAD, wsp - 2 * PAD
    cp = w_ref.shape[-1]
    xt = x_ref[0]                                             # (tr+2, w+2, cin)
    acc = jnp.zeros((tr * w_sp, cp), jnp.float32)
    for kh in range(KS):
        for kw in range(KS):
            # Shifted tap; collapse (rows, cols) -> tile_M rows, channels stay minor.
            xs = xt[kh:kh + tr, kw:kw + w_sp, :].reshape(tr * w_sp, cin)
            # NOTE: K = Cin per tap is small; fine here since the kernel is memory-bound
            # (MXU has large slack). Padding K would only matter if MXU-bound.
            acc = acc + jnp.dot(xs, w_ref[kh * KS + kw],
                                preferred_element_type=jnp.float32)
    return acc


def _stats_kernel(x_ref, w_ref, stat_ref):
    """Pass 1: per-tile per-channel sum and sum-of-squares of the conv output."""
    acc = _conv_tile(x_ref, w_ref)                            # (mt, cp) f32
    ones = jnp.ones((1, acc.shape[0]), jnp.float32)
    # Column sums done on the MXU (a sublane-axis jnp.sum would hit the XLU slot).
    s = jnp.dot(ones, acc, preferred_element_type=jnp.float32)          # (1, cp)
    sq = jnp.dot(ones, acc * acc, preferred_element_type=jnp.float32)   # (1, cp)
    stat_ref[0] = jnp.concatenate([s, sq], axis=0)            # (2, cp)


def _bn_relu_kernel(x_ref, w_ref, scale_ref, shift_ref, y_ref):
    """Pass 2: recompute conv tile, apply folded BN scale/shift, ReLU, lane-dense store."""
    acc = _conv_tile(x_ref, w_ref)                            # (mt, cp) f32
    y = acc * scale_ref[...] + shift_ref[...]                 # f32 VPU math (v5e-safe)
    y_ref[0] = jnp.maximum(y, 0.0).astype(y_ref.dtype)


def _pick_tile_rows(h, w):
    # Largest divisor of H keeping <= ~2048 output rows per tile: big enough to amortize
    # the ~0.35 us/step grid overhead, small enough for double-buffered VMEM residency.
    best = 1
    for tr in range(1, h + 1):
        if h % tr == 0 and tr * w <= 2048:
            best = tr
    return best


def conv_bn_relu(x_nhwc, w_oihw, gamma, beta, *, tile_rows=None,
                 compute_dtype=jnp.bfloat16, out_dtype=jnp.float32):
    """Conv2d(3x3, pad=1) + BatchNorm2d(training batch stats) + ReLU (bias cancels under BN)."""
    n, h, w_sp, cin = x_nhwc.shape
    cout = w_oihw.shape[0]
    cp = _round_up(cout, LANE)                  # lane-dense channel dim (pad to 128)
    k = KS * KS * cin

    tr = tile_rows if tile_rows is not None else _pick_tile_rows(h, w_sp)
    assert h % tr == 0, f"tile_rows={tr} must divide H={h}"
    rb = h // tr
    nt = n * rb                                 # number of M-tiles (grid steps)
    mt = tr * w_sp                              # output rows per tile

    # Pad spatially once (+2 rows / +2 cols), cast to bf16 for HBM traffic + MXU rate.
    x = x_nhwc.astype(compute_dtype)
    xp = jnp.pad(x, ((0, 0), (PAD, PAD), (PAD, PAD), (0, 0)))
    # Row-block windows with a 2-row halo: cheap duplication, NOT a 9x im2col expansion.
    xrb = jnp.stack([xp[:, i * tr:i * tr + tr + 2] for i in range(rb)], axis=1)
    xrb = xrb.reshape(nt, tr + 2, w_sp + 2, cin)

    # (cout, cin, kh, kw) -> (kh, kw, cin, cout) -> (9, cin, cout) -> zero-pad to cp lanes.
    w3 = jnp.transpose(w_oihw, (2, 3, 1, 0)).reshape(KS * KS, cin, cout)
    w3 = jnp.pad(w3, ((0, 0), (0, 0), (0, cp - cout))).astype(compute_dtype)

    x_spec = pl.BlockSpec((1, tr + 2, w_sp + 2, cin), lambda i: (i, 0, 0, 0))
    w_spec = pl.BlockSpec((KS * KS, cin, cp), lambda i: (0, 0, 0))
    cparams = pltpu.CompilerParams(
        dimension_semantics=("parallel",),      # megacore splits the M-tile grid on v7x
        vmem_limit_bytes=48 * 1024 * 1024,      # sized against v7x's 64 MiB physical VMEM
    )
    conv_flops = 2 * nt * mt * k * cp
    in_bytes = int(xrb.size * xrb.dtype.itemsize + w3.size * w3.dtype.itemsize)

    # ---- Pass 1: per-tile partial BN statistics (fully parallel over tiles/cores). ----
    stats = pl.pallas_call(
        _stats_kernel,
        out_shape=jax.ShapeDtypeStruct((nt, 2, cp), jnp.float32),
        grid=(nt,),
        in_specs=[x_spec, w_spec],
        out_specs=pl.BlockSpec((1, 2, cp), lambda i: (i, 0, 0)),
        compiler_params=cparams,
        cost_estimate=pl.CostEstimate(
            flops=conv_flops + 4 * nt * mt * cp, transcendentals=0,
            bytes_accessed=in_bytes + int(nt * 2 * cp * 4)),
    )(xrb, w3)

    # ---- Tiny cross-tile (and cross-core) combine + folded BN affine, in plain JAX. ----
    m_total = n * h * w_sp
    tot = jnp.sum(stats, axis=0)                               # (2, cp)
    mean = tot[0] / m_total
    var = jnp.maximum(tot[1] / m_total - mean * mean, 0.0)     # clamp E[x^2]-E[x]^2 in f32
    gamma_p = jnp.pad(gamma.astype(jnp.float32), (0, cp - cout))
    beta_p = jnp.pad(beta.astype(jnp.float32), (0, cp - cout))
    inv = jax.lax.rsqrt(var + BN_EPS)
    scale = (gamma_p * inv).reshape(1, cp)                     # folded gamma * rsqrt(var+eps)
    shift = (beta_p - mean * gamma_p * inv).reshape(1, cp)

    # ---- Pass 2: recompute conv, normalize + ReLU, lane-dense (multiple-of-128) store. ----
    y = pl.pallas_call(
        _bn_relu_kernel,
        out_shape=jax.ShapeDtypeStruct((nt, mt, cp), out_dtype),
        grid=(nt,),
        in_specs=[x_spec, w_spec,
                  pl.BlockSpec((1, cp), lambda i: (0, 0)),
                  pl.BlockSpec((1, cp), lambda i: (0, 0))],
        out_specs=pl.BlockSpec((1, mt, cp), lambda i: (i, 0, 0)),
        compiler_params=cparams,
        cost_estimate=pl.CostEstimate(
            flops=conv_flops + 2 * nt * mt * cp, transcendentals=0,
            bytes_accessed=in_bytes + int(nt * mt * cp * jnp.dtype(out_dtype).itemsize)),
    )(xrb, w3, scale, shift)

    y = y[..., :cout]                                          # drop channel padding
    return y.reshape(n, rb, tr, w_sp, cout).reshape(n, h, w_sp, cout)


def unet_block_forward(x_nchw, params, *, tile_rows=None):
    x = jnp.transpose(x_nchw, (0, 2, 3, 1))                    # NCHW -> NHWC, once
    # Conv biases (params["b1"], params["b2"]) exist for PyTorch parity but cancel exactly
    # under the training-mode BatchNorm that follows, so the kernels never load them.
    x = conv_bn_relu(x, params["w1"], params["g1"], params["bt1"],
                     tile_rows=tile_rows, out_dtype=jnp.bfloat16)   # compact bf16 intermediate
    x = conv_bn_relu(x, params["w2"], params["g2"], params["bt2"],
                     tile_rows=tile_rows, out_dtype=jnp.float32)
    return jnp.transpose(x, (0, 3, 1, 2))                      # NHWC -> NCHW, once


def init_params(key, in_channels, out_channels):
    # Deterministic, PyTorch-shaped parameters (kaiming-uniform-ish conv init,
    # BatchNorm gamma=1 / beta=0 as in nn.BatchNorm2d defaults).
    k1, k2, k3, k4 = jax.random.split(key, 4)
    fan1 = in_channels * KS * KS
    fan2 = out_channels * KS * KS
    w1 = jax.random.uniform(k1, (out_channels, in_channels, KS, KS),
                            jnp.float32, -1.0, 1.0) / jnp.sqrt(float(fan1))
    b1 = jax.random.uniform(k2, (out_channels,), jnp.float32, -1.0, 1.0) / jnp.sqrt(float(fan1))
    w2 = jax.random.uniform(k3, (out_channels, out_channels, KS, KS),
                            jnp.float32, -1.0, 1.0) / jnp.sqrt(float(fan2))
    b2 = jax.random.uniform(k4, (out_channels,), jnp.float32, -1.0, 1.0) / jnp.sqrt(float(fan2))
    return dict(
        w1=w1, b1=b1, g1=jnp.ones((out_channels,), jnp.float32),
        bt1=jnp.zeros((out_channels,), jnp.float32),
        w2=w2, b2=b2, g2=jnp.ones((out_channels,), jnp.float32),
        bt2=jnp.zeros((out_channels,), jnp.float32),
    )


def _reference(x_nchw, params):
    # Pure-JAX reference with the same numeric pipeline (bf16 conv inputs, f32 accumulate,
    # f32 BN/ReLU, bf16 intermediate). The conv bias IS applied here — it cancels under
    # training-mode BN, proving the kernels can drop it.
    def block(x, w, b, g, bt, out_dtype):
        y = jax.lax.conv_general_dilated(
            x.astype(jnp.bfloat16), w.astype(jnp.bfloat16),
            window_strides=(1, 1), padding=((PAD, PAD), (PAD, PAD)),
            dimension_numbers=("NCHW", "OIHW", "NCHW"),
            preferred_element_type=jnp.float32)
        y = y + b[None, :, None, None]
        mean = jnp.mean(y, axis=(0, 2, 3), keepdims=True)
        var = jnp.mean((y - mean) ** 2, axis=(0, 2, 3), keepdims=True)
        y = (y - mean) * jax.lax.rsqrt(var + BN_EPS)
        y = y * g[None, :, None, None] + bt[None, :, None, None]
        return jnp.maximum(y, 0.0).astype(out_dtype)

    y = block(x_nchw, params["w1"], params["b1"], params["g1"], params["bt1"], jnp.bfloat16)
    y = block(y, params["w2"], params["b2"], params["g2"], params["bt2"], jnp.float32)
    return y


if __name__ == "__main__":
    key = jax.random.PRNGKey(0)
    kx, kp = jax.random.split(key)
    N, Cin, H, W = 2, 4, 16, 16
    Cout = 8

    x = jax.random.normal(kx, (N, Cin, H, W), jnp.float32)
    params = init_params(kp, Cin, Cout)

    # tile_rows=8 -> 2 row-blocks per image -> a 4-step pipelined grid even at this tiny size.
    fwd = jax.jit(functools.partial(unet_block_forward, tile_rows=8))
    out = jax.block_until_ready(fwd(x, params))

    ref = _reference(x, params)
    assert out.shape == (N, Cout, H, W)
    max_err = float(jnp.max(jnp.abs(out - ref)))
    assert jnp.allclose(out, ref, rtol=1e-2, atol=1e-2), max_err
    # TODO(synk): BatchNorm running_mean/running_var in-place buffer updates are module
    # state (not part of the forward value) and are not modeled.
    print("KERNEL_OK")
</pallas_src>

<mosaic_0001>
module attributes {stable_mosaic.version = 11 : i64} {
  func.func @_stats_kernel(%arg0: i32, %arg1: memref<1x10x18x4xbf16, #tpu.memory_space<vmem>>, %arg2: memref<9x4x128xbf16, #tpu.memory_space<vmem>>, %arg3: memref<1x2x128xf32, #tpu.memory_space<vmem>>) attributes {dimension_semantics = [#tpu.dimension_semantics<parallel>], iteration_bounds = array<i64: 4>, scalar_prefetch = 0 : i64, scratch_operands = 0 : i64, tpu.core_type = #tpu.core_type<tc>, window_params = [{transform_indices = @transform_0, window_bounds = array<i64: 1, 10, 18, 4>}, {pipeline_mode = #tpu.pipeline_mode<synchronous>, transform_indices = @transform_1, window_bounds = array<i64: 9, 4, 128>}, {transform_indices = @transform_2, window_bounds = array<i64: 1, 2, 128>}]} {
    %c0 = arith.constant 0 : index
    %c0_0 = arith.constant 0 : index
    %c0_1 = arith.constant 0 : index
    %c0_2 = arith.constant 0 : index
    %0 = vector.load %arg1[%c0, %c0_0, %c0_1, %c0_2] : memref<1x10x18x4xbf16, #tpu.memory_space<vmem>>, vector<1x10x18x4xbf16>
    %1 = vector.shape_cast %0 : vector<1x10x18x4xbf16> to vector<10x18x4xbf16>
    %cst = arith.constant 0.000000e+00 : f32
    %2 = vector.broadcast %cst : f32 to vector<128x128xf32>
    %3 = vector.extract_strided_slice %1 {offsets = [0, 0, 0], sizes = [8, 16, 4], strides = [1, 1, 1]} : vector<10x18x4xbf16> to vector<8x16x4xbf16>
    %4 = vector.shape_cast %3 : vector<8x16x4xbf16> to vector<128x4xbf16>
    %c0_3 = arith.constant 0 : index
    %c0_4 = arith.constant 0 : index
    %c0_5 = arith.constant 0 : index
    %5 = vector.load %arg2[%c0_3, %c0_4, %c0_5] : memref<9x4x128xbf16, #tpu.memory_space<vmem>>, vector<1x4x128xbf16>
    %6 = vector.shape_cast %5 : vector<1x4x128xbf16> to vector<4x128xbf16>
    %cst_6 = arith.constant dense<0.000000e+00> : vector<128x128xf32>
    %7 = tpu.matmul %4, %6, %cst_6 {dimension_numbers = #tpu.dot_dimension_numbers<[1], [0], [0], [1], [0, 0, 1, 1], [], []>} : vector<128x4xbf16>, vector<4x128xbf16>, vector<128x128xf32> -> vector<128x128xf32>
    %8 = arith.addf %2, %7 : vector<128x128xf32>
    %9 = vector.extract_strided_slice %1 {offsets = [0, 1, 0], sizes = [8, 16, 4], strides = [1, 1, 1]} : vector<10x18x4xbf16> to vector<8x16x4xbf16>
    %10 = vector.shape_cast %9 : vector<8x16x4xbf16> to vector<128x4xbf16>
    %c1 = arith.constant 1 : index
    %c0_7 = arith.constant 0 : index
    %c0_8 = arith.constant 0 : index
    %11 = vector.load %arg2[%c1, %c0_7, %c0_8] : memref<9x4x128xbf16, #tpu.memory_space<vmem>>, vector<1x4x128xbf16>
    %12 = vector.shape_cast %11 : vector<1x4x128xbf16> to vector<4x128xbf16>
    %cst_9 = arith.constant dense<0.000000e+00> : vector<128x128xf32>
    %13 = tpu.matmul %10, %12, %cst_9 {dimension_numbers = #tpu.dot_dimension_numbers<[1], [0], [0], [1], [0, 0, 1, 1], [], []>} : vector<128x4xbf16>, vector<4x128xbf16>, vector<128x128xf32> -> vector<128x128xf32>
    %14 = arith.addf %8, %13 : vector<128x128xf32>
    %15 = vector.extract_strided_slice %1 {offsets = [0, 2, 0], sizes = [8, 16, 4], strides = [1, 1, 1]} : vector<10x18x4xbf16> to vector<8x16x4xbf16>
    %16 = vector.shape_cast %15 : vector<8x16x4xbf16> to vector<128x4xbf16>
    %c2 = arith.constant 2 : index
    %c0_10 = arith.constant 0 : index
    %c0_11 = arith.constant 0 : index
    %17 = vector.load %arg2[%c2, %c0_10, %c0_11] : memref<9x4x128xbf16, #tpu.memory_space<vmem>>, vector<1x4x128xbf16>
    %18 = vector.shape_cast %17 : vector<1x4x128xbf16> to vector<4x128xbf16>
    %cst_12 = arith.constant dense<0.000000e+00> : vector<128x128xf32>
    %19 = tpu.matmul %16, %18, %cst_12 {dimension_numbers = #tpu.dot_dimension_numbers<[1], [0], [0], [1], [0, 0, 1, 1], [], []>} : vector<128x4xbf16>, vector<4x128xbf16>, vector<128x128xf32> -> vector<128x128xf32>
    %20 = arith.addf %14, %19 : vector<128x128xf32>
    %21 = vector.extract_strided_slice %1 {offsets = [1, 0, 0], sizes = [8, 16, 4], strides = [1, 1, 1]} : vector<10x18x4xbf16> to vector<8x16x4xbf16>
    %22 = vector.shape_cast %21 : vector<8x16x4xbf16> to vector<128x4xbf16>
    %c3 = arith.constant 3 : index
    %c0_13 = arith.constant 0 : index
    %c0_14 = arith.constant 0 : index
    %23 = vector.load %arg2[%c3, %c0_13, %c0_14] : memref<9x4x128xbf16, #tpu.memory_space<vmem>>, vector<1x4x128xbf16>
    %24 = vector.shape_cast %23 : vector<1x4x128xbf16> to vector<4x128xbf16>
    %cst_15 = arith.constant dense<0.000000e+00> : vector<128x128xf32>
    %25 = tpu.matmul %22, %24, %cst_15 {dimension_numbers = #tpu.dot_dimension_numbers<[1], [0], [0], [1], [0, 0, 1, 1], [], []>} : vector<128x4xbf16>, vector<4x128xbf16>, vector<128x128xf32> -> vector<128x128xf32>
    %26 = arith.addf %20, %25 : vector<128x128xf32>
    %27 = vector.extract_strided_slice %1 {offsets = [1, 1, 0], sizes = [8, 16, 4], strides = [1, 1, 1]} : vector<10x18x4xbf16> to vector<8x16x4xbf16>
    %28 = vector.shape_cast %27 : vector<8x16x4xbf16> to vector<128x4xbf16>
    %c4 = arith.constant 4 : index
    %c0_16 = arith.constant 0 : index
    %c0_17 = arith.constant 0 : index
    %29 = vector.load %arg2[%c4, %c0_16, %c0_17] : memref<9x4x128xbf16, #tpu.memory_space<vmem>>, vector<1x4x128xbf16>
    %30 = vector.shape_cast %29 : vector<1x4x128xbf16> to vector<4x128xbf16>
    %cst_18 = arith.constant dense<0.000000e+00> : vector<128x128xf32>
    %31 = tpu.matmul %28, %30, %cst_18 {dimension_numbers = #tpu.dot_dimension_numbers<[1], [0], [0], [1], [0, 0, 1, 1], [], []>} : vector<128x4xbf16>, vector<4x128xbf16>, vector<128x128xf32> -> vector<128x128xf32>
    %32 = arith.addf %26, %31 : vector<128x128xf32>
    %33 = vector.extract_strided_slice %1 {offsets = [1, 2, 0], sizes = [8, 16, 4], strides = [1, 1, 1]} : vector<10x18x4xbf16> to vector<8x16x4xbf16>
    %34 = vector.shape_cast %33 : vector<8x16x4xbf16> to vector<128x4xbf16>
    %c5 = arith.constant 5 : index
    %c0_19 = arith.constant 0 : index
    %c0_20 = arith.constant 0 : index
    %35 = vector.load %arg2[%c5, %c0_19, %c0_20] : memref<9x4x128xbf16, #tpu.memory_space<vmem>>, vector<1x4x128xbf16>
    %36 = vector.shape_cast %35 : vector<1x4x128xbf16> to vector<4x128xbf16>
    %cst_21 = arith.constant dense<0.000000e+00> : vector<128x128xf32>
    %37 = tpu.matmul %34, %36, %cst_21 {dimension_numbers = #tpu.dot_dimension_numbers<[1], [0], [0], [1], [0, 0, 1, 1], [], []>} : vector<128x4xbf16>, vector<4x128xbf16>, vector<128x128xf32> -> vector<128x128xf32>
    %38 = arith.addf %32, %37 : vector<128x128xf32>
    %39 = vector.extract_strided_slice %1 {offsets = [2, 0, 0], sizes = [8, 16, 4], strides = [1, 1, 1]} : vector<10x18x4xbf16> to vector<8x16x4xbf16>
    %40 = vector.shape_cast %39 : vector<8x16x4xbf16> to vector<128x4xbf16>
    %c6 = arith.constant 6 : index
    %c0_22 = arith.constant 0 : index
    %c0_23 = arith.constant 0 : index
    %41 = vector.load %arg2[%c6, %c0_22, %c0_23] : memref<9x4x128xbf16, #tpu.memory_space<vmem>>, vector<1x4x128xbf16>
    %42 = vector.shape_cast %41 : vector<1x4x128xbf16> to vector<4x128xbf16>
    %cst_24 = arith.constant dense<0.000000e+00> : vector<128x128xf32>
    %43 = tpu.matmul %40, %42, %cst_24 {dimension_numbers = #tpu.dot_dimension_numbers<[1], [0], [0], [1], [0, 0, 1, 1], [], []>} : vector<128x4xbf16>, vector<4x128xbf16>, vector<128x128xf32> -> vector<128x128xf32>
    %44 = arith.addf %38, %43 : vector<128x128xf32>
    %45 = vector.extract_strided_slice %1 {offsets = [2, 1, 0], sizes = [8, 16, 4], strides = [1, 1, 1]} : vector<10x18x4xbf16> to vector<8x16x4xbf16>
    %46 = vector.shape_cast %45 : vector<8x16x4xbf16> to vector<128x4xbf16>
    %c7 = arith.constant 7 : index
    %c0_25 = arith.constant 0 : index
    %c0_26 = arith.constant 0 : index
    %47 = vector.load %arg2[%c7, %c0_25, %c0_26] : memref<9x4x128xbf16, #tpu.memory_space<vmem>>, vector<1x4x128xbf16>
    %48 = vector.shape_cast %47 : vector<1x4x128xbf16> to vector<4x128xbf16>
    %cst_27 = arith.constant dense<0.000000e+00> : vector<128x128xf32>
    %49 = tpu.matmul %46, %48, %cst_27 {dimension_numbers = #tpu.dot_dimension_numbers<[1], [0], [0], [1], [0, 0, 1, 1], [], []>} : vector<128x4xbf16>, vector<4x128xbf16>, vector<128x128xf32> -> vector<128x128xf32>
    %50 = arith.addf %44, %49 : vector<128x128xf32>
    %51 = vector.extract_strided_slice %1 {offsets = [2, 2, 0], sizes = [8, 16, 4], strides = [1, 1, 1]} : vector<10x18x4xbf16> to vector<8x16x4xbf16>
    %52 = vector.shape_cast %51 : vector<8x16x4xbf16> to vector<128x4xbf16>
    %c8 = arith.constant 8 : index
    %c0_28 = arith.constant 0 : index
    %c0_29 = arith.constant 0 : index
    %53 = vector.load %arg2[%c8, %c0_28, %c0_29] : memref<9x4x128xbf16, #tpu.memory_space<vmem>>, vector<1x4x128xbf16>
    %54 = vector.shape_cast %53 : vector<1x4x128xbf16> to vector<4x128xbf16>
    %cst_30 = arith.constant dense<0.000000e+00> : vector<128x128xf32>
    %55 = tpu.matmul %52, %54, %cst_30 {dimension_numbers = #tpu.dot_dimension_numbers<[1], [0], [0], [1], [0, 0, 1, 1], [], []>} : vector<128x4xbf16>, vector<4x128xbf16>, vector<128x128xf32> -> vector<128x128xf32>
    %56 = arith.addf %50, %55 : vector<128x128xf32>
    %cst_31 = arith.constant 1.000000e+00 : f32
    %57 = vector.broadcast %cst_31 : f32 to vector<1x128xf32>
    %cst_32 = arith.constant dense<0.000000e+00> : vector<1x128xf32>
    %58 = tpu.matmul %57, %56, %cst_32 {dimension_numbers = #tpu.dot_dimension_numbers<[1], [0], [0], [1], [0, 0, 1, 1], [], []>} : vector<1x128xf32>, vector<128x128xf32>, vector<1x128xf32> -> vector<1x128xf32>
    %59 = arith.mulf %56, %56 : vector<128x128xf32>
    %cst_33 = arith.constant dense<0.000000e+00> : vector<1x128xf32>
    %60 = tpu.matmul %57, %59, %cst_33 {dimension_numbers = #tpu.dot_dimension_numbers<[1], [0], [0], [1], [0, 0, 1, 1], [], []>} : vector<1x128xf32>, vector<128x128xf32>, vector<1x128xf32> -> vector<1x128xf32>
    %61 = tpu.concatenate %58, %60 in 0 : vector<1x128xf32>, vector<1x128xf32> -> vector<2x128xf32>
    %c0_34 = arith.constant 0 : index
    %c0_35 = arith.constant 0 : index
    %c0_36 = arith.constant 0 : index
    %62 = vector.load %arg3[%c0_34, %c0_35, %c0_36] : memref<1x2x128xf32, #tpu.memory_space<vmem>>, vector<1x2x128xf32>
    %63 = vector.shape_cast %62 : vector<1x2x128xf32> to vector<2x128xf32>
    %64 = vector.shape_cast %61 : vector<2x128xf32> to vector<1x2x128xf32>
    tpu.vector_store %arg3[%c0_34, %c0_35, %c0_36], %64 {strides = array<i32>} : memref<1x2x128xf32, #tpu.memory_space<vmem>>, vector<1x2x128xf32>,
    return
  }
  func.func @transform_0(%arg0: i32) -> (i32, i32, i32, i32) {
    %c0_i32 = arith.constant 0 : i32
    %c0_i32_0 = arith.constant 0 : i32
    %c0_i32_1 = arith.constant 0 : i32
    %c0_i32_2 = arith.constant 0 : i32
    return %arg0, %c0_i32, %c0_i32_0, %c0_i32_1 : i32, i32, i32, i32
  }
  func.func @transform_1(%arg0: i32) -> (i32, i32, i32) {
    %c0_i32 = arith.constant 0 : i32
    %c0_i32_0 = arith.constant 0 : i32
    %c0_i32_1 = arith.constant 0 : i32
    %c0_i32_2 = arith.constant 0 : i32
    return %c0_i32, %c0_i32_0, %c0_i32_1 : i32, i32, i32
  }
  func.func @transform_2(%arg0: i32) -> (i32, i32, i32) {
    %c0_i32 = arith.constant 0 : i32
    %c0_i32_0 = arith.constant 0 : i32
    %c0_i32_1 = arith.constant 0 : i32
    return %arg0, %c0_i32, %c0_i32_0 : i32, i32, i32
  }
}

module attributes {stable_mosaic.version = 11 : i64} {
  func.func @_bn_relu_kernel(%arg0: i32, %arg1: memref<1x10x18x4xbf16, #tpu.memory_space<vmem>>, %arg2: memref<9x4x128xbf16, #tpu.memory_space<vmem>>, %arg3: memref<1x128xf32, #tpu.memory_space<vmem>>, %arg4: memref<1x128xf32, #tpu.memory_space<vmem>>, %arg5: memref<1x128x128xbf16, #tpu.memory_space<vmem>>) attributes {dimension_semantics = [#tpu.dimension_semantics<parallel>], iteration_bounds = array<i64: 4>, scalar_prefetch = 0 : i64, scratch_operands = 0 : i64, tpu.core_type = #tpu.core_type<tc>, window_params = [{transform_indices = @transform_0, window_bounds = array<i64: 1, 10, 18, 4>}, {pipeline_mode = #tpu.pipeline_mode<synchronous>, transform_indices = @transform_1, window_bounds = array<i64: 9, 4, 128>}, {pipeline_mode = #tpu.pipeline_mode<synchronous>, transform_indices = @transform_2, window_bounds = array<i64: 1, 128>}, {pipeline_mode = #tpu.pipeline_mode<synchronous>, transform_indices = @transform_3, window_bounds = array<i64: 1, 128>}, {transform_indices = @transform_4, window_bounds = array<i64: 1, 128, 128>}]} {
    %c0 = arith.constant 0 : index
    %c0_0 = arith.constant 0 : index
    %c0_1 = arith.constant 0 : index
    %c0_2 = arith.constant 0 : index
    %0 = vector.load %arg1[%c0, %c0_0, %c0_1, %c0_2] : memref<1x10x18x4xbf16, #tpu.memory_space<vmem>>, vector<1x10x18x4xbf16>
    %1 = vector.shape_cast %0 : vector<1x10x18x4xbf16> to vector<10x18x4xbf16>
    %cst = arith.constant 0.000000e+00 : f32
    %2 = vector.broadcast %cst : f32 to vector<128x128xf32>
    %3 = vector.extract_strided_slice %1 {offsets = [0, 0, 0], sizes = [8, 16, 4], strides = [1, 1, 1]} : vector<10x18x4xbf16> to vector<8x16x4xbf16>
    %4 = vector.shape_cast %3 : vector<8x16x4xbf16> to vector<128x4xbf16>
    %c0_3 = arith.constant 0 : index
    %c0_4 = arith.constant 0 : index
    %c0_5 = arith.constant 0 : index
    %5 = vector.load %arg2[%c0_3, %c0_4, %c0_5] : memref<9x4x128xbf16, #tpu.memory_space<vmem>>, vector<1x4x128xbf16>
    %6 = vector.shape_cast %5 : vector<1x4x128xbf16> to vector<4x128xbf16>
    %cst_6 = arith.constant dense<0.000000e+00> : vector<128x128xf32>
    %7 = tpu.matmul %4, %6, %cst_6 {dimension_numbers = #tpu.dot_dimension_numbers<[1], [0], [0], [1], [0, 0, 1, 1], [], []>} : vector<128x4xbf16>, vector<4x128xbf16>, vector<128x128xf32> -> vector<128x128xf32>
    %8 = arith.addf %2, %7 : vector<128x128xf32>
    %9 = vector.extract_strided_slice %1 {offsets = [0, 1, 0], sizes = [8, 16, 4], strides = [1, 1, 1]} : vector<10x18x4xbf16> to vector<8x16x4xbf16>
    %10 = vector.shape_cast %9 : vector<8x16x4xbf16> to vector<128x4xbf16>
    %c1 = arith.constant 1 : index
    %c0_7 = arith.constant 0 : index
    %c0_8 = arith.constant 0 : index
    %11 = vector.load %arg2[%c1, %c0_7, %c0_8] : memref<9x4x128xbf16, #tpu.memory_space<vmem>>, vector<1x4x128xbf16>
    %12 = vector.shape_cast %11 : vector<1x4x128xbf16> to vector<4x128xbf16>
    %cst_9 = arith.constant dense<0.000000e+00> : vector<128x128xf32>
    %13 = tpu.matmul %10, %12, %cst_9 {dimension_numbers = #tpu.dot_dimension_numbers<[1], [0], [0], [1], [0, 0, 1, 1], [], []>} : vector<128x4xbf16>, vector<4x128xbf16>, vector<128x128xf32> -> vector<128x128xf32>
    %14 = arith.addf %8, %13 : vector<128x128xf32>
    %15 = vector.extract_strided_slice %1 {offsets = [0, 2, 0], sizes = [8, 16, 4], strides = [1, 1, 1]} : vector<10x18x4xbf16> to vector<8x16x4xbf16>
    %16 = vector.shape_cast %15 : vector<8x16x4xbf16> to vector<128x4xbf16>
    %c2 = arith.constant 2 : index
    %c0_10 = arith.constant 0 : index
    %c0_11 = arith.constant 0 : index
    %17 = vector.load %arg2[%c2, %c0_10, %c0_11] : memref<9x4x128xbf16, #tpu.memory_space<vmem>>, vector<1x4x128xbf16>
    %18 = vector.shape_cast %17 : vector<1x4x128xbf16> to vector<4x128xbf16>
    %cst_12 = arith.constant dense<0.000000e+00> : vector<128x128xf32>
    %19 = tpu.matmul %16, %18, %cst_12 {dimension_numbers = #tpu.dot_dimension_numbers<[1], [0], [0], [1], [0, 0, 1, 1], [], []>} : vector<128x4xbf16>, vector<4x128xbf16>, vector<128x128xf32> -> vector<128x128xf32>
    %20 = arith.addf %14, %19 : vector<128x128xf32>
    %21 = vector.extract_strided_slice %1 {offsets = [1, 0, 0], sizes = [8, 16, 4], strides = [1, 1, 1]} : vector<10x18x4xbf16> to vector<8x16x4xbf16>
    %22 = vector.shape_cast %21 : vector<8x16x4xbf16> to vector<128x4xbf16>
    %c3 = arith.constant 3 : index
    %c0_13 = arith.constant 0 : index
    %c0_14 = arith.constant 0 : index
    %23 = vector.load %arg2[%c3, %c0_13, %c0_14] : memref<9x4x128xbf16, #tpu.memory_space<vmem>>, vector<1x4x128xbf16>
    %24 = vector.shape_cast %23 : vector<1x4x128xbf16> to vector<4x128xbf16>
    %cst_15 = arith.constant dense<0.000000e+00> : vector<128x128xf32>
    %25 = tpu.matmul %22, %24, %cst_15 {dimension_numbers = #tpu.dot_dimension_numbers<[1], [0], [0], [1], [0, 0, 1, 1], [], []>} : vector<128x4xbf16>, vector<4x128xbf16>, vector<128x128xf32> -> vector<128x128xf32>
    %26 = arith.addf %20, %25 : vector<128x128xf32>
    %27 = vector.extract_strided_slice %1 {offsets = [1, 1, 0], sizes = [8, 16, 4], strides = [1, 1, 1]} : vector<10x18x4xbf16> to vector<8x16x4xbf16>
    %28 = vector.shape_cast %27 : vector<8x16x4xbf16> to vector<128x4xbf16>
    %c4 = arith.constant 4 : index
    %c0_16 = arith.constant 0 : index
    %c0_17 = arith.constant 0 : index
    %29 = vector.load %arg2[%c4, %c0_16, %c0_17] : memref<9x4x128xbf16, #tpu.memory_space<vmem>>, vector<1x4x128xbf16>
    %30 = vector.shape_cast %29 : vector<1x4x128xbf16> to vector<4x128xbf16>
    %cst_18 = arith.constant dense<0.000000e+00> : vector<128x128xf32>
    %31 = tpu.matmul %28, %30, %cst_18 {dimension_numbers = #tpu.dot_dimension_numbers<[1], [0], [0], [1], [0, 0, 1, 1], [], []>} : vector<128x4xbf16>, vector<4x128xbf16>, vector<128x128xf32> -> vector<128x128xf32>
    %32 = arith.addf %26, %31 : vector<128x128xf32>
    %33 = vector.extract_strided_slice %1 {offsets = [1, 2, 0], sizes = [8, 16, 4], strides = [1, 1, 1]} : vector<10x18x4xbf16> to vector<8x16x4xbf16>
    %34 = vector.shape_cast %33 : vector<8x16x4xbf16> to vector<128x4xbf16>
    %c5 = arith.constant 5 : index
    %c0_19 = arith.constant 0 : index
    %c0_20 = arith.constant 0 : index
    %35 = vector.load %arg2[%c5, %c0_19, %c0_20] : memref<9x4x128xbf16, #tpu.memory_space<vmem>>, vector<1x4x128xbf16>
    %36 = vector.shape_cast %35 : vector<1x4x128xbf16> to vector<4x128xbf16>
    %cst_21 = arith.constant dense<0.000000e+00> : vector<128x128xf32>
    %37 = tpu.matmul %34, %36, %cst_21 {dimension_numbers = #tpu.dot_dimension_numbers<[1], [0], [0], [1], [0, 0, 1, 1], [], []>} : vector<128x4xbf16>, vector<4x128xbf16>, vector<128x128xf32> -> vector<128x128xf32>
    %38 = arith.addf %32, %37 : vector<128x128xf32>
    %39 = vector.extract_strided_slice %1 {offsets = [2, 0, 0], sizes = [8, 16, 4], strides = [1, 1, 1]} : vector<10x18x4xbf16> to vector<8x16x4xbf16>
    %40 = vector.shape_cast %39 : vector<8x16x4xbf16> to vector<128x4xbf16>
    %c6 = arith.constant 6 : index
    %c0_22 = arith.constant 0 : index
    %c0_23 = arith.constant 0 : index
    %41 = vector.load %arg2[%c6, %c0_22, %c0_23] : memref<9x4x128xbf16, #tpu.memory_space<vmem>>, vector<1x4x128xbf16>
    %42 = vector.shape_cast %41 : vector<1x4x128xbf16> to vector<4x128xbf16>
    %cst_24 = arith.constant dense<0.000000e+00> : vector<128x128xf32>
    %43 = tpu.matmul %40, %42, %cst_24 {dimension_numbers = #tpu.dot_dimension_numbers<[1], [0], [0], [1], [0, 0, 1, 1], [], []>} : vector<128x4xbf16>, vector<4x128xbf16>, vector<128x128xf32> -> vector<128x128xf32>
    %44 = arith.addf %38, %43 : vector<128x128xf32>
    %45 = vector.extract_strided_slice %1 {offsets = [2, 1, 0], sizes = [8, 16, 4], strides = [1, 1, 1]} : vector<10x18x4xbf16> to vector<8x16x4xbf16>
    %46 = vector.shape_cast %45 : vector<8x16x4xbf16> to vector<128x4xbf16>
    %c7 = arith.constant 7 : index
    %c0_25 = arith.constant 0 : index
    %c0_26 = arith.constant 0 : index
    %47 = vector.load %arg2[%c7, %c0_25, %c0_26] : memref<9x4x128xbf16, #tpu.memory_space<vmem>>, vector<1x4x128xbf16>
    %48 = vector.shape_cast %47 : vector<1x4x128xbf16> to vector<4x128xbf16>
    %cst_27 = arith.constant dense<0.000000e+00> : vector<128x128xf32>
    %49 = tpu.matmul %46, %48, %cst_27 {dimension_numbers = #tpu.dot_dimension_numbers<[1], [0], [0], [1], [0, 0, 1, 1], [], []>} : vector<128x4xbf16>, vector<4x128xbf16>, vector<128x128xf32> -> vector<128x128xf32>
    %50 = arith.addf %44, %49 : vector<128x128xf32>
    %51 = vector.extract_strided_slice %1 {offsets = [2, 2, 0], sizes = [8, 16, 4], strides = [1, 1, 1]} : vector<10x18x4xbf16> to vector<8x16x4xbf16>
    %52 = vector.shape_cast %51 : vector<8x16x4xbf16> to vector<128x4xbf16>
    %c8 = arith.constant 8 : index
    %c0_28 = arith.constant 0 : index
    %c0_29 = arith.constant 0 : index
    %53 = vector.load %arg2[%c8, %c0_28, %c0_29] : memref<9x4x128xbf16, #tpu.memory_space<vmem>>, vector<1x4x128xbf16>
    %54 = vector.shape_cast %53 : vector<1x4x128xbf16> to vector<4x128xbf16>
    %cst_30 = arith.constant dense<0.000000e+00> : vector<128x128xf32>
    %55 = tpu.matmul %52, %54, %cst_30 {dimension_numbers = #tpu.dot_dimension_numbers<[1], [0], [0], [1], [0, 0, 1, 1], [], []>} : vector<128x4xbf16>, vector<4x128xbf16>, vector<128x128xf32> -> vector<128x128xf32>
    %56 = arith.addf %50, %55 : vector<128x128xf32>
    %c0_31 = arith.constant 0 : index
    %c0_32 = arith.constant 0 : index
    %57 = vector.load %arg3[%c0_31, %c0_32] : memref<1x128xf32, #tpu.memory_space<vmem>>, vector<1x128xf32>
    %58 = vector.broadcast %57 : vector<1x128xf32> to vector<128x128xf32>
    %59 = arith.mulf %56, %58 : vector<128x128xf32>
    %c0_33 = arith.constant 0 : index
    %c0_34 = arith.constant 0 : index
    %60 = vector.load %arg4[%c0_33, %c0_34] : memref<1x128xf32, #tpu.memory_space<vmem>>, vector<1x128xf32>
    %61 = vector.broadcast %60 : vector<1x128xf32> to vector<128x128xf32>
    %62 = arith.addf %59, %61 : vector<128x128xf32>
    %cst_35 = arith.constant 0.000000e+00 : f32
    %63 = vector.broadcast %cst_35 : f32 to vector<128x128xf32>
    %64 = arith.maximumf %62, %63 : vector<128x128xf32>
    %65 = arith.truncf %64 : vector<128x128xf32> to vector<128x128xbf16>
    %c0_36 = arith.constant 0 : index
    %c0_37 = arith.constant 0 : index
    %c0_38 = arith.constant 0 : index
    %66 = vector.load %arg5[%c0_36, %c0_37, %c0_38] : memref<1x128x128xbf16, #tpu.memory_space<vmem>>, vector<1x128x128xbf16>
    %67 = vector.shape_cast %66 : vector<1x128x128xbf16> to vector<128x128xbf16>
    %68 = vector.shape_cast %65 : vector<128x128xbf16> to vector<1x128x128xbf16>
    tpu.vector_store %arg5[%c0_36, %c0_37, %c0_38], %68 {strides = array<i32>} : memref<1x128x128xbf16, #tpu.memory_space<vmem>>, vector<1x128x128xbf16>,
    return
  }
  func.func @transform_0(%arg0: i32) -> (i32, i32, i32, i32) {
    %c0_i32 = arith.constant 0 : i32
    %c0_i32_0 = arith.constant 0 : i32
    %c0_i32_1 = arith.constant 0 : i32
    %c0_i32_2 = arith.constant 0 : i32
    return %arg0, %c0_i32, %c0_i32_0, %c0_i32_1 : i32, i32, i32, i32
  }
  func.func @transform_1(%arg0: i32) -> (i32, i32, i32) {
    %c0_i32 = arith.constant 0 : i32
    %c0_i32_0 = arith.constant 0 : i32
    %c0_i32_1 = arith.constant 0 : i32
    %c0_i32_2 = arith.constant 0 : i32
    return %c0_i32, %c0_i32_0, %c0_i32_1 : i32, i32, i32
  }
  func.func @transform_2(%arg0: i32) -> (i32, i32) {
    %c0_i32 = arith.constant 0 : i32
    %c0_i32_0 = arith.constant 0 : i32
    %c0_i32_1 = arith.constant 0 : i32
    return %c0_i32, %c0_i32_0 : i32, i32
  }
  func.func @transform_3(%arg0: i32) -> (i32, i32) {
    %c0_i32 = arith.constant 0 : i32
    %c0_i32_0 = arith.constant 0 : i32
    %c0_i32_1 = arith.constant 0 : i32
    return %c0_i32, %c0_i32_0 : i32, i32
  }
  func.func @transform_4(%arg0: i32) -> (i32, i32, i32) {
    %c0_i32 = arith.constant 0 : i32
    %c0_i32_0 = arith.constant 0 : i32
    %c0_i32_1 = arith.constant 0 : i32
    return %arg0, %c0_i32, %c0_i32_0 : i32, i32, i32
  }
}

module attributes {stable_mosaic.version = 11 : i64} {
  func.func @_stats_kernel(%arg0: i32, %arg1: memref<1x10x18x8xbf16, #tpu.memory_space<vmem>>, %arg2: memref<9x8x128xbf16, #tpu.memory_space<vmem>>, %arg3: memref<1x2x128xf32, #tpu.memory_space<vmem>>) attributes {dimension_semantics = [#tpu.dimension_semantics<parallel>], iteration_bounds = array<i64: 4>, scalar_prefetch = 0 : i64, scratch_operands = 0 : i64, tpu.core_type = #tpu.core_type<tc>, window_params = [{transform_indices = @transform_0, window_bounds = array<i64: 1, 10, 18, 8>}, {pipeline_mode = #tpu.pipeline_mode<synchronous>, transform_indices = @transform_1, window_bounds = array<i64: 9, 8, 128>}, {transform_indices = @transform_2, window_bounds = array<i64: 1, 2, 128>}]} {
    %c0 = arith.constant 0 : index
    %c0_0 = arith.constant 0 : index
    %c0_1 = arith.constant 0 : index
    %c0_2 = arith.constant 0 : index
    %0 = vector.load %arg1[%c0, %c0_0, %c0_1, %c0_2] : memref<1x10x18x8xbf16, #tpu.memory_space<vmem>>, vector<1x10x18x8xbf16>
    %1 = vector.shape_cast %0 : vector<1x10x18x8xbf16> to vector<10x18x8xbf16>
    %cst = arith.constant 0.000000e+00 : f32
    %2 = vector.broadcast %cst : f32 to vector<128x128xf32>
    %3 = vector.extract_strided_slice %1 {offsets = [0, 0, 0], sizes = [8, 16, 8], strides = [1, 1, 1]} : vector<10x18x8xbf16> to vector<8x16x8xbf16>
    %4 = vector.shape_cast %3 : vector<8x16x8xbf16> to vector<128x8xbf16>
    %c0_3 = arith.constant 0 : index
    %c0_4 = arith.constant 0 : index
    %c0_5 = arith.constant 0 : index
    %5 = vector.load %arg2[%c0_3, %c0_4, %c0_5] : memref<9x8x128xbf16, #tpu.memory_space<vmem>>, vector<1x8x128xbf16>
    %6 = vector.shape_cast %5 : vector<1x8x128xbf16> to vector<8x128xbf16>
    %cst_6 = arith.constant dense<0.000000e+00> : vector<128x128xf32>
    %7 = tpu.matmul %4, %6, %cst_6 {dimension_numbers = #tpu.dot_dimension_numbers<[1], [0], [0], [1], [0, 0, 1, 1], [], []>} : vector<128x8xbf16>, vector<8x128xbf16>, vector<128x128xf32> -> vector<128x128xf32>
    %8 = arith.addf %2, %7 : vector<128x128xf32>
    %9 = vector.extract_strided_slice %1 {offsets = [0, 1, 0], sizes = [8, 16, 8], strides = [1, 1, 1]} : vector<10x18x8xbf16> to vector<8x16x8xbf16>
    %10 = vector.shape_cast %9 : vector<8x16x8xbf16> to vector<128x8xbf16>
    %c1 = arith.constant 1 : index
    %c0_7 = arith.constant 0 : index
    %c0_8 = arith.constant 0 : index
    %11 = vector.load %arg2[%c1, %c0_7, %c0_8] : memref<9x8x128xbf16, #tpu.memory_space<vmem>>, vector<1x8x128xbf16>
    %12 = vector.shape_cast %11 : vector<1x8x128xbf16> to vector<8x128xbf16>
    %cst_9 = arith.constant dense<0.000000e+00> : vector<128x128xf32>
    %13 = tpu.matmul %10, %12, %cst_9 {dimension_numbers = #tpu.dot_dimension_numbers<[1], [0], [0], [1], [0, 0, 1, 1], [], []>} : vector<128x8xbf16>, vector<8x128xbf16>, vector<128x128xf32> -> vector<128x128xf32>
    %14 = arith.addf %8, %13 : vector<128x128xf32>
    %15 = vector.extract_strided_slice %1 {offsets = [0, 2, 0], sizes = [8, 16, 8], strides = [1, 1, 1]} : vector<10x18x8xbf16> to vector<8x16x8xbf16>
    %16 = vector.shape_cast %15 : vector<8x16x8xbf16> to vector<128x8xbf16>
    %c2 = arith.constant 2 : index
    %c0_10 = arith.constant 0 : index
    %c0_11 = arith.constant 0 : index
    %17 = vector.load %arg2[%c2, %c0_10, %c0_11] : memref<9x8x128xbf16, #tpu.memory_space<vmem>>, vector<1x8x128xbf16>
    %18 = vector.shape_cast %17 : vector<1x8x128xbf16> to vector<8x128xbf16>
    %cst_12 = arith.constant dense<0.000000e+00> : vector<128x128xf32>
    %19 = tpu.matmul %16, %18, %cst_12 {dimension_numbers = #tpu.dot_dimension_numbers<[1], [0], [0], [1], [0, 0, 1, 1], [], []>} : vector<128x8xbf16>, vector<8x128xbf16>, vector<128x128xf32> -> vector<128x128xf32>
    %20 = arith.addf %14, %19 : vector<128x128xf32>
    %21 = vector.extract_strided_slice %1 {offsets = [1, 0, 0], sizes = [8, 16, 8], strides = [1, 1, 1]} : vector<10x18x8xbf16> to vector<8x16x8xbf16>
    %22 = vector.shape_cast %21 : vector<8x16x8xbf16> to vector<128x8xbf16>
    %c3 = arith.constant 3 : index
    %c0_13 = arith.constant 0 : index
    %c0_14 = arith.constant 0 : index
    %23 = vector.load %arg2[%c3, %c0_13, %c0_14] : memref<9x8x128xbf16, #tpu.memory_space<vmem>>, vector<1x8x128xbf16>
    %24 = vector.shape_cast %23 : vector<1x8x128xbf16> to vector<8x128xbf16>
    %cst_15 = arith.constant dense<0.000000e+00> : vector<128x128xf32>
    %25 = tpu.matmul %22, %24, %cst_15 {dimension_numbers = #tpu.dot_dimension_numbers<[1], [0], [0], [1], [0, 0, 1, 1], [], []>} : vector<128x8xbf16>, vector<8x128xbf16>, vector<128x128xf32> -> vector<128x128xf32>
    %26 = arith.addf %20, %25 : vector<128x128xf32>
    %27 = vector.extract_strided_slice %1 {offsets = [1, 1, 0], sizes = [8, 16, 8], strides = [1, 1, 1]} : vector<10x18x8xbf16> to vector<8x16x8xbf16>
    %28 = vector.shape_cast %27 : vector<8x16x8xbf16> to vector<128x8xbf16>
    %c4 = arith.constant 4 : index
    %c0_16 = arith.constant 0 : index
    %c0_17 = arith.constant 0 : index
    %29 = vector.load %arg2[%c4, %c0_16, %c0_17] : memref<9x8x128xbf16, #tpu.memory_space<vmem>>, vector<1x8x128xbf16>
    %30 = vector.shape_cast %29 : vector<1x8x128xbf16> to vector<8x128xbf16>
    %cst_18 = arith.constant dense<0.000000e+00> : vector<128x128xf32>
    %31 = tpu.matmul %28, %30, %cst_18 {dimension_numbers = #tpu.dot_dimension_numbers<[1], [0], [0], [1], [0, 0, 1, 1], [], []>} : vector<128x8xbf16>, vector<8x128xbf16>, vector<128x128xf32> -> vector<128x128xf32>
    %32 = arith.addf %26, %31 : vector<128x128xf32>
    %33 = vector.extract_strided_slice %1 {offsets = [1, 2, 0], sizes = [8, 16, 8], strides = [1, 1, 1]} : vector<10x18x8xbf16> to vector<8x16x8xbf16>
    %34 = vector.shape_cast %33 : vector<8x16x8xbf16> to vector<128x8xbf16>
    %c5 = arith.constant 5 : index
    %c0_19 = arith.constant 0 : index
    %c0_20 = arith.constant 0 : index
    %35 = vector.load %arg2[%c5, %c0_19, %c0_20] : memref<9x8x128xbf16, #tpu.memory_space<vmem>>, vector<1x8x128xbf16>
    %36 = vector.shape_cast %35 : vector<1x8x128xbf16> to vector<8x128xbf16>
    %cst_21 = arith.constant dense<0.000000e+00> : vector<128x128xf32>
    %37 = tpu.matmul %34, %36, %cst_21 {dimension_numbers = #tpu.dot_dimension_numbers<[1], [0], [0], [1], [0, 0, 1, 1], [], []>} : vector<128x8xbf16>, vector<8x128xbf16>, vector<128x128xf32> -> vector<128x128xf32>
    %38 = arith.addf %32, %37 : vector<128x128xf32>
    %39 = vector.extract_strided_slice %1 {offsets = [2, 0, 0], sizes = [8, 16, 8], strides = [1, 1, 1]} : vector<10x18x8xbf16> to vector<8x16x8xbf16>
    %40 = vector.shape_cast %39 : vector<8x16x8xbf16> to vector<128x8xbf16>
    %c6 = arith.constant 6 : index
    %c0_22 = arith.constant 0 : index
    %c0_23 = arith.constant 0 : index
    %41 = vector.load %arg2[%c6, %c0_22, %c0_23] : memref<9x8x128xbf16, #tpu.memory_space<vmem>>, vector<1x8x128xbf16>
    %42 = vector.shape_cast %41 : vector<1x8x128xbf16> to vector<8x128xbf16>
    %cst_24 = arith.constant dense<0.000000e+00> : vector<128x128xf32>
    %43 = tpu.matmul %40, %42, %cst_24 {dimension_numbers = #tpu.dot_dimension_numbers<[1], [0], [0], [1], [0, 0, 1, 1], [], []>} : vector<128x8xbf16>, vector<8x128xbf16>, vector<128x128xf32> -> vector<128x128xf32>
    %44 = arith.addf %38, %43 : vector<128x128xf32>
    %45 = vector.extract_strided_slice %1 {offsets = [2, 1, 0], sizes = [8, 16, 8], strides = [1, 1, 1]} : vector<10x18x8xbf16> to vector<8x16x8xbf16>
    %46 = vector.shape_cast %45 : vector<8x16x8xbf16> to vector<128x8xbf16>
    %c7 = arith.constant 7 : index
    %c0_25 = arith.constant 0 : index
    %c0_26 = arith.constant 0 : index
    %47 = vector.load %arg2[%c7, %c0_25, %c0_26] : memref<9x8x128xbf16, #tpu.memory_space<vmem>>, vector<1x8x128xbf16>
    %48 = vector.shape_cast %47 : vector<1x8x128xbf16> to vector<8x128xbf16>
    %cst_27 = arith.constant dense<0.000000e+00> : vector<128x128xf32>
    %49 = tpu.matmul %46, %48, %cst_27 {dimension_numbers = #tpu.dot_dimension_numbers<[1], [0], [0], [1], [0, 0, 1, 1], [], []>} : vector<128x8xbf16>, vector<8x128xbf16>, vector<128x128xf32> -> vector<128x128xf32>
    %50 = arith.addf %44, %49 : vector<128x128xf32>
    %51 = vector.extract_strided_slice %1 {offsets = [2, 2, 0], sizes = [8, 16, 8], strides = [1, 1, 1]} : vector<10x18x8xbf16> to vector<8x16x8xbf16>
    %52 = vector.shape_cast %51 : vector<8x16x8xbf16> to vector<128x8xbf16>
    %c8 = arith.constant 8 : index
    %c0_28 = arith.constant 0 : index
    %c0_29 = arith.constant 0 : index
    %53 = vector.load %arg2[%c8, %c0_28, %c0_29] : memref<9x8x128xbf16, #tpu.memory_space<vmem>>, vector<1x8x128xbf16>
    %54 = vector.shape_cast %53 : vector<1x8x128xbf16> to vector<8x128xbf16>
    %cst_30 = arith.constant dense<0.000000e+00> : vector<128x128xf32>
    %55 = tpu.matmul %52, %54, %cst_30 {dimension_numbers = #tpu.dot_dimension_numbers<[1], [0], [0], [1], [0, 0, 1, 1], [], []>} : vector<128x8xbf16>, vector<8x128xbf16>, vector<128x128xf32> -> vector<128x128xf32>
    %56 = arith.addf %50, %55 : vector<128x128xf32>
    %cst_31 = arith.constant 1.000000e+00 : f32
    %57 = vector.broadcast %cst_31 : f32 to vector<1x128xf32>
    %cst_32 = arith.constant dense<0.000000e+00> : vector<1x128xf32>
    %58 = tpu.matmul %57, %56, %cst_32 {dimension_numbers = #tpu.dot_dimension_numbers<[1], [0], [0], [1], [0, 0, 1, 1], [], []>} : vector<1x128xf32>, vector<128x128xf32>, vector<1x128xf32> -> vector<1x128xf32>
    %59 = arith.mulf %56, %56 : vector<128x128xf32>
    %cst_33 = arith.constant dense<0.000000e+00> : vector<1x128xf32>
    %60 = tpu.matmul %57, %59, %cst_33 {dimension_numbers = #tpu.dot_dimension_numbers<[1], [0], [0], [1], [0, 0, 1, 1], [], []>} : vector<1x128xf32>, vector<128x128xf32>, vector<1x128xf32> -> vector<1x128xf32>
    %61 = tpu.concatenate %58, %60 in 0 : vector<1x128xf32>, vector<1x128xf32> -> vector<2x128xf32>
    %c0_34 = arith.constant 0 : index
    %c0_35 = arith.constant 0 : index
    %c0_36 = arith.constant 0 : index
    %62 = vector.load %arg3[%c0_34, %c0_35, %c0_36] : memref<1x2x128xf32, #tpu.memory_space<vmem>>, vector<1x2x128xf32>
    %63 = vector.shape_cast %62 : vector<1x2x128xf32> to vector<2x128xf32>
    %64 = vector.shape_cast %61 : vector<2x128xf32> to vector<1x2x128xf32>
    tpu.vector_store %arg3[%c0_34, %c0_35, %c0_36], %64 {strides = array<i32>} : memref<1x2x128xf32, #tpu.memory_space<vmem>>, vector<1x2x128xf32>,
    return
  }
  func.func @transform_0(%arg0: i32) -> (i32, i32, i32, i32) {
    %c0_i32 = arith.constant 0 : i32
    %c0_i32_0 = arith.constant 0 : i32
    %c0_i32_1 = arith.constant 0 : i32
    %c0_i32_2 = arith.constant 0 : i32
    return %arg0, %c0_i32, %c0_i32_0, %c0_i32_1 : i32, i32, i32, i32
  }
  func.func @transform_1(%arg0: i32) -> (i32, i32, i32) {
    %c0_i32 = arith.constant 0 : i32
    %c0_i32_0 = arith.constant 0 : i32
    %c0_i32_1 = arith.constant 0 : i32
    %c0_i32_2 = arith.constant 0 : i32
    return %c0_i32, %c0_i32_0, %c0_i32_1 : i32, i32, i32
  }
  func.func @transform_2(%arg0: i32) -> (i32, i32, i32) {
    %c0_i32 = arith.constant 0 : i32
    %c0_i32_0 = arith.constant 0 : i32
    %c0_i32_1 = arith.constant 0 : i32
    return %arg0, %c0_i32, %c0_i32_0 : i32, i32, i32
  }
}

module attributes {stable_mosaic.version = 11 : i64} {
  func.func @_bn_relu_kernel(%arg0: i32, %arg1: memref<1x10x18x8xbf16, #tpu.memory_space<vmem>>, %arg2: memref<9x8x128xbf16, #tpu.memory_space<vmem>>, %arg3: memref<1x128xf32, #tpu.memory_space<vmem>>, %arg4: memref<1x128xf32, #tpu.memory_space<vmem>>, %arg5: memref<1x128x128xf32, #tpu.memory_space<vmem>>) attributes {dimension_semantics = [#tpu.dimension_semantics<parallel>], iteration_bounds = array<i64: 4>, scalar_prefetch = 0 : i64, scratch_operands = 0 : i64, tpu.core_type = #tpu.core_type<tc>, window_params = [{transform_indices = @transform_0, window_bounds = array<i64: 1, 10, 18, 8>}, {pipeline_mode = #tpu.pipeline_mode<synchronous>, transform_indices = @transform_1, window_bounds = array<i64: 9, 8, 128>}, {pipeline_mode = #tpu.pipeline_mode<synchronous>, transform_indices = @transform_2, window_bounds = array<i64: 1, 128>}, {pipeline_mode = #tpu.pipeline_mode<synchronous>, transform_indices = @transform_3, window_bounds = array<i64: 1, 128>}, {transform_indices = @transform_4, window_bounds = array<i64: 1, 128, 128>}]} {
    %c0 = arith.constant 0 : index
    %c0_0 = arith.constant 0 : index
    %c0_1 = arith.constant 0 : index
    %c0_2 = arith.constant 0 : index
    %0 = vector.load %arg1[%c0, %c0_0, %c0_1, %c0_2] : memref<1x10x18x8xbf16, #tpu.memory_space<vmem>>, vector<1x10x18x8xbf16>
    %1 = vector.shape_cast %0 : vector<1x10x18x8xbf16> to vector<10x18x8xbf16>
    %cst = arith.constant 0.000000e+00 : f32
    %2 = vector.broadcast %cst : f32 to vector<128x128xf32>
    %3 = vector.extract_strided_slice %1 {offsets = [0, 0, 0], sizes = [8, 16, 8], strides = [1, 1, 1]} : vector<10x18x8xbf16> to vector<8x16x8xbf16>
    %4 = vector.shape_cast %3 : vector<8x16x8xbf16> to vector<128x8xbf16>
    %c0_3 = arith.constant 0 : index
    %c0_4 = arith.constant 0 : index
    %c0_5 = arith.constant 0 : index
    %5 = vector.load %arg2[%c0_3, %c0_4, %c0_5] : memref<9x8x128xbf16, #tpu.memory_space<vmem>>, vector<1x8x128xbf16>
    %6 = vector.shape_cast %5 : vector<1x8x128xbf16> to vector<8x128xbf16>
    %cst_6 = arith.constant dense<0.000000e+00> : vector<128x128xf32>
    %7 = tpu.matmul %4, %6, %cst_6 {dimension_numbers = #tpu.dot_dimension_numbers<[1], [0], [0], [1], [0, 0, 1, 1], [], []>} : vector<128x8xbf16>, vector<8x128xbf16>, vector<128x128xf32> -> vector<128x128xf32>
    %8 = arith.addf %2, %7 : vector<128x128xf32>
    %9 = vector.extract_strided_slice %1 {offsets = [0, 1, 0], sizes = [8, 16, 8], strides = [1, 1, 1]} : vector<10x18x8xbf16> to vector<8x16x8xbf16>
    %10 = vector.shape_cast %9 : vector<8x16x8xbf16> to vector<128x8xbf16>
    %c1 = arith.constant 1 : index
    %c0_7 = arith.constant 0 : index
    %c0_8 = arith.constant 0 : index
    %11 = vector.load %arg2[%c1, %c0_7, %c0_8] : memref<9x8x128xbf16, #tpu.memory_space<vmem>>, vector<1x8x128xbf16>
    %12 = vector.shape_cast %11 : vector<1x8x128xbf16> to vector<8x128xbf16>
    %cst_9 = arith.constant dense<0.000000e+00> : vector<128x128xf32>
    %13 = tpu.matmul %10, %12, %cst_9 {dimension_numbers = #tpu.dot_dimension_numbers<[1], [0], [0], [1], [0, 0, 1, 1], [], []>} : vector<128x8xbf16>, vector<8x128xbf16>, vector<128x128xf32> -> vector<128x128xf32>
    %14 = arith.addf %8, %13 : vector<128x128xf32>
    %15 = vector.extract_strided_slice %1 {offsets = [0, 2, 0], sizes = [8, 16, 8], strides = [1, 1, 1]} : vector<10x18x8xbf16> to vector<8x16x8xbf16>
    %16 = vector.shape_cast %15 : vector<8x16x8xbf16> to vector<128x8xbf16>
    %c2 = arith.constant 2 : index
    %c0_10 = arith.constant 0 : index
    %c0_11 = arith.constant 0 : index
    %17 = vector.load %arg2[%c2, %c0_10, %c0_11] : memref<9x8x128xbf16, #tpu.memory_space<vmem>>, vector<1x8x128xbf16>
    %18 = vector.shape_cast %17 : vector<1x8x128xbf16> to vector<8x128xbf16>
    %cst_12 = arith.constant dense<0.000000e+00> : vector<128x128xf32>
    %19 = tpu.matmul %16, %18, %cst_12 {dimension_numbers = #tpu.dot_dimension_numbers<[1], [0], [0], [1], [0, 0, 1, 1], [], []>} : vector<128x8xbf16>, vector<8x128xbf16>, vector<128x128xf32> -> vector<128x128xf32>
    %20 = arith.addf %14, %19 : vector<128x128xf32>
    %21 = vector.extract_strided_slice %1 {offsets = [1, 0, 0], sizes = [8, 16, 8], strides = [1, 1, 1]} : vector<10x18x8xbf16> to vector<8x16x8xbf16>
    %22 = vector.shape_cast %21 : vector<8x16x8xbf16> to vector<128x8xbf16>
    %c3 = arith.constant 3 : index
    %c0_13 = arith.constant 0 : index
    %c0_14 = arith.constant 0 : index
    %23 = vector.load %arg2[%c3, %c0_13, %c0_14] : memref<9x8x128xbf16, #tpu.memory_space<vmem>>, vector<1x8x128xbf16>
    %24 = vector.shape_cast %23 : vector<1x8x128xbf16> to vector<8x128xbf16>
    %cst_15 = arith.constant dense<0.000000e+00> : vector<128x128xf32>
    %25 = tpu.matmul %22, %24, %cst_15 {dimension_numbers = #tpu.dot_dimension_numbers<[1], [0], [0], [1], [0, 0, 1, 1], [], []>} : vector<128x8xbf16>, vector<8x128xbf16>, vector<128x128xf32> -> vector<128x128xf32>
    %26 = arith.addf %20, %25 : vector<128x128xf32>
    %27 = vector.extract_strided_slice %1 {offsets = [1, 1, 0], sizes = [8, 16, 8], strides = [1, 1, 1]} : vector<10x18x8xbf16> to vector<8x16x8xbf16>
    %28 = vector.shape_cast %27 : vector<8x16x8xbf16> to vector<128x8xbf16>
    %c4 = arith.constant 4 : index
    %c0_16 = arith.constant 0 : index
    %c0_17 = arith.constant 0 : index
    %29 = vector.load %arg2[%c4, %c0_16, %c0_17] : memref<9x8x128xbf16, #tpu.memory_space<vmem>>, vector<1x8x128xbf16>
    %30 = vector.shape_cast %29 : vector<1x8x128xbf16> to vector<8x128xbf16>
    %cst_18 = arith.constant dense<0.000000e+00> : vector<128x128xf32>
    %31 = tpu.matmul %28, %30, %cst_18 {dimension_numbers = #tpu.dot_dimension_numbers<[1], [0], [0], [1], [0, 0, 1, 1], [], []>} : vector<128x8xbf16>, vector<8x128xbf16>, vector<128x128xf32> -> vector<128x128xf32>
    %32 = arith.addf %26, %31 : vector<128x128xf32>
    %33 = vector.extract_strided_slice %1 {offsets = [1, 2, 0], sizes = [8, 16, 8], strides = [1, 1, 1]} : vector<10x18x8xbf16> to vector<8x16x8xbf16>
    %34 = vector.shape_cast %33 : vector<8x16x8xbf16> to vector<128x8xbf16>
    %c5 = arith.constant 5 : index
    %c0_19 = arith.constant 0 : index
    %c0_20 = arith.constant 0 : index
    %35 = vector.load %arg2[%c5, %c0_19, %c0_20] : memref<9x8x128xbf16, #tpu.memory_space<vmem>>, vector<1x8x128xbf16>
    %36 = vector.shape_cast %35 : vector<1x8x128xbf16> to vector<8x128xbf16>
    %cst_21 = arith.constant dense<0.000000e+00> : vector<128x128xf32>
    %37 = tpu.matmul %34, %36, %cst_21 {dimension_numbers = #tpu.dot_dimension_numbers<[1], [0], [0], [1], [0, 0, 1, 1], [], []>} : vector<128x8xbf16>, vector<8x128xbf16>, vector<128x128xf32> -> vector<128x128xf32>
    %38 = arith.addf %32, %37 : vector<128x128xf32>
    %39 = vector.extract_strided_slice %1 {offsets = [2, 0, 0], sizes = [8, 16, 8], strides = [1, 1, 1]} : vector<10x18x8xbf16> to vector<8x16x8xbf16>
    %40 = vector.shape_cast %39 : vector<8x16x8xbf16> to vector<128x8xbf16>
    %c6 = arith.constant 6 : index
    %c0_22 = arith.constant 0 : index
    %c0_23 = arith.constant 0 : index
    %41 = vector.load %arg2[%c6, %c0_22, %c0_23] : memref<9x8x128xbf16, #tpu.memory_space<vmem>>, vector<1x8x128xbf16>
    %42 = vector.shape_cast %41 : vector<1x8x128xbf16> to vector<8x128xbf16>
    %cst_24 = arith.constant dense<0.000000e+00> : vector<128x128xf32>
    %43 = tpu.matmul %40, %42, %cst_24 {dimension_numbers = #tpu.dot_dimension_numbers<[1], [0], [0], [1], [0, 0, 1, 1], [], []>} : vector<128x8xbf16>, vector<8x128xbf16>, vector<128x128xf32> -> vector<128x128xf32>
    %44 = arith.addf %38, %43 : vector<128x128xf32>
    %45 = vector.extract_strided_slice %1 {offsets = [2, 1, 0], sizes = [8, 16, 8], strides = [1, 1, 1]} : vector<10x18x8xbf16> to vector<8x16x8xbf16>
    %46 = vector.shape_cast %45 : vector<8x16x8xbf16> to vector<128x8xbf16>
    %c7 = arith.constant 7 : index
    %c0_25 = arith.constant 0 : index
    %c0_26 = arith.constant 0 : index
    %47 = vector.load %arg2[%c7, %c0_25, %c0_26] : memref<9x8x128xbf16, #tpu.memory_space<vmem>>, vector<1x8x128xbf16>
    %48 = vector.shape_cast %47 : vector<1x8x128xbf16> to vector<8x128xbf16>
    %cst_27 = arith.constant dense<0.000000e+00> : vector<128x128xf32>
    %49 = tpu.matmul %46, %48, %cst_27 {dimension_numbers = #tpu.dot_dimension_numbers<[1], [0], [0], [1], [0, 0, 1, 1], [], []>} : vector<128x8xbf16>, vector<8x128xbf16>, vector<128x128xf32> -> vector<128x128xf32>
    %50 = arith.addf %44, %49 : vector<128x128xf32>
    %51 = vector.extract_strided_slice %1 {offsets = [2, 2, 0], sizes = [8, 16, 8], strides = [1, 1, 1]} : vector<10x18x8xbf16> to vector<8x16x8xbf16>
    %52 = vector.shape_cast %51 : vector<8x16x8xbf16> to vector<128x8xbf16>
    %c8 = arith.constant 8 : index
    %c0_28 = arith.constant 0 : index
    %c0_29 = arith.constant 0 : index
    %53 = vector.load %arg2[%c8, %c0_28, %c0_29] : memref<9x8x128xbf16, #tpu.memory_space<vmem>>, vector<1x8x128xbf16>
    %54 = vector.shape_cast %53 : vector<1x8x128xbf16> to vector<8x128xbf16>
    %cst_30 = arith.constant dense<0.000000e+00> : vector<128x128xf32>
    %55 = tpu.matmul %52, %54, %cst_30 {dimension_numbers = #tpu.dot_dimension_numbers<[1], [0], [0], [1], [0, 0, 1, 1], [], []>} : vector<128x8xbf16>, vector<8x128xbf16>, vector<128x128xf32> -> vector<128x128xf32>
    %56 = arith.addf %50, %55 : vector<128x128xf32>
    %c0_31 = arith.constant 0 : index
    %c0_32 = arith.constant 0 : index
    %57 = vector.load %arg3[%c0_31, %c0_32] : memref<1x128xf32, #tpu.memory_space<vmem>>, vector<1x128xf32>
    %58 = vector.broadcast %57 : vector<1x128xf32> to vector<128x128xf32>
    %59 = arith.mulf %56, %58 : vector<128x128xf32>
    %c0_33 = arith.constant 0 : index
    %c0_34 = arith.constant 0 : index
    %60 = vector.load %arg4[%c0_33, %c0_34] : memref<1x128xf32, #tpu.memory_space<vmem>>, vector<1x128xf32>
    %61 = vector.broadcast %60 : vector<1x128xf32> to vector<128x128xf32>
    %62 = arith.addf %59, %61 : vector<128x128xf32>
    %cst_35 = arith.constant 0.000000e+00 : f32
    %63 = vector.broadcast %cst_35 : f32 to vector<128x128xf32>
    %64 = arith.maximumf %62, %63 : vector<128x128xf32>
    %c0_36 = arith.constant 0 : index
    %c0_37 = arith.constant 0 : index
    %c0_38 = arith.constant 0 : index
    %65 = vector.load %arg5[%c0_36, %c0_37, %c0_38] : memref<1x128x128xf32, #tpu.memory_space<vmem>>, vector<1x128x128xf32>
    %66 = vector.shape_cast %65 : vector<1x128x128xf32> to vector<128x128xf32>
    %67 = vector.shape_cast %64 : vector<128x128xf32> to vector<1x128x128xf32>
    tpu.vector_store %arg5[%c0_36, %c0_37, %c0_38], %67 {strides = array<i32>} : memref<1x128x128xf32, #tpu.memory_space<vmem>>, vector<1x128x128xf32>,
    return
  }
  func.func @transform_0(%arg0: i32) -> (i32, i32, i32, i32) {
    %c0_i32 = arith.constant 0 : i32
    %c0_i32_0 = arith.constant 0 : i32
    %c0_i32_1 = arith.constant 0 : i32
    %c0_i32_2 = arith.constant 0 : i32
    return %arg0, %c0_i32, %c0_i32_0, %c0_i32_1 : i32, i32, i32, i32
  }
  func.func @transform_1(%arg0: i32) -> (i32, i32, i32) {
    %c0_i32 = arith.constant 0 : i32
    %c0_i32_0 = arith.constant 0 : i32
    %c0_i32_1 = arith.constant 0 : i32
    %c0_i32_2 = arith.constant 0 : i32
    return %c0_i32, %c0_i32_0, %c0_i32_1 : i32, i32, i32
  }
  func.func @transform_2(%arg0: i32) -> (i32, i32) {
    %c0_i32 = arith.constant 0 : i32
    %c0_i32_0 = arith.constant 0 : i32
    %c0_i32_1 = arith.constant 0 : i32
    return %c0_i32, %c0_i32_0 : i32, i32
  }
  func.func @transform_3(%arg0: i32) -> (i32, i32) {
    %c0_i32 = arith.constant 0 : i32
    %c0_i32_0 = arith.constant 0 : i32
    %c0_i32_1 = arith.constant 0 : i32
    return %c0_i32, %c0_i32_0 : i32, i32
  }
  func.func @transform_4(%arg0: i32) -> (i32, i32, i32) {
    %c0_i32 = arith.constant 0 : i32
    %c0_i32_0 = arith.constant 0 : i32
    %c0_i32_1 = arith.constant 0 : i32
    return %arg0, %c0_i32, %c0_i32_0 : i32, i32, i32
  }
}

</mosaic_0001>

<bundles_post_ra>
// kernel: unet_block_forward.4
= control target key start
LH: loop header
LB: loop body
LE: loop exit
PB: predicated region body
PF: predicated region fallthrough
CT: control target
= control target key end

     0   :  { %s1599_s9 = smov 0   ;;  %s2224_s0 = inlined_call_operand.vmem [shape: bf16[4,10,18,4], index: 0, kind: input, shape index: {}]   ;;  %s2225_s1 = inlined_call_operand.vmem [shape: bf16[9,4,128], index: 1, kind: input, shape index: {}]   ;;  %s2226_s2 = inlined_call_operand.vmem [shape: f32[4,2,128], index: 2, kind: output, shape index: {}]  }
   0x1 LB: > { %s1413_s10 = sadd.s32 4294967295, %s1581_s9   ;;  %p1417_p0 = scmp.ge.s32.totalorder %s1581_s9, 1  ;;  %s1581_s9 = sphi %s1599_s9, %s12_s9  }
   0x2   : > { %p112_p1 = scmp.lt.s32.totalorder %s1581_s9, 5 }
   0x4   : > { %p113_p2 = pnand %p1417_p0, %p112_p1 }
   0x5   : > { %p133_p3 = scmp.lt.s32.totalorder (!%p113_p2), %s1413_s10, 3 }
   0x6   : > { %116 = sbr.rel (%p113_p2) target bundleno = 638 (0x27e), region = 28 }
   0xb   : > { %v1420_v0 = vld [vmem:[%s2225_s1 + $0x2] sm:$0x3]  ;;  %vm420_vm0 = vcmask 1041408   ;;  %s2232_s10 = smov (!%p133_p3, %s1413_s10), 3  ;;  %vm174_vm1 = vsmask.f32 3328 }
   0xc   : > { %v422_v1 = vsel %vm420_vm0, %v1420_v0, 0  ;;  %s1565_s13 = smul.u32 120, %s2232_s10  ;;  %vm175_vm2 = vsmask.f32 7440  ;;  %vm395_vm3 = vcmask 31744   ;;  %vm597_vm5 = vcmask 1042432  }
   0xd   : > { %1562 = vmatpush.bf16.msra.mxu1 %v422_v1  ;;  %1563 = vmatpush.bf16.msra.mxu2 %v422_v1  ;;  %vm1655_vm4 = vmor %vm174_vm1, %vm175_vm2  ;;  %vm598_vm6 = vcmask 1046532   ;;  %s1419_s5 = sshll.u32 %s2232_s10, 1  ;;  %vm1357_vm8 = vcmask 1040384  }
   0xe   : > { %1564 = vmatpush.bf16.msra.mxu3 %v422_v1  ;;  %431 = vmatpush.bf16.msra.mxu0 %v422_v1  ;;  %s1617_s16 = scalar_lea.vmem %s2224_s0, %s1565_s13  ;;  %vm1805_vm7 = vmor %vm597_vm5, %vm598_vm6  ;;  %s141_s8 = scalar_lea.vmem %s2226_s2, %s1419_s5 }
   0xf   : > { %v1620_v2 = vld [vmem:[%s1617_s16 + $0xc] sm:$0xf]  ;;  %v1623_v3 = vld [vmem:[%s1617_s16 + $0x10] sm:$0xf]  ;;  %v1626_v4 = vld [vmem:[%s1617_s16 + $0x14] sm:$0x1] }
  0x10   : > { %v202_v5 = vshrl.u32 %v1620_v2, 16  ;;  %v205_v6 = vshll.u32 %v1620_v2, 16  ;;  %v211_v7 = vshll.u32 %v1623_v3, 16  ;;  %v215_v8 = vshrl.u32 %v1623_v3, 16  ;;  %v1633_v9 = vld [vmem:[%s1617_s16 + $0x24] sm:$0xf] }
  0x11   : > { %v221_v10 = vshll.u32 %v1626_v4, 16  ;;  %v1637_v11 = vld [vmem:[%s1617_s16 + $0x28] sm:$0xf]  ;;  %v1640_v12 = vld [vmem:[%s1617_s16 + $0x2c] sm:$0x1]  ;;  %v250_v13 = vshrl.u32 %v1633_v9, 16 }
  0x12   : > { %v204_v14 = vrot.slane %v202_v5, 4  ;;  %v207_v15 = vrot.slane %v205_v6, 5  ;;  %v213_v16 = vrot.slane %v211_v7, 5  ;;  %v217_v17 = vrot.slane %v215_v8, 4  ;;  %v1644_v18 = vld [vmem:[%s1617_s16 + $0x3c] sm:$0xf] }
  0x13   : > { %v223_v19 = vrot.slane %v221_v10, 5  ;;  %v252_v20 = vrot.slane %v250_v13, 4  ;;  %v253_v21 = vshll.u32 %v1633_v9, 16  ;;  %v259_v22 = vshll.u32 %v1637_v11, 16  ;;  %v1651_v27 = vld [vmem:[%s1617_s16 + $0x40] sm:$0xf] }
  0x14   : > { %v208_v23 = vor.u32 %v207_v15, %v204_v14  ;;  %v218_v24 = vor.u32 %v217_v17, %v213_v16  ;;  %v263_v25 = vshrl.u32 %v1637_v11, 16  ;;  %v269_v26 = vshll.u32 %v1640_v12, 16  ;;  %v1662_v38 = vld [vmem:[%s1617_s16 + $0x44] sm:$0x1]  ;;  %v1671_v46 = vld [vmem:[%s1617_s16 + $0x18] sm:$0xf] }
  0x15   : > { %v255_v29 = vrot.slane %v253_v21, 5  ;;  %v261_v30 = vrot.slane %v259_v22, 5  ;;  %v298_v31 = vshrl.u32 %v1644_v18, 16  ;;  %v301_v32 = vshll.u32 %v1644_v18, 16  ;;  %v1679_v58 = vld [vmem:[%s1617_s16 + $0x1c] sm:$0xf] }
  0x16   : > { %v209_v33 = vrot.slane %v208_v23, 4  ;;  %v219_v34 = vrot.slane %v218_v24, 4  ;;  %v265_v35 = vrot.slane %v263_v25, 4  ;;  %v271_v36 = vrot.slane %v269_v26, 5  ;;  %v1685_v0 = vld [vmem:[%s1617_s16 + $0x20] sm:$0x1] }
  0x17   : > { %v256_v37 = vor.u32 %v255_v29, %v252_v20  ;;  %v300_v39 = vrot.slane %v298_v31, 4  ;;  %v303_v40 = vrot.slane %v301_v32, 5  ;;  %v307_v41 = vshll.u32 %v1651_v27, 16  ;;  %v1688_v1 = vld [vmem:[%s1617_s16 + $0x30] sm:$0xf] }
  0x18   : > { %v214_v42 = vsel %vm1655_vm4, %v209_v33, %v213_v16  ;;  %v224_v43 = vsel %vm1655_vm4, %v219_v34, %v223_v19  ;;  %v266_v44 = vor.u32 %v265_v35, %v261_v30  ;;  %v311_v45 = vshrl.u32 %v1651_v27, 16  ;;  %v1698_v16 = vld [vmem:[%s1617_s16 + $0x34] sm:$0xf]  ;;  %v1704_v21 = vld [vmem:[%s1617_s16 + $0x38] sm:$0x1] }
  0x19   : > { %v373_v47 = vunpack.c.l.b16 %v214_v42  ;;  %v374_v48 = vunpack.c.l.b16 %v224_v43  ;;  %v257_v49 = vrot.slane %v256_v37, 4  ;;  %v304_v50 = vor.u32 %v303_v40, %v300_v39  ;;  %v1711_v29 = vld [vmem:[%s1617_s16 + $0x48] sm:$0xf]  ;;  %v1721_v42 = vld [vmem:[%s1617_s16 + $0x4c] sm:$0xf] }
  0x1a   : > { %v267_v51 = vrot.slane %v266_v44, 4  ;;  %v309_v52 = vrot.slane %v307_v41, 5  ;;  %v313_v53 = vrot.slane %v311_v45, 4  ;;  %v317_v54 = vshll.u32 %v1662_v38, 16 }
  0x1b   : > { %v1674_v55 = vpack.c.b16 %v374_v48, %v373_v47  ;;  %v262_v56 = vsel %vm1655_vm4, %v257_v49, %v261_v30  ;;  %v305_v57 = vrot.slane %v304_v50, 4  ;;  %v226_v59 = vshrl.u32 %v1671_v46, 16  ;;  %v1725_v49 = vld [vmem:[%s1617_s16 + $0x50] sm:$0x1] }
  0x1c   : > { %v272_v60 = vsel %vm1655_vm4, %v267_v51, %v271_v36  ;;  %v377_v61 = vunpack.c.l.b16 %v262_v56  ;;  %v314_v62 = vor.u32 %v313_v53, %v309_v52  ;;  %v319_v63 = vrot.slane %v317_v54, 5  ;;  %v173_v54 = vld [vmem:[%s2225_s1] sm:$0x3] }
  0x1d   : > { %1422 = vmatmul.msk.bf16.vlgmr.msra.gmra.mxu1 %vm395_vm3, %v1674_v55  ;;  %v378_v5 = vunpack.c.l.b16 %v272_v60  ;;  %v310_v6 = vsel %vm1655_vm4, %v305_v57, %v309_v52  ;;  %v228_v7 = vrot.slane %v226_v59, 4  ;;  %v229_v8 = vshll.u32 %v1671_v46, 16 }
  0x1e   : > { %v315_v10 = vrot.slane %v314_v62, 4  ;;  %v381_v13 = vunpack.c.l.b16 %v310_v6  ;;  %v235_v14 = vshll.u32 %v1679_v58, 16  ;;  %v239_v15 = vshrl.u32 %v1679_v58, 16  ;;  %v1477_v6 = vld [vmem:[%s2225_s1 + $0x4] sm:$0x3] }
  0x1f   : > { %v1700_v17 = vpack.c.b16 %v378_v5, %v377_v61  ;;  %v231_v19 = vrot.slane %v229_v8, 5  ;;  %v245_v20 = vshll.u32 %v1685_v0, 16  ;;  %v274_v22 = vshrl.u32 %v1688_v1, 16 }
  0x20   : > { %v320_v23 = vsel %vm1655_vm4, %v315_v10, %v319_v63  ;;  %v237_v24 = vrot.slane %v235_v14, 5  ;;  %v241_v25 = vrot.slane %v239_v15, 4  ;;  %v277_v26 = vshll.u32 %v1688_v1, 16  ;;  %v1747_v14 = vld [vmem:[%s1617_s16] sm:$0xf] }
  0x21   : > { %1424 = vmatmul.msk.bf16.vlgmr.msra.gmra.mxu2 %vm395_vm3, %v1700_v17  ;;  %v382_v30 = vunpack.c.l.b16 %v320_v23  ;;  %v232_v31 = vor.u32 %v231_v19, %v228_v7  ;;  %v247_v32 = vrot.slane %v245_v20, 5  ;;  %v276_v33 = vrot.slane %v274_v22, 4  ;;  %v1752_v23 = vld [vmem:[%s1617_s16 + $0x4] sm:$0xf] }
  0x22   : > { %v242_v34 = vor.u32 %v241_v25, %v237_v24  ;;  %v279_v35 = vrot.slane %v277_v26, 5  ;;  %v283_v36 = vshll.u32 %v1698_v16, 16  ;;  %v287_v37 = vshrl.u32 %v1698_v16, 16 }
  0x23   : > { %v1717_v39 = vpack.c.b16 %v382_v30, %v381_v13  ;;  %v233_v40 = vrot.slane %v232_v31, 4  ;;  %v293_v41 = vshll.u32 %v1704_v21, 16  ;;  %v322_v43 = vshrl.u32 %v1711_v29, 16 }
  0x24   : > { %v243_v44 = vrot.slane %v242_v34, 4  ;;  %v280_v45 = vor.u32 %v279_v35, %v276_v33  ;;  %v285_v47 = vrot.slane %v283_v36, 5  ;;  %v289_v48 = vrot.slane %v287_v37, 4 }
  0x25   : > { %1426 = vmatmul.msk.bf16.vlgmr.msra.gmra.mxu3 %vm395_vm3, %v1717_v39  ;;  %v238_v50 = vsel %vm1655_vm4, %v233_v40, %v237_v24  ;;  %v295_v51 = vrot.slane %v293_v41, 5  ;;  %v324_v52 = vrot.slane %v322_v43, 4  ;;  %v325_v53 = vshll.u32 %v1711_v29, 16  ;;  %v1755_v24 = vld [vmem:[%s1617_s16 + $0x8] sm:$0x1] }
  0x26   : > { %v248_v56 = vsel %vm1655_vm4, %v243_v44, %v247_v32  ;;  %v375_v57 = vunpack.c.l.b16 %v238_v50  ;;  %v281_v59 = vrot.slane %v280_v45, 4  ;;  %v290_v60 = vor.u32 %v289_v48, %v285_v47  ;;  %v1766_v43 = vld [vmem:[%s1617_s16 + $0x54] sm:$0xf]  ;;  %v1775_v50 = vld [vmem:[%s1617_s16 + $0x58] sm:$0xf] }
  0x27   : > { %v376_v61 = vunpack.c.l.b16 %v248_v56  ;;  %v327_v62 = vrot.slane %v325_v53, 5  ;;  %v331_v63 = vshll.u32 %v1721_v42, 16  ;;  %v335_v5 = vshrl.u32 %v1721_v42, 16 }
  0x28   : > { %v286_v7 = vsel %vm1655_vm4, %v281_v59, %v285_v47  ;;  %v291_v8 = vrot.slane %v290_v60, 4  ;;  %v341_v10 = vshll.u32 %v1725_v49, 16  ;;  %v538_v13 = vsel %vm420_vm0, %v173_v54, 0  ;;  %v1779_v60 = vld [vmem:[%s1617_s16 + $0x5c] sm:$0x1] }
  0x29   : > { %v1749_v15 = vpack.c.b16 %v376_v61, %v375_v57  ;;  %v379_v19 = vunpack.c.l.b16 %v286_v7  ;;  %v328_v20 = vor.u32 %v327_v62, %v324_v52  ;;  %v333_v22 = vrot.slane %v331_v63, 5  ;;  %547 = vmatpush.bf16.msrb.mxu1 %v538_v13 }
  0x2a   : > { %v296_v25 = vsel %vm1655_vm4, %v291_v8, %v295_v51  ;;  %v337_v26 = vrot.slane %v335_v5, 4  ;;  %v343_v30 = vrot.slane %v341_v10, 5  ;;  %v707_v31 = vsel %vm420_vm0, %v1477_v6, 0 }
  0x2b   : > { %v380_v32 = vunpack.c.l.b16 %v296_v25  ;;  %v329_v33 = vrot.slane %v328_v20, 4  ;;  %716 = vmatpush.bf16.msrb.mxu2 %v707_v31  ;;  %v178_v34 = vshrl.u32 %v1747_v14, 16  ;;  %v181_v35 = vshll.u32 %v1747_v14, 16  ;;  %v1486_v31 = vld [vmem:[%s2225_s1 + $0x6] sm:$0x3] }
  0x2c   : > { %v338_v36 = vor.u32 %v337_v26, %v333_v22  ;;  %v187_v37 = vshll.u32 %v1752_v23, 16  ;;  %v191_v40 = vshrl.u32 %v1752_v23, 16  ;;  %v197_v41 = vshll.u32 %v1755_v24, 16 }
  0x2d   : > { %1423 = vmatmul.msk.bf16.gmra.mxu1 %vm395_vm3, %v1749_v15  ;;  %v1770_v44 = vpack.c.b16 %v380_v32, %v379_v19  ;;  %v334_v45 = vsel %vm1655_vm4, %v329_v33, %v333_v22  ;;  %v180_v47 = vrot.slane %v178_v34, 4  ;;  %v183_v48 = vrot.slane %v181_v35, 5  ;;  %v1499_v32 = vld [vmem:[%s2225_s1 + $0x8] sm:$0x3] }
  0x2e   : > { %v339_v51 = vrot.slane %v338_v36, 4  ;;  %v383_v52 = vunpack.c.l.b16 %v334_v45  ;;  %v189_v53 = vrot.slane %v187_v37, 5  ;;  %v193_v54 = vrot.slane %v191_v40, 4 }
  0x2f   : > { %v184_v56 = vor.u32 %v183_v48, %v180_v47  ;;  %v199_v57 = vrot.slane %v197_v41, 5  ;;  %v605_v59 = vrot.slane %v1755_v24, 5  ;;  %v346_v61 = vshrl.u32 %v1766_v43, 16 }
  0x30   : > { %v344_v62 = vsel %vm1655_vm4, %v339_v51, %v343_v30  ;;  %v194_v63 = vor.u32 %v193_v54, %v189_v53  ;;  %v349_v5 = vshll.u32 %v1766_v43, 16  ;;  %v355_v6 = vshll.u32 %v1775_v50, 16 }
  0x31   : > { %1425 = vmatmul.msk.bf16.gmra.mxu2 %vm395_vm3, %v1770_v44  ;;  %v384_v7 = vunpack.c.l.b16 %v344_v62  ;;  %v185_v8 = vrot.slane %v184_v56, 4  ;;  %v348_v10 = vrot.slane %v346_v61, 4  ;;  %v359_v13 = vshrl.u32 %v1775_v50, 16 }
  0x32   : > { %v195_v19 = vrot.slane %v194_v63, 4  ;;  %v351_v20 = vrot.slane %v349_v5, 5  ;;  %v357_v22 = vrot.slane %v355_v6, 5  ;;  %v365_v24 = vshll.u32 %v1779_v60, 16 }
  0x33   : > { %v1790_v25 = vpack.c.b16 %v384_v7, %v383_v52  ;;  %v190_v26 = vsel %vm1655_vm4, %v185_v8, %v189_v53  ;;  %v361_v30 = vrot.slane %v359_v13, 4  ;;  %v1469_v41 = vrot.slane %v1747_v14, 9  ;;  %v1552_v14 = vld [vmem:[%s1617_s16] sm:$0xff] }
  0x34   : > { %v200_v33 = vsel %vm1655_vm4, %v195_v19, %v199_v57  ;;  %v371_v34 = vunpack.c.l.b16 %v190_v26  ;;  %v352_v35 = vor.u32 %v351_v20, %v348_v10  ;;  %v367_v36 = vrot.slane %v365_v24, 5  ;;  %v1553_v26 = vld [vmem:[%s1617_s16 + $0xc] sm:$0xff] }
  0x35   : > { %1427 = vmatmul.msk.bf16.gmra.mxu3 %vm395_vm3, %v1790_v25  ;;  %v372_v37 = vunpack.c.l.b16 %v200_v33  ;;  %v362_v40 = vor.u32 %v361_v30, %v357_v22  ;;  %v602_v48 = vrot.slane %v1752_v23, 5  ;;  %v785_v51 = vsel %vm420_vm0, %v1486_v31, 0 }
  0x36   : > { %v353_v45 = vrot.slane %v352_v35, 4  ;;  %v885_v52 = vsel %vm420_vm0, %v1499_v32, 0  ;;  %794 = vmatpush.bf16.msrb.mxu3 %v785_v51  ;;  %v609_v10 = vrot.slane %v1623_v3, 5  ;;  %v1470_v19 = vrot.slane %v1620_v2, 9 }
  0x37   : > { %v387_v53 = vpack.c.b16 %v372_v37, %v371_v34  ;;  %v363_v54 = vrot.slane %v362_v40, 4  ;;  %894 = vmatpush.bf16.msrb.mxu0 %v885_v52  ;;  %v603_v56 = vsel %vm1805_vm7, %v1469_v41, %v602_v48  ;;  %v604_v57 = vrot.slane %v602_v48, 4 }
  0x38   : > { %v658_v61 = vunpack.c.l.b16 %v603_v56  ;;  %v358_v62 = vsel %vm1655_vm4, %v353_v45, %v357_v22  ;;  %v611_v20 = vrot.slane %v609_v10, 4  ;;  %v612_v22 = vrot.slane %v1626_v4, 5  ;;  %v1861_v45 = vld [vmem:[%s1617_s16 + $0x18] sm:$0xff] }
  0x39   : > { %1421 = vmatmul.msk.bf16.vlgmr.msra.gmra.mxu0 %vm395_vm3, %v387_v53  ;;  %v368_v23 = vsel %vm1655_vm4, %v363_v54, %v367_v36  ;;  %v606_v63 = vsel %vm1805_vm7, %v604_v57, %v605_v59  ;;  %v385_v6 = vunpack.c.l.b16 %v358_v62  ;;  %v610_v59 = vsel %vm1805_vm7, %v1470_v19, %v609_v10  ;;  %v1518_v19 = vld [vmem:[%s2225_s1 + $0xc] sm:$0x3] }
  0x3a   : > { %v659_v5 = vunpack.c.l.b16 %v606_v63  ;;  %v386_v7 = vunpack.c.l.b16 %v368_v23  ;;  %v613_v24 = vsel %vm1805_vm7, %v611_v20, %v612_v22  ;;  %v660_v3 = vunpack.c.l.b16 %v610_v59 }
  0x3b   : > { %v661_v30 = vunpack.c.l.b16 %v613_v24  ;;  %v623_v2 = vrot.slane %v1637_v11, 5  ;;  %v1472_v31 = vrot.slane %v1633_v9, 9  ;;  %v626_v32 = vrot.slane %v1640_v12, 5 }
  0x3c   : > { %v674_v8 = vpack.c.b16 %v659_v5, %v658_v61  ;;  %v1824_v13 = vpack.c.b16 %v386_v7, %v385_v6  ;;  %v616_v33 = vrot.slane %v1679_v58, 5  ;;  %v1471_v37 = vrot.slane %v1671_v46, 9 }
  0x3d   : > { %1461 = vmatmul.msk.bf16.vlgmr.msrb.gmra.mxu1 %vm395_vm3, %v1552_v14  ;;  %v1840_v4 = vpack.c.b16 %v661_v30, %v660_v3  ;;  %v625_v34 = vrot.slane %v623_v2, 4  ;;  %v624_v35 = vsel %vm1805_vm7, %v1472_v31, %v623_v2  ;;  %v619_v40 = vrot.slane %v1685_v0, 5  ;;  %v1541_v30 = vld [vmem:[%s2225_s1 + $0x10] sm:$0x3]  ;;  %v1946_v2 = vld [vmem:[%s1617_s16 + $0x48] sm:$0xff] }
  0x3e   : > { %v664_v36 = vunpack.c.l.b16 %v624_v35  ;;  %v618_v9 = vrot.slane %v616_v33, 4  ;;  %v617_v58 = vsel %vm1805_vm7, %v1471_v37, %v616_v33  ;;  %v630_v46 = vrot.slane %v1698_v16, 5 }
  0x3f   : > { %v662_v48 = vunpack.c.l.b16 %v617_v58  ;;  %v1473_v52 = vrot.slane %v1688_v1, 9  ;;  %v633_v53 = vrot.slane %v1704_v21, 5  ;;  %v1883_v1 = vld [vmem:[%s1617_s16 + $0x24] sm:$0xff]  ;;  %v1894_v21 = vld [vmem:[%s1617_s16 + $0x30] sm:$0xff]  ;;  %v637_v62 = vrot.slane %v1651_v27, 5 }
  0x40   : > { %v620_v41 = vsel %vm1805_vm7, %v618_v9, %v619_v40  ;;  %v632_v54 = vrot.slane %v630_v46, 4  ;;  %v1474_v23 = vrot.slane %v1644_v18, 9  ;;  %v640_v5 = vrot.slane %v1662_v38, 5 }
  0x41   : > { %1478 = vmatmul.msk.bf16.vlgmr.msrb.gmra.mxu2 %vm395_vm3, %v674_v8  ;;  %v663_v51 = vunpack.c.l.b16 %v620_v41  ;;  %v631_v56 = vsel %vm1805_vm7, %v1473_v52, %v630_v46  ;;  %v639_v63 = vrot.slane %v637_v62, 4  ;;  %v1912_v8 = vld [vmem:[%s1617_s16 + $0x3c] sm:$0xff]  ;;  %v644_v38 = vrot.slane %v1721_v42, 5  ;;  %v1531_v42 = vld [vmem:[%s2225_s1 + $0xe] sm:$0x3] }
  0x42   : > { %v634_v57 = vsel %vm1805_vm7, %v632_v54, %v633_v53  ;;  %v666_v14 = vunpack.c.l.b16 %v631_v56  ;;  %v638_v6 = vsel %vm1805_vm7, %v1474_v23, %v637_v62  ;;  %v1047_v20 = vsel %vm420_vm0, %v1518_v19, 0 }
  0x43   : > { %v1868_v0 = vpack.c.b16 %v663_v51, %v662_v48  ;;  %v667_v16 = vunpack.c.l.b16 %v634_v57  ;;  %v641_v7 = vsel %vm1805_vm7, %v639_v63, %v640_v5  ;;  %v668_v27 = vunpack.c.l.b16 %v638_v6  ;;  %1056 = vmatpush.bf16.msra.mxu2 %v1047_v20  ;;  %v1976_v57 = vld [vmem:[%s1617_s16 + $0x68] sm:$0x1]  ;;  %v1990_v5 = vld [vmem:[%s1617_s16 + $0x54] sm:$0xff] }
  0x44   : > { %v669_v10 = vunpack.c.l.b16 %v641_v7  ;;  %v1475_v22 = vrot.slane %v1711_v29, 9  ;;  %v646_v59 = vrot.slane %v644_v38, 4  ;;  %v647_v24 = vrot.slane %v1725_v49, 5  ;;  %v1509_v49 = vld [vmem:[%s2225_s1 + $0xa] sm:$0x3] }
  0x45   : > { %1428 = vmatmul.msk.bf16.gmra.mxu3 %vm395_vm3, %v1824_v13  ;;  %v1878_v61 = vpack.c.b16 %v667_v16, %v666_v14  ;;  %v1147_v29 = vsel %vm420_vm0, %v1531_v42, 0  ;;  %v969_v33 = vsel %vm420_vm0, %v1509_v49, 0  ;;  %v651_v37 = vrot.slane %v1775_v50, 5 }
  0x46   : > { %v1918_v18 = vpack.c.b16 %v669_v10, %v668_v27  ;;  %v648_v3 = vsel %vm1805_vm7, %v646_v59, %v647_v24  ;;  %1156 = vmatpush.bf16.msra.mxu3 %v1147_v29  ;;  %978 = vmatpush.bf16.msra.mxu1 %v969_v33  ;;  %v1476_v48 = vrot.slane %v1766_v43, 9  ;;  %v654_v46 = vrot.slane %v1779_v60, 5 }
  0x47   : > { %v653_v51 = vrot.slane %v651_v37, 4  ;;  %v872_v23 = vshll.u32 %v1976_v57, 16 }
  0x48   : > { %v652_v43 = vsel %vm1805_vm7, %v1476_v48, %v651_v37 }
  0x49   : > { %1500 = vmatmul.msk.bf16.vlgmr.msrb.gmra.mxu0 %vm395_vm3, %v1674_v55  ;;  %v627_v55 = vsel %vm1805_vm7, %v625_v34, %v626_v32  ;;  %v671_v32 = vunpack.c.l.b16 %v648_v3  ;;  %v1231_v34 = vsel %vm420_vm0, %v1541_v30, 0  ;;  %v655_v16 = vsel %vm1805_vm7, %v653_v51, %v654_v46 }
  0x4a   : > { %v665_v11 = vunpack.c.l.b16 %v627_v55  ;;  %1240 = vmatpush.bf16.msra.mxu0 %v1231_v34  ;;  %v1955_v55 = vld [vmem:[%s1617_s16 + $0x60] sm:$0xf]  ;;  %v672_v6 = vunpack.c.l.b16 %v652_v43  ;;  %v673_v7 = vunpack.c.l.b16 %v655_v16  ;;  %v874_v19 = vrot.slane %v872_v23, 5 }
  0x4b   : > { %v853_v9 = vshrl.u32 %v1955_v55, 16  ;;  %v856_v40 = vshll.u32 %v1955_v55, 16 }
  0x4c   : > { %v1853_v12 = vpack.c.b16 %v665_v11, %v664_v36  ;;  %v1958_v36 = vld [vmem:[%s1617_s16 + $0x64] sm:$0xf] }
  0x4d   : > { %1462 = vmatmul.msk.bf16.gmra.mxu1 %vm395_vm3, %v1553_v26  ;;  %v862_v58 = vshll.u32 %v1958_v36, 16  ;;  %v866_v41 = vshrl.u32 %v1958_v36, 16  ;;  %v855_v50 = vrot.slane %v853_v9, 4  ;;  %v858_v53 = vrot.slane %v856_v40, 5 }
  0x4f   : > { %v864_v54 = vrot.slane %v862_v58, 5  ;;  %v868_v56 = vrot.slane %v866_v41, 4  ;;  %v859_v60 = vor.u32 %v858_v53, %v855_v50  ;;  %v2025_v58 = vld [vmem:[%s1617_s16 + $0x60] sm:$0xff] }
  0x51   : > { %1479 = vmatmul.msk.bf16.gmra.mxu2 %vm395_vm3, %v1840_v4  ;;  %v869_v62 = vor.u32 %v868_v56, %v864_v54  ;;  %v860_v10 = vrot.slane %v859_v60, 4 }
  0x53   : > { %v865_v59 = vsel %vm1655_vm4, %v860_v10, %v864_v54 }
  0x55   : > { %1491 = vmatmul.msk.bf16.vlgmr.msrb.gmra.mxu3 %vm395_vm3, %v1553_v26  ;;  %v645_v26 = vsel %vm1805_vm7, %v1475_v22, %v644_v38  ;;  %v870_v38 = vrot.slane %v869_v62, 4  ;;  %v1998_v22 = vpack.c.b16 %v673_v7, %v672_v6 }
  0x56   : > { %v670_v31 = vunpack.c.l.b16 %v645_v26  ;;  %v878_v26 = vunpack.c.l.b16 %v865_v59 }
  0x57   : > { %v875_v24 = vsel %vm1655_vm4, %v870_v38, %v874_v19 }
  0x58   : > { %v1962_v11 = vpack.c.b16 %v671_v32, %v670_v31  ;;  %v879_v3 = vunpack.c.l.b16 %v875_v24 }
  0x59   : > { %1501 = vmatmul.msk.bf16.gmra.mxu0 %vm395_vm3, %v1749_v15 }
  0x5a   : > { %v2012_v30 = vpack.c.b16 %v879_v3, %v878_v26 }
  0x5d   : > { %1463 = vmatmul.msk.bf16.gmra.mxu1 %vm395_vm3, %v1861_v45 }
  0x61   : > { %1480 = vmatmul.msk.bf16.gmra.mxu2 %vm395_vm3, %v1868_v0 }
  0x65   : > { %1492 = vmatmul.msk.bf16.gmra.mxu3 %vm395_vm3, %v1861_v45 }
  0x69   : > { %1502 = vmatmul.msk.bf16.gmra.mxu0 %vm395_vm3, %v1700_v17 }
  0x6d   : > { %1464 = vmatmul.msk.bf16.gmra.mxu1 %vm395_vm3, %v1883_v1 }
  0x71   : > { %1481 = vmatmul.msk.bf16.gmra.mxu2 %vm395_vm3, %v1853_v12 }
  0x75   : > { %1493 = vmatmul.msk.bf16.gmra.mxu3 %vm395_vm3, %v1883_v1 }
  0x79   : > { %1503 = vmatmul.msk.bf16.gmra.mxu0 %vm395_vm3, %v1770_v44 }
  0x7d   : > { %1465 = vmatmul.msk.bf16.gmra.mxu1 %vm395_vm3, %v1894_v21 }
  0x81   : > { %1482 = vmatmul.msk.bf16.gmra.mxu2 %vm395_vm3, %v1878_v61 }
  0x85   : > { %1494 = vmatmul.msk.bf16.gmra.mxu3 %vm395_vm3, %v1894_v21 }
  0x89   : > { %1504 = vmatmul.msk.bf16.gmra.mxu0 %vm395_vm3, %v1717_v39 }
  0x8d   : > { %1466 = vmatmul.msk.bf16.gmra.mxu1 %vm395_vm3, %v1912_v8 }
  0x91   : > { %1483 = vmatmul.msk.bf16.gmra.mxu2 %vm395_vm3, %v1918_v18 }
  0x95   : > { %1495 = vmatmul.msk.bf16.gmra.mxu3 %vm395_vm3, %v1912_v8 }
  0x99   : > { %1505 = vmatmul.msk.bf16.gmra.mxu0 %vm395_vm3, %v1790_v25 }
  0x9a   : > { %v1952_v35 = vpop.f32.mrf.mxu1 }
  0x9d   : > { %1467 = vmatmul.msk.bf16.gmra.mxu1 %vm395_vm3, %v1946_v2 }
  0xa1   : > { %1484 = vmatmul.msk.bf16.gmra.mxu2 %vm395_vm3, %v1962_v11 }
  0xa2   : > { %v1973_v52 = vpop.f32.mrf.mxu1 }
  0xa4   : > { %v1978_v14 = vpop.f32.mrf.mxu2 }
  0xa5   : > { %1496 = vmatmul.msk.bf16.gmra.mxu3 %vm395_vm3, %v1946_v2 }
  0xa8   : > { %v1987_v63 = vpop.f32.mrf.mxu3 }
  0xa9   : > { %1506 = vmatmul.msk.bf16.gmra.mxu0 %vm395_vm3, %v1824_v13 }
  0xaa   : > { %v443_v27 = vpop.f32.mrf.mxu1 }
  0xac   : > { %v1994_v20 = vpop.f32.mrf.mxu2 }
  0xad   : > { %1468 = vmatmul.msk.bf16.gmra.mxu1 %vm395_vm3, %v1990_v5 }
  0xb0   : > { %v2004_v42 = vpop.f32.mrf.mxu3 }
  0xb1   : > { %1485 = vmatmul.msk.bf16.gmra.mxu2 %vm395_vm3, %v1998_v22 }
  0xb2   : > { %v445_v29 = vpop.f32.mrf.mxu1 }
  0xb4   : > { %v2008_v49 = vpop.f32.mrf.mxu2 }
  0xb5   : > { %1497 = vmatmul.msk.bf16.gmra.mxu3 %vm395_vm3, %v1990_v5 }
  0xb6   : > { %v433_v31 = vpop.f32.mrf.mxu0 }
  0xb8   : > { %v2014_v32 = vpop.f32.mrf.mxu3 }
  0xb9   : > { %1507 = vmatmul.msk.bf16.gmra.mxu0 %vm395_vm3, %v2012_v30 }
  0xba   : > { %v549_v33 = vpop.f32.mrf.mxu1 }
  0xbb   : > { %v550_v34 = vadd.f32 %v549_v33, %v433_v31 }
  0xbc   : > { %v2018_v37 = vpop.f32.mrf.mxu2 }
  0xbd   : > { %1510 = vmatmul.msk.bf16.vlgmr.msra.gmra.mxu1 %vm395_vm3, %v1840_v4 }
  0xbe   : > { %v435_v9 = vpop.f32.mrf.mxu0 }
  0xc0   : > { %v2022_v40 = vpop.f32.mrf.mxu3 }
  0xc1   : > { %1523 = vmatmul.msk.bf16.vlgmr.msra.gmra.mxu2 %vm395_vm3, %v1861_v45 }
  0xc2   : > { %v551_v41 = vpop.f32.mrf.mxu1 }
  0xc3   : > { %v552_v48 = vadd.f32 %v551_v41, %v435_v9 }
  0xc4   : > { %v718_v51 = vpop.f32.mrf.mxu2 }
  0xc5   : > { %1498 = vmatmul.msk.bf16.gmra.mxu3 %vm395_vm3, %v2025_v58  ;;  %v758_v46 = vadd.f32 %v718_v51, %v550_v34 }
  0xc6   : > { %v896_v50 = vpop.f32.mrf.mxu0 }
  0xc8   : > { %v2031_v53 = vpop.f32.mrf.mxu3 }
  0xc9   : > { %1542 = vmatmul.msk.bf16.vlgmr.msra.gmra.mxu0 %vm395_vm3, %v1868_v0 }
  0xca   : > { %v554_v4 = vpop.f32.mrf.mxu1 }
  0xcb   : > { %v555_v54 = vadd.f32 %v554_v4, %v1952_v35 }
  0xcc   : > { %v720_v56 = vpop.f32.mrf.mxu2 }
  0xcd   : > { %v759_v43 = vadd.f32 %v720_v56, %v552_v48  ;;  %1511 = vmatmul.msk.bf16.gmra.mxu1 %vm395_vm3, %v1868_v0 }
  0xce   : > { %v898_v45 = vpop.f32.mrf.mxu0 }
  0xd0   : > { %v2038_v16 = vpop.f32.mrf.mxu3 }
  0xd1   : > { %1524 = vmatmul.msk.bf16.gmra.mxu2 %vm395_vm3, %v1883_v1 }
  0xd2   : > { %v556_v60 = vpop.f32.mrf.mxu1 }
  0xd3   : > { %v557_v62 = vadd.f32 %v556_v60, %v1973_v52 }
  0xd4   : > { %v723_v23 = vpop.f32.mrf.mxu2 }
  0xd5   : > { %1532 = vmatmul.msk.bf16.vlgmr.msra.gmra.mxu3 %vm395_vm3, %v1749_v15  ;;  %v760_v6 = vadd.f32 %v723_v23, %v555_v54 }
  0xd6   : > { %v901_v35 = vpop.f32.mrf.mxu0 }
  0xd8   : > { %v796_v7 = vpop.f32.mrf.mxu3 }
  0xd9   : > { %v836_v10 = vadd.f32 %v796_v7, %v758_v46  ;;  %1543 = vmatmul.msk.bf16.gmra.mxu0 %vm395_vm3, %v1853_v12 }
  0xda   : > { %v559_v0 = vpop.f32.mrf.mxu1 }
  0xdb   : > { %v560_v38 = vadd.f32 %v559_v0, %v443_v27  ;;  %v2047_v19 = vadd.f32 %v896_v50, %v836_v10 }
  0xdc   : > { %v725_v59 = vpop.f32.mrf.mxu2 }
  0xdd   : > { %v761_v1 = vadd.f32 %v725_v59, %v557_v62  ;;  %1512 = vmatmul.msk.bf16.gmra.mxu1 %vm395_vm3, %v1853_v12 }
  0xde   : > { %v903_v52 = vpop.f32.mrf.mxu0 }
  0xe0   : > { %v798_v24 = vpop.f32.mrf.mxu3 }
  0xe1   : > { %v837_v26 = vadd.f32 %v798_v24, %v759_v43  ;;  %1525 = vmatmul.msk.bf16.gmra.mxu2 %vm395_vm3, %v1894_v21 }
  0xe2   : > { %v561_v15 = vpop.f32.mrf.mxu1 }
  0xe3   : > { %v562_v3 = vadd.f32 %v561_v15, %v445_v29  ;;  %v2053_v31 = vadd.f32 %v898_v45, %v837_v26 }
  0xe4   : > { %v728_v33 = vpop.f32.mrf.mxu2 }
  0xe5   : > { %1533 = vmatmul.msk.bf16.gmra.mxu3 %vm395_vm3, %v1700_v17  ;;  %v762_v27 = vadd.f32 %v728_v33, %v560_v38 }
  0xe6   : > { %v906_v34 = vpop.f32.mrf.mxu0 }
  0xe8   : > { %v801_v9 = vpop.f32.mrf.mxu3 }
  0xe9   : > { %v838_v41 = vadd.f32 %v801_v9, %v760_v6  ;;  %1544 = vmatmul.msk.bf16.gmra.mxu0 %vm395_vm3, %v1878_v61 }
  0xea   : > { %v564_v12 = vpop.f32.mrf.mxu1 }
  0xeb   : > { %v565_v48 = vadd.f32 %v564_v12, %v1978_v14  ;;  %v2060_v51 = vadd.f32 %v901_v35, %v838_v41 }
  0xec   : > { %v730_v21 = vpop.f32.mrf.mxu2 }
  0xed   : > { %v763_v29 = vadd.f32 %v730_v21, %v562_v3  ;;  %1513 = vmatmul.msk.bf16.gmra.mxu1 %vm395_vm3, %v1878_v61 }
  0xee   : > { %v908_v46 = vpop.f32.mrf.mxu0 }
  0xf0   : > { %v803_v50 = vpop.f32.mrf.mxu3 }
  0xf1   : > { %v839_v17 = vadd.f32 %v803_v50, %v761_v1  ;;  %1526 = vmatmul.msk.bf16.gmra.mxu2 %vm395_vm3, %v1912_v8 }
  0xf2   : > { %v566_v4 = vpop.f32.mrf.mxu1 }
  0xf3   : > { %v567_v54 = vadd.f32 %v566_v4, %v1994_v20  ;;  %v2067_v56 = vadd.f32 %v903_v52, %v839_v17 }
  0xf4   : > { %v733_v43 = vpop.f32.mrf.mxu2 }
  0xf5   : > { %1534 = vmatmul.msk.bf16.gmra.mxu3 %vm395_vm3, %v1770_v44  ;;  %v764_v14 = vadd.f32 %v733_v43, %v565_v48 }
  0xf6   : > { %v911_v45 = vpop.f32.mrf.mxu0 }
  0xf8   : > { %v806_v60 = vpop.f32.mrf.mxu3 }
  0xf9   : > { %v840_v62 = vadd.f32 %v806_v60, %v762_v27  ;;  %1545 = vmatmul.msk.bf16.gmra.mxu0 %vm395_vm3, %v1918_v18 }
  0xfa   : > { %v569_v61 = vpop.f32.mrf.mxu1 }
  0xfb   : > { %v2073_v23 = vadd.f32 %v906_v34, %v840_v62  ;;  %v570_v9 = vadd.f32 %v569_v61, %v2008_v49 }
  0xfc   : > { %v735_v8 = vpop.f32.mrf.mxu2 }
  0xfd   : > { %v765_v6 = vadd.f32 %v735_v8, %v567_v54  ;;  %1514 = vmatmul.msk.bf16.gmra.mxu1 %vm395_vm3, %v1918_v18 }
  0xfe   : > { %v913_v20 = vpop.f32.mrf.mxu0 }
 0x100   : > { %v808_v35 = vpop.f32.mrf.mxu3 }
 0x101   : > { %v841_v7 = vadd.f32 %v808_v35, %v763_v29  ;;  %1527 = vmatmul.msk.bf16.gmra.mxu2 %vm395_vm3, %v1946_v2  ;;  %v170_v35 = vld [vmem:[%s1617_s16 + $0x6c] sm:$0xf] }
 0x102   : > { %v571_v44 = vpop.f32.mrf.mxu1 }
 0x103   : > { %v572_v10 = vadd.f32 %v571_v44, %v2018_v37  ;;  %v2080_v0 = vadd.f32 %v908_v46, %v841_v7  ;;  %v1508_v46 = vrot.slane %v1955_v55, 9 }
 0x104   : > { %v738_v38 = vpop.f32.mrf.mxu2 }
 0x105   : > { %1535 = vmatmul.msk.bf16.gmra.mxu3 %vm395_vm3, %v1717_v39  ;;  %v766_v48 = vadd.f32 %v738_v38, %v570_v9  ;;  %v1115_v38 = vshrl.u32 %v170_v35, 16 }
 0x106   : > { %v916_v59 = vpop.f32.mrf.mxu0 }
 0x108   : > { %v811_v1 = vpop.f32.mrf.mxu3 }
 0x109   : > { %v842_v52 = vadd.f32 %v811_v1, %v764_v14  ;;  %1546 = vmatmul.msk.bf16.gmra.mxu0 %vm395_vm3, %v1962_v11 }
 0x10a   : > { %v574_v18 = vpop.f32.mrf.mxu1 }
 0x10b   : > { %v2086_v24 = vadd.f32 %v911_v45, %v842_v52  ;;  %v575_v33 = vadd.f32 %v574_v18, %v1987_v63  ;;  %v958_v63 = vrot.slane %v1976_v57, 5  ;;  %v1540_v18 = vrot.slane %v170_v35, 9 }
 0x10c   : > { %v740_v26 = vpop.f32.mrf.mxu2 }
 0x10d   : > { %v767_v2 = vadd.f32 %v740_v26, %v572_v10  ;;  %1515 = vmatmul.msk.bf16.gmra.mxu1 %vm395_vm3, %v1962_v11  ;;  %v955_v11 = vrot.slane %v1958_v36, 5  ;;  %v172_v10 = vld [vmem:[%s1617_s16 + $0x74] sm:$0x1] }
 0x10e   : > { %v918_v37 = vpop.f32.mrf.mxu0 }
 0x10f   : > { %v957_v50 = vrot.slane %v955_v11, 4  ;;  %v956_v54 = vsel %vm1805_vm7, %v1508_v46, %v955_v11 }
 0x110   : > { %v813_v15 = vpop.f32.mrf.mxu3 }
 0x111   : > { %v843_v3 = vadd.f32 %v813_v15, %v765_v6  ;;  %1528 = vmatmul.msk.bf16.gmra.mxu2 %vm395_vm3, %v1990_v5  ;;  %v959_v57 = vsel %vm1805_vm7, %v957_v50, %v958_v63  ;;  %v171_v6 = vld [vmem:[%s1617_s16 + $0x70] sm:$0xf] }
 0x112   : > { %v576_v39 = vpop.f32.mrf.mxu1  ;;  %v963_v14 = vunpack.c.l.b16 %v959_v57  ;;  %v1217_v7 = vrot.slane %v171_v6, 5  ;;  %v1128_v52 = vshrl.u32 %v171_v6, 16 }
 0x113   : > { %v2093_v27 = vadd.f32 %v913_v20, %v843_v3  ;;  %v577_v49 = vadd.f32 %v576_v39, %v2004_v42  ;;  %v962_v42 = vunpack.c.l.b16 %v956_v54  ;;  %v1561_v39 = vld [vmem:[%s1617_s16 + $0x6c] sm:$0xff] }
 0x114   : > { %v743_v34 = vpop.f32.mrf.mxu2  ;;  %v1219_v26 = vrot.slane %v1217_v7, 4  ;;  %v1130_v11 = vrot.slane %v1128_v52, 4 }
 0x115   : > { %1536 = vmatmul.msk.bf16.gmra.mxu3 %vm395_vm3, %v1790_v25  ;;  %v768_v41 = vadd.f32 %v743_v34, %v575_v33  ;;  %v964_v8 = vpack.c.b16 %v963_v14, %v962_v42  ;;  %v1117_v33 = vrot.slane %v1115_v38, 4 }
 0x116   : > { %v921_v12 = vpop.f32.mrf.mxu0 }
 0x118   : > { %v816_v21 = vpop.f32.mrf.mxu3 }
 0x119   : > { %v844_v29 = vadd.f32 %v816_v21, %v766_v48  ;;  %1547 = vmatmul.msk.bf16.gmra.mxu0 %vm395_vm3, %v1998_v22  ;;  %v1218_v48 = vsel %vm1805_vm7, %v1540_v18, %v1217_v7 }
 0x11a   : > { %v579_v5 = vpop.f32.mrf.mxu1 }
 0x11b   : > { %v2104_v17 = vadd.f32 %v916_v59, %v844_v29  ;;  %v1124_v59 = vshll.u32 %v171_v6, 16 }
 0x11c   : > { %v745_v25 = vpop.f32.mrf.mxu2 }
 0x11d   : > { %v769_v4 = vadd.f32 %v745_v25, %v577_v49  ;;  %1516 = vmatmul.msk.bf16.gmra.mxu1 %vm395_vm3, %v1998_v22  ;;  %v580_v22 = vadd.f32 %v579_v5, %v2014_v32  ;;  %v1118_v32 = vshll.u32 %v170_v35, 16  ;;  %v1134_v49 = vshll.u32 %v172_v10, 16 }
 0x11e   : > { %v923_v36 = vpop.f32.mrf.mxu0 }
 0x11f   : > { %v1120_v34 = vrot.slane %v1118_v32, 5  ;;  %v1136_v14 = vrot.slane %v1134_v49, 5 }
 0x120   : > { %v818_v55 = vpop.f32.mrf.mxu3 }
 0x121   : > { %v845_v43 = vadd.f32 %v818_v55, %v767_v2  ;;  %1529 = vmatmul.msk.bf16.gmra.mxu2 %vm395_vm3, %v2025_v58  ;;  %v1121_v46 = vor.u32 %v1120_v34, %v1117_v33 }
 0x122   : > { %v581_v45 = vpop.f32.mrf.mxu1 }
 0x123   : > { %v2115_v60 = vadd.f32 %v918_v37, %v845_v43  ;;  %v582_v2 = vadd.f32 %v581_v45, %v2022_v40 }
 0x124   : > { %v748_v62 = vpop.f32.mrf.mxu2 }
 0x125   : > { %1537 = vmatmul.msk.bf16.gmra.mxu3 %vm395_vm3, %v1824_v13  ;;  %v770_v61 = vadd.f32 %v748_v62, %v580_v22  ;;  %v1220_v13 = vrot.slane %v172_v10, 5 }
 0x126   : > { %v926_v20 = vpop.f32.mrf.mxu0 }
 0x127   : > { %v1221_v21 = vsel %vm1805_vm7, %v1219_v26, %v1220_v13 }
 0x128   : > { %v821_v44 = vpop.f32.mrf.mxu3  ;;  %v1225_v63 = vunpack.c.l.b16 %v1221_v21 }
 0x129   : > { %v846_v58 = vadd.f32 %v821_v44, %v768_v41  ;;  %1548 = vmatmul.msk.bf16.gmra.mxu0 %vm395_vm3, %v964_v8  ;;  %v1126_v41 = vrot.slane %v1124_v59, 5 }
 0x12a   : > { %v584_v1 = vpop.f32.mrf.mxu1 }
 0x12b   : > { %v2124_v37 = vadd.f32 %v921_v12, %v846_v58  ;;  %v1224_v12 = vunpack.c.l.b16 %v1218_v48  ;;  %v1131_v50 = vor.u32 %v1130_v11, %v1126_v41  ;;  %v585_v25 = vadd.f32 %v584_v1, %v2031_v53 }
 0x12c   : > { %v750_v15 = vpop.f32.mrf.mxu2 }
 0x12d   : > { %v771_v3 = vadd.f32 %v750_v15, %v582_v2  ;;  %1517 = vmatmul.msk.bf16.gmra.mxu1 %vm395_vm3, %v964_v8  ;;  %v1226_v55 = vpack.c.b16 %v1225_v63, %v1224_v12  ;;  %v1132_v42 = vrot.slane %v1131_v50, 4 }
 0x12e   : > { %v928_v9 = vpop.f32.mrf.mxu0 }
 0x130   : > { %v823_v29 = vpop.f32.mrf.mxu3 }
 0x131   : > { %v847_v40 = vadd.f32 %v823_v29, %v769_v4  ;;  %1530 = vmatmul.msk.bf16.gmra.mxu2 %vm395_vm3, %v1561_v39  ;;  %v1122_v4 = vrot.slane %v1121_v46, 4 }
 0x132   : > { %v586_v5 = vpop.f32.mrf.mxu1 }
 0x133   : > { %v2134_v54 = vadd.f32 %v923_v36, %v847_v40  ;;  %v1127_v53 = vsel %vm1655_vm4, %v1122_v4, %v1126_v41  ;;  %v1137_v36 = vsel %vm1655_vm4, %v1132_v42, %v1136_v14  ;;  %v587_v8 = vadd.f32 %v586_v5, %v2038_v16 }
 0x134   : > { %v753_v57 = vpop.f32.mrf.mxu2  ;;  %v1140_v44 = vunpack.c.l.b16 %v1127_v53  ;;  %v1141_v58 = vunpack.c.l.b16 %v1137_v36 }
 0x135   : > { %1538 = vmatmul.msk.bf16.gmra.mxu3 %vm395_vm3, %v2012_v30  ;;  %v772_v47 = vadd.f32 %v753_v57, %v585_v25 }
 0x136   : > { %v931_v43 = vpop.f32.mrf.mxu0  ;;  %v1142_v32 = vpack.c.b16 %v1141_v58, %v1140_v44 }
 0x138   : > { %v826_v45 = vpop.f32.mrf.mxu3 }
 0x139   : > { %v848_v22 = vadd.f32 %v826_v45, %v770_v61  ;;  %1549 = vmatmul.msk.bf16.gmra.mxu0 %vm395_vm3, %v1226_v55 }
 0x13a   : > { %v980_v62 = vpop.f32.mrf.mxu1 }
 0x13b   : > { %v1020_v30 = vadd.f32 %v980_v62, %v2047_v19  ;;  %v2145_v6 = vadd.f32 %v926_v20, %v848_v22 }
 0x13c   : > { %v755_v35 = vpop.f32.mrf.mxu2 }
 0x13d   : > { %v773_v7 = vadd.f32 %v755_v35, %v587_v8 }
 0x13e   : > { %v933_v61 = vpop.f32.mrf.mxu0 }
 0x140   : > { %v828_v10 = vpop.f32.mrf.mxu3 }
 0x141   : > { %v849_v38 = vadd.f32 %v828_v10, %v771_v3 }
 0x142   : > { %v982_v59 = vpop.f32.mrf.mxu1 }
 0x143   : > { %v1021_v1 = vadd.f32 %v982_v59, %v2053_v31  ;;  %v2148_v52 = vadd.f32 %v928_v9, %v849_v38 }
 0x144   : > { %v1058_v28 = vpop.f32.mrf.mxu2 }
 0x145   : > { %1539 = vmatmul.msk.bf16.gmra.mxu3 %vm395_vm3, %v1142_v32  ;;  %v1098_v16 = vadd.f32 %v1058_v28, %v1020_v30 }
 0x146   : > { %v1242_v19 = vpop.f32.mrf.mxu0 }
 0x148   : > { %v831_v20 = vpop.f32.mrf.mxu3 }
 0x149   : > { %v850_v18 = vadd.f32 %v831_v20, %v772_v47 }
 0x14a   : > { %v985_v26 = vpop.f32.mrf.mxu1 }
 0x14b   : > { %v1022_v13 = vadd.f32 %v985_v26, %v2060_v51  ;;  %v2152_v2 = vadd.f32 %v931_v43, %v850_v18 }
 0x14c   : > { %v1060_v15 = vpop.f32.mrf.mxu2 }
 0x14d   : > { %v1099_v3 = vadd.f32 %v1060_v15, %v1021_v1 }
 0x14e   : > { %v1244_v39 = vpop.f32.mrf.mxu0 }
 0x150   : > { %v833_v33 = vpop.f32.mrf.mxu3 }
 0x151   : > { %v851_v34 = vadd.f32 %v833_v33, %v773_v7 }
 0x152   : > { %v987_v31 = vpop.f32.mrf.mxu1 }
 0x153   : > { %v1023_v9 = vadd.f32 %v987_v31, %v2067_v56  ;;  %v2155_v41 = vadd.f32 %v933_v61, %v851_v34 }
 0x154   : > { %v1063_v11 = vpop.f32.mrf.mxu2 }
 0x155   : > { %v1100_v48 = vadd.f32 %v1063_v11, %v1022_v13 }
 0x156   : > { %v1247_v21 = vpop.f32.mrf.mxu0 }
 0x158   : > { %v1158_v29 = vpop.f32.mrf.mxu3 }
 0x159   : > { %v1198_v40 = vadd.f32 %v1158_v29, %v1098_v16 }
 0x15a   : > { %v990_v12 = vpop.f32.mrf.mxu1 }
 0x15b   : > { %v2157_v63 = vadd.f32 %v1242_v19, %v1198_v40  ;;  %v1024_v51 = vadd.f32 %v990_v12, %v2073_v23 }
 0x15c   : > { %v1065_v5 = vpop.f32.mrf.mxu2 }
 0x15d   : > { %v1101_v46 = vadd.f32 %v1065_v5, %v1023_v9 }
 0x15e   : > { %v1249_v50 = vpop.f32.mrf.mxu0 }
 0x160   : > { %v1160_v49 = vpop.f32.mrf.mxu3 }
 0x161   : > { %v1199_v25 = vadd.f32 %v1160_v49, %v1099_v3 }
 0x162   : > { %v992_v57 = vpop.f32.mrf.mxu1 }
 0x163   : > { %v2160_v47 = vadd.f32 %v1244_v39, %v1199_v25  ;;  %v1025_v56 = vadd.f32 %v992_v57, %v2080_v0 }
 0x164   : > { %v1068_v55 = vpop.f32.mrf.mxu2 }
 0x165   : > { %v1102_v43 = vadd.f32 %v1068_v55, %v1024_v51 }
 0x166   : > { %v1252_v4 = vpop.f32.mrf.mxu0 }
 0x168   : > { %v1163_v42 = vpop.f32.mrf.mxu3 }
 0x169   : > { %v1200_v14 = vadd.f32 %v1163_v42, %v1100_v48 }
 0x16a   : > { %v995_v45 = vpop.f32.mrf.mxu1 }
 0x16b   : > { %v2163_v22 = vadd.f32 %v1247_v21, %v1200_v14  ;;  %v1026_v23 = vadd.f32 %v995_v45, %v2086_v24 }
 0x16c   : > { %v1070_v62 = vpop.f32.mrf.mxu2 }
 0x16d   : > { %v1103_v53 = vadd.f32 %v1070_v62, %v1025_v56 }
 0x16e   : > { %v1254_v36 = vpop.f32.mrf.mxu0 }
 0x170   : > { %v1165_v8 = vpop.f32.mrf.mxu3 }
 0x171   : > { %v1201_v30 = vadd.f32 %v1165_v8, %v1101_v46 }
 0x172   : > { %v997_v35 = vpop.f32.mrf.mxu1 }
 0x173   : > { %v2166_v7 = vadd.f32 %v1249_v50, %v1201_v30  ;;  %v1027_v0 = vadd.f32 %v997_v35, %v2093_v27 }
 0x174   : > { %v1073_v44 = vpop.f32.mrf.mxu2 }
 0x175   : > { %v1104_v58 = vadd.f32 %v1073_v44, %v1026_v23 }
 0x176   : > { %v1257_v10 = vpop.f32.mrf.mxu0 }
 0x178   : > { %v1168_v61 = vpop.f32.mrf.mxu3 }
 0x179   : > { %v1202_v38 = vadd.f32 %v1168_v61, %v1102_v43 }
 0x17a   : > { %v1000_v32 = vpop.f32.mrf.mxu1 }
 0x17b   : > { %v2169_v59 = vadd.f32 %v1252_v4, %v1202_v38  ;;  %v1028_v24 = vadd.f32 %v1000_v32, %v2104_v17 }
 0x17c   : > { %v1075_v1 = vpop.f32.mrf.mxu2 }
 0x17d   : > { %v1105_v28 = vadd.f32 %v1075_v1, %v1027_v0 }
 0x17e   : > { %v1259_v20 = vpop.f32.mrf.mxu0 }
 0x180   : > { %v1170_v16 = vpop.f32.mrf.mxu3 }
 0x181   : > { %v1203_v19 = vadd.f32 %v1170_v16, %v1103_v53 }
 0x182   : > { %v1002_v33 = vpop.f32.mrf.mxu1 }
 0x183   : > { %v2172_v18 = vadd.f32 %v1254_v36, %v1203_v19 }
 0x184   : > { %v1078_v26 = vpop.f32.mrf.mxu2 }
 0x185   : > { %v1106_v13 = vadd.f32 %v1078_v26, %v1028_v24 }
 0x186   : > { %v1262_v39 = vpop.f32.mrf.mxu0 }
 0x188   : > { %v1173_v27 = vpop.f32.mrf.mxu3 }
 0x189   : > { %v1204_v15 = vadd.f32 %v1173_v27, %v1104_v58 }
 0x18a   : > { %v1005_v48 = vpop.f32.mrf.mxu1 }
 0x18b   : > { %v2174_v3 = vadd.f32 %v1257_v10, %v1204_v15  ;;  %v1030_v26 = vadd.f32 %v1005_v48, %v2124_v37 }
 0x18c   : > { %v1080_v34 = vpop.f32.mrf.mxu2 }
 0x18e   : > { %v2178_v17 = vpop.f32.mrf.mxu0 }
 0x190   : > { %v1175_v31 = vpop.f32.mrf.mxu3 }
 0x191   : > { %v1205_v9 = vadd.f32 %v1175_v31, %v1105_v28 }
 0x192   : > { %v1007_v46 = vpop.f32.mrf.mxu1 }
 0x193   : > { %v2176_v11 = vadd.f32 %v1259_v20, %v1205_v9  ;;  %v1031_v28 = vadd.f32 %v1007_v46, %v2134_v54 }
 0x194   : > { %v1083_v40 = vpop.f32.mrf.mxu2 }
 0x196   : > { %v1267_v5 = vpop.f32.mrf.mxu0 }
 0x198   : > { %v1178_v21 = vpop.f32.mrf.mxu3 }
 0x199   : > { %v1206_v29 = vadd.f32 %v1178_v21, %v1106_v13 }
 0x19a   : > { %v1010_v57 = vpop.f32.mrf.mxu1 }
 0x19b   : > { %v2180_v12 = vadd.f32 %v1262_v39, %v1206_v29  ;;  %v1032_v10 = vadd.f32 %v1010_v57, %v2145_v6  ;;  %v1108_v39 = vadd.f32 %v1083_v40, %v1030_v26 }
 0x19c   : > { %v1085_v50 = vpop.f32.mrf.mxu2 }
 0x19d   : > { %v1109_v13 = vadd.f32 %v1085_v50, %v1031_v28 }
 0x19e   : > { %v1269_v25 = vpop.f32.mrf.mxu0 }
 0x1a0   : > { %v1180_v51 = vpop.f32.mrf.mxu3 }
 0x1a2   : > { %v1012_v4 = vpop.f32.mrf.mxu1 }
 0x1a3   : > { %v1033_v44 = vadd.f32 %v1012_v4, %v2148_v52 }
 0x1a4   : > { %v1088_v56 = vpop.f32.mrf.mxu2 }
 0x1a5   : > { %v1110_v16 = vadd.f32 %v1088_v56, %v1032_v10  ;;  %v1583_v56 = vmov 1.0  }
 0x1a6   : > { %v1272_v43 = vpop.f32.mrf.mxu0 }
 0x1a8   : > { %v1183_v49 = vpop.f32.mrf.mxu3 }
 0x1a9   : > { %v1208_v29 = vadd.f32 %v1183_v49, %v1108_v39 }
 0x1aa   : > { %v1015_v23 = vpop.f32.mrf.mxu1 }
 0x1ab   : > { %v1034_v35 = vadd.f32 %v1015_v23, %v2152_v2  ;;  %v1292_v50 = vadd.f32 %v1267_v5, %v1208_v29  ;;  %v1324_v5 = vmul.f32 %v2174_v3, %v2174_v3 }
 0x1ac   : > { %v1090_v42 = vpop.f32.mrf.mxu2 }
 0x1ad   : > { %v1111_v38 = vadd.f32 %v1090_v42, %v1033_v44 }
 0x1ae   : > { %v1274_v45 = vpop.f32.mrf.mxu0 }
 0x1b0   : > { %v1185_v55 = vpop.f32.mrf.mxu3 }
 0x1b1   : > { %v1209_v6 = vadd.f32 %v1185_v55, %v1109_v13 }
 0x1b2   : > { %v1017_v30 = vpop.f32.mrf.mxu1 }
 0x1b3   : > { %v1035_v61 = vadd.f32 %v1017_v30, %v2155_v41  ;;  %v1029_v41 = vadd.f32 %v1002_v33, %v2115_v60  ;;  %v1293_v37 = vadd.f32 %v1269_v25, %v1209_v6  ;;  %v1323_v25 = vmul.f32 %v2172_v18, %v2172_v18 }
 0x1b4   : > { %v1093_v53 = vpop.f32.mrf.mxu2 }
 0x1b5   : > { %v1112_v58 = vadd.f32 %v1093_v53, %v1034_v35  ;;  %v1107_v21 = vadd.f32 %v1080_v34, %v1029_v41  ;;  %v1329_v40 = vmul.f32 %v1293_v37, %v1293_v37  ;;  %v1328_v34 = vmul.f32 %v1292_v50, %v1292_v50 }
 0x1b6   : > { %v1277_v36 = vpop.f32.mrf.mxu0 }
 0x1b7   : > { %v1207_v57 = vadd.f32 %v1180_v51, %v1107_v21  ;;  %v1326_v51 = vmul.f32 %v2180_v12, %v2180_v12 }
 0x1b8   : > { %v1188_v14 = vpop.f32.mrf.mxu3 }
 0x1b9   : > { %v1210_v27 = vadd.f32 %v1188_v14, %v1110_v16  ;;  %v1291_v33 = vadd.f32 %v2178_v17, %v1207_v57  ;;  %v1325_v17 = vmul.f32 %v2176_v11, %v2176_v11 }
 0x1bb   : > { %v1294_v54 = vadd.f32 %v1272_v43, %v1210_v27  ;;  %v1327_v49 = vmul.f32 %v1291_v33, %v1291_v33 }
 0x1bc   : > { %v1095_v0 = vpop.f32.mrf.mxu2 }
 0x1bd   : > { %v1113_v32 = vadd.f32 %v1095_v0, %v1035_v61  ;;  %v1330_v60 = vmul.f32 %v1294_v54, %v1294_v54 }
 0x1be   : > { %v1279_v2 = vpop.f32.mrf.mxu0 }
 0x1c0   : > { %v1190_v62 = vpop.f32.mrf.mxu3 }
 0x1c1   : > { %v1211_v19 = vadd.f32 %v1190_v62, %v1111_v38 }
 0x1c3   : > { %v1295_v31 = vadd.f32 %v1274_v45, %v1211_v19 }
 0x1c5   : > { %v1331_v48 = vmul.f32 %v1295_v31, %v1295_v31 }
 0x1c8   : > { %v1193_v8 = vpop.f32.mrf.mxu3 }
 0x1c9   : > { %v1212_v24 = vadd.f32 %v1193_v8, %v1112_v58 }
 0x1cb   : > { %v1296_v52 = vadd.f32 %v1277_v36, %v1212_v24 }
 0x1cd   : > { %v1332_v46 = vmul.f32 %v1296_v52, %v1296_v52 }
 0x1d0   : > { %v1195_v1 = vpop.f32.mrf.mxu3 }
 0x1d1   : > { %v1213_v20 = vadd.f32 %v1195_v1, %v1113_v32 }
 0x1d3   : > { %v1297_v15 = vadd.f32 %v1279_v2, %v1213_v20 }
 0x1d5   : > { %v1333_v9 = vmul.f32 %v1297_v15, %v1297_v15  ;;  %1298 = vmatpush.msrb.mxu1 %v1297_v15 }
 0x1d7   : > { %1299 = vmatpush.msrb.mxu1 %v1296_v52  ;;  %1334 = vmatpush.msrb.mxu2 %v1333_v9 }
 0x1d9   : > { %1300 = vmatpush.msrb.mxu1 %v1295_v31  ;;  %1335 = vmatpush.msrb.mxu2 %v1332_v46 }
 0x1db   : > { %1301 = vmatpush.msrb.mxu1 %v1294_v54  ;;  %1336 = vmatpush.msrb.mxu2 %v1331_v48 }
 0x1dd   : > { %1302 = vmatpush.msrb.mxu1 %v1293_v37  ;;  %1337 = vmatpush.msrb.mxu2 %v1330_v60 }
 0x1df   : > { %1303 = vmatpush.msrb.mxu1 %v1292_v50  ;;  %1338 = vmatpush.msrb.mxu2 %v1329_v40 }
 0x1e1   : > { %1304 = vmatpush.msrb.mxu1 %v1291_v33  ;;  %1339 = vmatpush.msrb.mxu2 %v1328_v34 }
 0x1e3   : > { %1305 = vmatpush.msrb.mxu1 %v2180_v12  ;;  %1340 = vmatpush.msrb.mxu2 %v1327_v49  ;;  %v1322_v12 = vmul.f32 %v2169_v59, %v2169_v59 }
 0x1e5   : > { %1306 = vmatpush.msrb.mxu1 %v2176_v11  ;;  %1341 = vmatpush.msrb.mxu2 %v1326_v51  ;;  %v1321_v11 = vmul.f32 %v2166_v7, %v2166_v7 }
 0x1e7   : > { %1307 = vmatpush.msrb.mxu1 %v2174_v3  ;;  %1342 = vmatpush.msrb.mxu2 %v1325_v17  ;;  %v1320_v3 = vmul.f32 %v2163_v22, %v2163_v22 }
 0x1e9   : > { %1308 = vmatpush.msrb.mxu1 %v2172_v18  ;;  %1343 = vmatpush.msrb.mxu2 %v1324_v5  ;;  %v1319_v18 = vmul.f32 %v2160_v47, %v2160_v47 }
 0x1eb   : > { %1309 = vmatpush.msrb.mxu1 %v2169_v59  ;;  %1344 = vmatpush.msrb.mxu2 %v1323_v25  ;;  %v1318_v59 = vmul.f32 %v2157_v63, %v2157_v63 }
 0x1ed   : > { %1310 = vmatpush.msrb.mxu1 %v2166_v7  ;;  %1345 = vmatpush.msrb.mxu2 %v1322_v12 }
 0x1ef   : > { %1311 = vmatpush.msrb.mxu1 %v2163_v22  ;;  %1346 = vmatpush.msrb.mxu2 %v1321_v11 }
 0x1f1   : > { %1312 = vmatpush.msrb.mxu1 %v2160_v47  ;;  %1347 = vmatpush.msrb.mxu2 %v1320_v3 }
 0x1f3   : > { %1313 = vmatpush.msrb.mxu1 %v2157_v63  ;;  %1348 = vmatpush.msrb.mxu2 %v1319_v18 }
 0x1f4   : > { %1314 = vmatmul.f32.vlgmr.msrb.gmra.mxu1 %v1583_v56 }
 0x1f5   : > { %1349 = vmatpush.msrb.mxu2 %v1318_v59 }
 0x1f6   : > { %1350 = vmatmul.f32.vlgmr.msrb.gmra.mxu2 %v1583_v56 }
 0x271   : > { %v1315_v55 = vpop.f32.mrf.mxu1 }
 0x279   : > { %v1351_v7 = vpop.f32.mrf.mxu2 }
 0x27a   : > { %v1355_v22 = vrot.slane %v1351_v7, 7 }
 0x27c   : > { %v1358_v47 = vsel %vm1357_vm8, %v1315_v55, %v1355_v22 }
 0x27d   : > { %1359 = vst [vmem:[%s141_s8] sm:$0x3] %v1358_v47 }
 0x27e PF: > { %s12_s9 = sadd.s32 1, %s1581_s9  }
 0x27f   : > { %p9_p4 = scmp.ge.s32.totalorder %s12_s9, 6  }
 0x281   :  { %11 = sbr.rel (!%p9_p4) target bundleno = 1 (0x1), region = 66 }

// kernel: unet_block_forward.5
= control target key start
LH: loop header
LB: loop body
LE: loop exit
PB: predicated region body
PF: predicated region fallthrough
CT: control target
= control target key end

     0   :  { %s1742_s15 = smov 0   ;;  %s2380_s0 = inlined_call_operand.vmem [shape: bf16[4,10,18,4], index: 0, kind: input, shape index: {}]   ;;  %s2381_s1 = inlined_call_operand.vmem [shape: bf16[9,4,128], index: 1, kind: input, shape index: {}]   ;;  %s2382_s2 = inlined_call_operand.vmem [shape: f32[1,128], index: 2, kind: input, shape index: {}]   ;;  %s2383_s3 = inlined_call_operand.vmem [shape: f32[1,128], index: 3, kind: input, shape index: {}]   ;;  %s2384_s4 = inlined_call_operand.vmem [shape: bf16[4,128,128], index: 4, kind: output, shape index: {}]  }
   0x1 LB: > { %s1497_s16 = sadd.s32 4294967295, %s1715_s15   ;;  %p1501_p0 = scmp.ge.s32.totalorder %s1715_s15, 1  ;;  %s1715_s15 = sphi %s1742_s15, %s14_s15  }
   0x2   : > { %p162_p1 = scmp.lt.s32.totalorder %s1715_s15, 5 }
   0x4   : > { %p163_p2 = pnand %p1501_p0, %p162_p1 }
   0x5   : > { %p188_p3 = scmp.lt.s32.totalorder (!%p163_p2), %s1497_s16, 3 }
   0x6   : > { %166 = sbr.rel (%p163_p2) target bundleno = 467 (0x1d3), region = 36 }
   0xb   : > { %v1505_v0 = vld [vmem:[%s2381_s1 + $0x2] sm:$0x3]  ;;  %vm476_vm0 = vcmask 1041408   ;;  %v1562_v2 = vld [vmem:[%s2381_s1 + $0x4] sm:$0x3]  ;;  %s2390_s16 = smov (!%p188_p3, %s1497_s16), 3 }
   0xc   : > { %v478_v1 = vsel %vm476_vm0, %v1505_v0, 0  ;;  %v763_v3 = vsel %vm476_vm0, %v1562_v2, 0  ;;  %v1571_v4 = vld [vmem:[%s2381_s1 + $0x6] sm:$0x3]  ;;  %v229_v5 = vld [vmem:[%s2381_s1] sm:$0x3] }
   0xd   : > { %1695 = vmatpush.bf16.msra.mxu1 %v478_v1  ;;  %1696 = vmatpush.bf16.msra.mxu2 %v478_v1  ;;  %v1584_v6 = vld [vmem:[%s2381_s1 + $0x8] sm:$0x3]  ;;  %s1698_s27 = smul.u32 120, %s2390_s16  ;;  %v841_v7 = vsel %vm476_vm0, %v1571_v4, 0  ;;  %v594_v8 = vsel %vm476_vm0, %v229_v5, 0  ;;  %vm451_vm3 = vcmask 31744  }
   0xe   : > { %1697 = vmatpush.bf16.msra.mxu3 %v478_v1  ;;  %487 = vmatpush.bf16.msra.mxu0 %v478_v1  ;;  %v941_v9 = vsel %vm476_vm0, %v1584_v6, 0  ;;  %vm230_vm1 = vsmask.f32 3328  ;;  %vm231_vm2 = vsmask.f32 7440  ;;  %vm653_vm5 = vcmask 1042432  }
   0xf   : > { %s1776_s30 = scalar_lea.vmem %s2380_s0, %s1698_s27  ;;  %vm1814_vm4 = vmor %vm230_vm1, %vm231_vm2  ;;  %vm654_vm6 = vcmask 1046532   ;;  %s1637_s19 = sshll.u32 %s2390_s16, 6 }
  0x10   : > { %v1779_v10 = vld [vmem:[%s1776_s30 + $0x18] sm:$0xf]  ;;  %v1782_v11 = vld [vmem:[%s1776_s30 + $0x1c] sm:$0xf]  ;;  %v1785_v12 = vld [vmem:[%s1776_s30 + $0x20] sm:$0x1]  ;;  %s2326_s22 = scalar_lea.vmem %s2384_s4, %s1637_s19 }
  0x11   : > { %772 = vmatpush.bf16.msrb.mxu2 %v763_v3  ;;  %603 = vmatpush.bf16.msrb.mxu1 %v594_v8  ;;  %v282_v13 = vshrl.u32 %v1779_v10, 16  ;;  %v285_v14 = vshll.u32 %v1779_v10, 16  ;;  %v291_v15 = vshll.u32 %v1782_v11, 16  ;;  %v295_v16 = vshrl.u32 %v1782_v11, 16  ;;  %v1792_v17 = vld [vmem:[%s1776_s30 + $0x30] sm:$0xf]  ;;  %vm1968_vm7 = vmor %vm653_vm5, %vm654_vm6 }
  0x12   : > { %850 = vmatpush.bf16.msrb.mxu3 %v841_v7  ;;  %950 = vmatpush.bf16.msrb.mxu0 %v941_v9  ;;  %v301_v18 = vshll.u32 %v1785_v12, 16  ;;  %v1796_v19 = vld [vmem:[%s1776_s30 + $0x34] sm:$0xf]  ;;  %v1799_v20 = vld [vmem:[%s1776_s30 + $0x38] sm:$0x1]  ;;  %v330_v21 = vshrl.u32 %v1792_v17, 16 }
  0x13   : > { %v284_v22 = vrot.slane %v282_v13, 4  ;;  %v287_v23 = vrot.slane %v285_v14, 5  ;;  %v293_v24 = vrot.slane %v291_v15, 5  ;;  %v297_v25 = vrot.slane %v295_v16, 4  ;;  %v1803_v26 = vld [vmem:[%s1776_s30 + $0x48] sm:$0xf] }
  0x14   : > { %v303_v27 = vrot.slane %v301_v18, 5  ;;  %v332_v28 = vrot.slane %v330_v21, 4  ;;  %v333_v29 = vshll.u32 %v1792_v17, 16  ;;  %v339_v30 = vshll.u32 %v1796_v19, 16  ;;  %v1810_v35 = vld [vmem:[%s1776_s30 + $0x4c] sm:$0xf] }
  0x15   : > { %v288_v31 = vor.u32 %v287_v23, %v284_v22  ;;  %v298_v32 = vor.u32 %v297_v25, %v293_v24  ;;  %v343_v33 = vshrl.u32 %v1796_v19, 16  ;;  %v349_v34 = vshll.u32 %v1799_v20, 16  ;;  %v1821_v46 = vld [vmem:[%s1776_s30 + $0x50] sm:$0x1]  ;;  %v1830_v54 = vld [vmem:[%s1776_s30] sm:$0xf] }
  0x16   : > { %v335_v37 = vrot.slane %v333_v29, 5  ;;  %v341_v38 = vrot.slane %v339_v30, 5  ;;  %v378_v39 = vshrl.u32 %v1803_v26, 16  ;;  %v381_v40 = vshll.u32 %v1803_v26, 16  ;;  %v1838_v2 = vld [vmem:[%s1776_s30 + $0x4] sm:$0xf] }
  0x17   : > { %v289_v41 = vrot.slane %v288_v31, 4  ;;  %v299_v42 = vrot.slane %v298_v32, 4  ;;  %v345_v43 = vrot.slane %v343_v33, 4  ;;  %v351_v44 = vrot.slane %v349_v34, 5  ;;  %v1844_v8 = vld [vmem:[%s1776_s30 + $0x8] sm:$0x1] }
  0x18   : > { %v336_v45 = vor.u32 %v335_v37, %v332_v28  ;;  %v380_v47 = vrot.slane %v378_v39, 4  ;;  %v383_v48 = vrot.slane %v381_v40, 5  ;;  %v387_v49 = vshll.u32 %v1810_v35, 16  ;;  %v1852_v16 = vld [vmem:[%s1776_s30 + $0x24] sm:$0xf] }
  0x19   : > { %v294_v50 = vsel %vm1814_vm4, %v289_v41, %v293_v24  ;;  %v304_v51 = vsel %vm1814_vm4, %v299_v42, %v303_v27  ;;  %v346_v52 = vor.u32 %v345_v43, %v341_v38  ;;  %v391_v53 = vshrl.u32 %v1810_v35, 16  ;;  %v1861_v29 = vld [vmem:[%s1776_s30 + $0x28] sm:$0xf]  ;;  %v1866_v33 = vld [vmem:[%s1776_s30 + $0x2c] sm:$0x1] }
  0x1a   : > { %v431_v55 = vunpack.c.l.b16 %v294_v50  ;;  %v432_v56 = vunpack.c.l.b16 %v304_v51  ;;  %v337_v57 = vrot.slane %v336_v45, 4  ;;  %v384_v58 = vor.u32 %v383_v48, %v380_v47  ;;  %v1873_v41 = vld [vmem:[%s1776_s30 + $0x3c] sm:$0xf] }
  0x1b   : > { %v347_v59 = vrot.slane %v346_v52, 4  ;;  %v389_v60 = vrot.slane %v387_v49, 5  ;;  %v393_v61 = vrot.slane %v391_v53, 4  ;;  %v397_v62 = vshll.u32 %v1821_v46, 16 }
  0x1c   : > { %v1833_v63 = vpack.c.b16 %v432_v56, %v431_v55  ;;  %v342_v0 = vsel %vm1814_vm4, %v337_v57, %v341_v38  ;;  %v385_v1 = vrot.slane %v384_v58, 4  ;;  %v234_v3 = vshrl.u32 %v1830_v54, 16  ;;  %v1881_v55 = vld [vmem:[%s1776_s30 + $0x40] sm:$0xf] }
  0x1d   : > { %v352_v4 = vsel %vm1814_vm4, %v347_v59, %v351_v44  ;;  %v435_v5 = vunpack.c.l.b16 %v342_v0  ;;  %v394_v6 = vor.u32 %v393_v61, %v389_v60  ;;  %v399_v7 = vrot.slane %v397_v62, 5  ;;  %v1893_v62 = vld [vmem:[%s1776_s30 + $0x54] sm:$0xf] }
  0x1e   : > { %1508 = vmatmul.msk.bf16.vlgmr.msra.gmra.mxu1 %vm451_vm3, %v1833_v63  ;;  %v436_v9 = vunpack.c.l.b16 %v352_v4  ;;  %v390_v13 = vsel %vm1814_vm4, %v385_v1, %v389_v60  ;;  %v236_v14 = vrot.slane %v234_v3, 4  ;;  %v237_v15 = vshll.u32 %v1830_v54, 16  ;;  %v1889_v60 = vld [vmem:[%s1776_s30 + $0x44] sm:$0x1] }
  0x1f   : > { %v395_v18 = vrot.slane %v394_v6, 4  ;;  %v439_v21 = vunpack.c.l.b16 %v390_v13  ;;  %v243_v22 = vshll.u32 %v1838_v2, 16  ;;  %v247_v23 = vshrl.u32 %v1838_v2, 16 }
  0x20   : > { %v1856_v24 = vpack.c.b16 %v436_v9, %v435_v5  ;;  %v239_v25 = vrot.slane %v237_v15, 5  ;;  %v253_v27 = vshll.u32 %v1844_v8, 16  ;;  %v661_v28 = vrot.slane %v1844_v8, 5 }
  0x21   : > { %v400_v30 = vsel %vm1814_vm4, %v395_v18, %v399_v7  ;;  %v245_v31 = vrot.slane %v243_v22, 5  ;;  %v249_v32 = vrot.slane %v247_v23, 4  ;;  %v306_v34 = vshrl.u32 %v1852_v16, 16 }
  0x22   : > { %1510 = vmatmul.msk.bf16.vlgmr.msra.gmra.mxu2 %vm451_vm3, %v1856_v24  ;;  %v440_v37 = vunpack.c.l.b16 %v400_v30  ;;  %v240_v38 = vor.u32 %v239_v25, %v236_v14  ;;  %v255_v39 = vrot.slane %v253_v27, 5  ;;  %v309_v40 = vshll.u32 %v1852_v16, 16  ;;  %v1904_v27 = vld [vmem:[%s1776_s30 + $0x58] sm:$0xf]  ;;  %v1907_v30 = vld [vmem:[%s1776_s30 + $0x5c] sm:$0x1] }
  0x23   : > { %v250_v42 = vor.u32 %v249_v32, %v245_v31  ;;  %v308_v43 = vrot.slane %v306_v34, 4  ;;  %v315_v44 = vshll.u32 %v1861_v29, 16  ;;  %v319_v45 = vshrl.u32 %v1861_v29, 16 }
  0x24   : > { %v1877_v47 = vpack.c.b16 %v440_v37, %v439_v21  ;;  %v241_v48 = vrot.slane %v240_v38, 4  ;;  %v311_v49 = vrot.slane %v309_v40, 5  ;;  %v325_v50 = vshll.u32 %v1866_v33, 16  ;;  %v1912_v38 = vld [vmem:[%s1776_s30 + $0xc] sm:$0xf] }
  0x25   : > { %v251_v51 = vrot.slane %v250_v42, 4  ;;  %v317_v52 = vrot.slane %v315_v44, 5  ;;  %v321_v53 = vrot.slane %v319_v45, 4  ;;  %v354_v56 = vshrl.u32 %v1873_v41, 16 }
  0x26   : > { %1512 = vmatmul.msk.bf16.vlgmr.msra.gmra.mxu3 %vm451_vm3, %v1877_v47  ;;  %v246_v57 = vsel %vm1814_vm4, %v241_v48, %v245_v31  ;;  %v312_v58 = vor.u32 %v311_v49, %v308_v43  ;;  %v327_v59 = vrot.slane %v325_v50, 5  ;;  %v357_v61 = vshll.u32 %v1873_v41, 16 }
  0x27   : > { %v256_v0 = vsel %vm1814_vm4, %v251_v51, %v255_v39  ;;  %v427_v1 = vunpack.c.l.b16 %v246_v57  ;;  %v322_v3 = vor.u32 %v321_v53, %v317_v52  ;;  %v356_v4 = vrot.slane %v354_v56, 4  ;;  %v1924_v53 = vld [vmem:[%s1776_s30 + $0x10] sm:$0xf] }
  0x28   : > { %v428_v5 = vunpack.c.l.b16 %v256_v0  ;;  %v313_v6 = vrot.slane %v312_v58, 4  ;;  %v359_v7 = vrot.slane %v357_v61, 5  ;;  %v363_v9 = vshll.u32 %v1881_v55, 16  ;;  %v1928_v0 = vld [vmem:[%s1776_s30 + $0x14] sm:$0x1] }
  0x29   : > { %v323_v13 = vrot.slane %v322_v3, 4  ;;  %v367_v14 = vshrl.u32 %v1881_v55, 16  ;;  %v373_v15 = vshll.u32 %v1889_v60, 16  ;;  %v402_v18 = vshrl.u32 %v1893_v62, 16 }
  0x2a   : > { %v443_v21 = vpack.c.b16 %v428_v5, %v427_v1  ;;  %v318_v22 = vsel %vm1814_vm4, %v313_v6, %v317_v52  ;;  %v360_v23 = vor.u32 %v359_v7, %v356_v4  ;;  %v365_v25 = vrot.slane %v363_v9, 5 }
  0x2b   : > { %v328_v31 = vsel %vm1814_vm4, %v323_v13, %v327_v59  ;;  %v433_v32 = vunpack.c.l.b16 %v318_v22  ;;  %v369_v34 = vrot.slane %v367_v14, 4  ;;  %v375_v37 = vrot.slane %v373_v15, 5 }
  0x2c   : > { %1506 = vmatmul.msk.bf16.vlgmr.msra.gmra.mxu0 %vm451_vm3, %v443_v21  ;;  %v434_v39 = vunpack.c.l.b16 %v328_v31  ;;  %v361_v40 = vrot.slane %v360_v23, 4  ;;  %v404_v42 = vrot.slane %v402_v18, 4  ;;  %v405_v43 = vshll.u32 %v1893_v62, 16  ;;  %v1603_v31 = vld [vmem:[%s2381_s1 + $0xc] sm:$0x3] }
  0x2d   : > { %v370_v44 = vor.u32 %v369_v34, %v365_v25  ;;  %v411_v45 = vshll.u32 %v1904_v27, 16  ;;  %v415_v48 = vshrl.u32 %v1904_v27, 16  ;;  %v421_v49 = vshll.u32 %v1907_v30, 16 }
  0x2e   : > { %v1919_v50 = vpack.c.b16 %v434_v39, %v433_v32  ;;  %v366_v51 = vsel %vm1814_vm4, %v361_v40, %v365_v25  ;;  %v407_v52 = vrot.slane %v405_v43, 5  ;;  %v258_v56 = vshrl.u32 %v1912_v38, 16  ;;  %v1616_v40 = vld [vmem:[%s2381_s1 + $0xe] sm:$0x3] }
  0x2f   : > { %v371_v57 = vrot.slane %v370_v44, 4  ;;  %v437_v58 = vunpack.c.l.b16 %v366_v51  ;;  %v413_v59 = vrot.slane %v411_v45, 5  ;;  %v417_v61 = vrot.slane %v415_v48, 4 }
  0x30   : > { %1509 = vmatmul.msk.bf16.gmra.mxu1 %vm451_vm3, %v1919_v50  ;;  %v408_v1 = vor.u32 %v407_v52, %v404_v42  ;;  %v423_v3 = vrot.slane %v421_v49, 5  ;;  %v260_v4 = vrot.slane %v258_v56, 4  ;;  %v261_v5 = vshll.u32 %v1912_v38, 16  ;;  %v1594_v42 = vld [vmem:[%s2381_s1 + $0xa] sm:$0x3] }
  0x31   : > { %v376_v6 = vsel %vm1814_vm4, %v371_v57, %v375_v37  ;;  %v418_v7 = vor.u32 %v417_v61, %v413_v59  ;;  %v267_v9 = vshll.u32 %v1924_v53, 16  ;;  %v271_v13 = vshrl.u32 %v1924_v53, 16  ;;  %v1626_v56 = vld [vmem:[%s2381_s1 + $0x10] sm:$0x3] }
  0x32   : > { %v438_v14 = vunpack.c.l.b16 %v376_v6  ;;  %v409_v15 = vrot.slane %v408_v1, 4  ;;  %v263_v18 = vrot.slane %v261_v5, 5  ;;  %v277_v21 = vshll.u32 %v1928_v0, 16 }
  0x33   : > { %v419_v22 = vrot.slane %v418_v7, 4  ;;  %v269_v23 = vrot.slane %v267_v9, 5  ;;  %v273_v25 = vrot.slane %v271_v13, 4  ;;  %v1554_v51 = vrot.slane %v1830_v54, 9 }
  0x34   : > { %v1941_v32 = vpack.c.b16 %v438_v14, %v437_v58  ;;  %v414_v34 = vsel %vm1814_vm4, %v409_v15, %v413_v59  ;;  %v264_v37 = vor.u32 %v263_v18, %v260_v4  ;;  %v279_v39 = vrot.slane %v277_v21, 5  ;;  %v1638_v15 = vld [vmem:[%s1776_s30] sm:$0xff] }
  0x35   : > { %v424_v43 = vsel %vm1814_vm4, %v419_v22, %v423_v3  ;;  %v441_v44 = vunpack.c.l.b16 %v414_v34  ;;  %v274_v45 = vor.u32 %v273_v25, %v269_v23  ;;  %v658_v52 = vrot.slane %v1838_v2, 5 }
  0x36   : > { %1511 = vmatmul.msk.bf16.gmra.mxu2 %vm451_vm3, %v1941_v32  ;;  %v442_v48 = vunpack.c.l.b16 %v424_v43  ;;  %v265_v49 = vrot.slane %v264_v37, 4  ;;  %v1103_v58 = vsel %vm476_vm0, %v1603_v31, 0  ;;  %v1203_v59 = vsel %vm476_vm0, %v1616_v40, 0 }
  0x37   : > { %v275_v57 = vrot.slane %v274_v45, 4  ;;  %v1025_v61 = vsel %vm476_vm0, %v1594_v42, 0  ;;  %v660_v2 = vrot.slane %v658_v52, 4  ;;  %1112 = vmatpush.bf16.msra.mxu2 %v1103_v58  ;;  %1212 = vmatpush.bf16.msra.mxu3 %v1203_v59  ;;  %v1287_v6 = vsel %vm476_vm0, %v1626_v56, 0  ;;  %v1639_v42 = vld [vmem:[%s1776_s30 + $0xc] sm:$0xff] }
  0x38   : > { %v1963_v1 = vpack.c.b16 %v442_v48, %v441_v44  ;;  %v270_v3 = vsel %vm1814_vm4, %v265_v49, %v269_v23  ;;  %1034 = vmatpush.bf16.msra.mxu1 %v1025_v61  ;;  %1296 = vmatpush.bf16.msra.mxu0 %v1287_v6  ;;  %v659_v9 = vsel %vm1968_vm7, %v1554_v51, %v658_v52  ;;  %v1556_v22 = vrot.slane %v1779_v10, 9 }
  0x39   : > { %v280_v4 = vsel %vm1814_vm4, %v275_v57, %v279_v39  ;;  %v429_v5 = vunpack.c.l.b16 %v270_v3  ;;  %v662_v13 = vsel %vm1968_vm7, %v660_v2, %v661_v28  ;;  %v714_v18 = vunpack.c.l.b16 %v659_v9  ;;  %v2044_v3 = vld [vmem:[%s1776_s30 + $0x30] sm:$0xff] }
  0x3a   : > { %1513 = vmatmul.msk.bf16.gmra.mxu3 %vm451_vm3, %v1963_v1  ;;  %v430_v7 = vunpack.c.l.b16 %v280_v4  ;;  %v715_v21 = vunpack.c.l.b16 %v662_v13  ;;  %v672_v23 = vrot.slane %v1782_v11, 5  ;;  %v675_v25 = vrot.slane %v1785_v12, 5  ;;  %v2064_v13 = vld [vmem:[%s1776_s30 + $0x3c] sm:$0xff] }
  0x3b   : > { %v665_v34 = vrot.slane %v1924_v53, 5  ;;  %v1555_v10 = vrot.slane %v1912_v38, 9  ;;  %v668_v12 = vrot.slane %v1928_v0, 5  ;;  %v1557_v38 = vrot.slane %v1852_v16, 9  ;;  %v2019_v16 = vld [vmem:[%s1776_s30 + $0x18] sm:$0xff] }
  0x3c   : > { %v444_v14 = vpack.c.b16 %v430_v7, %v429_v5  ;;  %v730_v31 = vpack.c.b16 %v715_v21, %v714_v18  ;;  %v673_v8 = vsel %vm1968_vm7, %v1556_v22, %v672_v23  ;;  %v674_v28 = vrot.slane %v672_v23, 4 }
  0x3d   : > { %v718_v37 = vunpack.c.l.b16 %v673_v8  ;;  %v667_v11 = vrot.slane %v665_v34, 4  ;;  %v666_v53 = vsel %vm1968_vm7, %v1555_v10, %v665_v34  ;;  %v679_v0 = vrot.slane %v1861_v29, 5 }
  0x3e   : > { %1507 = vmatmul.msk.bf16.gmra.mxu0 %vm451_vm3, %v444_v14  ;;  %v676_v39 = vsel %vm1968_vm7, %v674_v28, %v675_v25  ;;  %v716_v45 = vunpack.c.l.b16 %v666_v53  ;;  %v682_v49 = vrot.slane %v1866_v33, 5  ;;  %v2032_v33 = vld [vmem:[%s1776_s30 + $0x24] sm:$0xff]  ;;  %v686_v61 = vrot.slane %v1796_v19, 5 }
  0x3f   : > { %v719_v40 = vunpack.c.l.b16 %v676_v39  ;;  %v669_v44 = vsel %vm1968_vm7, %v667_v11, %v668_v12  ;;  %v680_v52 = vsel %vm1968_vm7, %v1557_v38, %v679_v0  ;;  %v681_v56 = vrot.slane %v679_v0, 4  ;;  %v2084_v25 = vld [vmem:[%s1776_s30 + $0x48] sm:$0xff]  ;;  %v2120_v38 = vld [vmem:[%s1776_s30 + $0x54] sm:$0xff] }
  0x40   : > { %1546 = vmatmul.msk.bf16.vlgmr.msrb.gmra.mxu1 %vm451_vm3, %v1638_v15  ;;  %v717_v48 = vunpack.c.l.b16 %v669_v44  ;;  %v720_v57 = vunpack.c.l.b16 %v680_v52  ;;  %v1558_v2 = vrot.slane %v1792_v17, 9  ;;  %v688_v4 = vrot.slane %v686_v61, 4 }
  0x41   : > { %v1998_v43 = vpack.c.b16 %v719_v40, %v718_v37  ;;  %v683_v58 = vsel %vm1968_vm7, %v681_v56, %v682_v49  ;;  %v689_v5 = vrot.slane %v1799_v20, 5  ;;  %v693_v20 = vrot.slane %v1881_v55, 5  ;;  %v2099_v40 = vld [vmem:[%s1776_s30 + $0x60] sm:$0xf] }
  0x42   : > { %v2010_v51 = vpack.c.b16 %v717_v48, %v716_v45  ;;  %v721_v59 = vunpack.c.l.b16 %v683_v58  ;;  %v687_v6 = vsel %vm1968_vm7, %v1558_v2, %v686_v61  ;;  %v696_v18 = vrot.slane %v1889_v60, 5  ;;  %v2125_v61 = vld [vmem:[%s1776_s30 + $0x68] sm:$0x1] }
  0x43   : > { %v690_v19 = vsel %vm1968_vm7, %v688_v4, %v689_v5  ;;  %v722_v7 = vunpack.c.l.b16 %v687_v6  ;;  %v695_v15 = vrot.slane %v693_v20, 4  ;;  %v700_v60 = vrot.slane %v1810_v35, 5 }
  0x44   : > { %v2021_v29 = vpack.c.b16 %v721_v59, %v720_v57  ;;  %v723_v9 = vunpack.c.l.b16 %v690_v19  ;;  %v703_v28 = vrot.slane %v1821_v46, 5  ;;  %v2102_v46 = vld [vmem:[%s1776_s30 + $0x64] sm:$0xf]  ;;  %v909_v10 = vshrl.u32 %v2099_v40, 16 }
  0x45   : > { %v697_v55 = vsel %vm1968_vm7, %v695_v15, %v696_v18  ;;  %v702_v8 = vrot.slane %v700_v60, 4  ;;  %v912_v11 = vshll.u32 %v2099_v40, 16  ;;  %v918_v12 = vshll.u32 %v2102_v46, 16 }
  0x46   : > { %1563 = vmatmul.msk.bf16.vlgmr.msrb.gmra.mxu2 %vm451_vm3, %v730_v31  ;;  %v2058_v17 = vpack.c.b16 %v723_v9, %v722_v7  ;;  %v725_v23 = vunpack.c.l.b16 %v697_v55  ;;  %v1560_v31 = vrot.slane %v1803_v26, 9  ;;  %v707_v44 = vrot.slane %v1904_v27, 5 }
  0x47   : > { %v704_v35 = vsel %vm1968_vm7, %v702_v8, %v703_v28  ;;  %v922_v45 = vshrl.u32 %v2102_v46, 16  ;;  %v911_v0 = vrot.slane %v909_v10, 4  ;;  %v914_v49 = vrot.slane %v912_v11, 5  ;;  %v2157_v8 = vld [vmem:[%s1776_s30 + $0x60] sm:$0xff] }
  0x48   : > { %v701_v37 = vsel %vm1968_vm7, %v1560_v31, %v700_v60  ;;  %v727_v26 = vunpack.c.l.b16 %v704_v35  ;;  %v920_v52 = vrot.slane %v918_v12, 5  ;;  %v1561_v56 = vrot.slane %v1893_v62, 9 }
  0x49   : > { %v726_v39 = vunpack.c.l.b16 %v701_v37  ;;  %v709_v57 = vrot.slane %v707_v44, 4  ;;  %v710_v58 = vrot.slane %v1907_v30, 5  ;;  %v924_v59 = vrot.slane %v922_v45, 4 }
  0x4a   : > { %1576 = vmatmul.msk.bf16.vlgmr.msrb.gmra.mxu3 %vm451_vm3, %v1639_v42  ;;  %v915_v4 = vor.u32 %v914_v49, %v911_v0  ;;  %v708_v5 = vsel %vm1968_vm7, %v1561_v56, %v707_v44  ;;  %v928_v19 = vshll.u32 %v2125_v61, 16 }
  0x4b   : > { %v711_v6 = vsel %vm1968_vm7, %v709_v57, %v710_v58  ;;  %v925_v62 = vor.u32 %v924_v59, %v920_v52  ;;  %v728_v7 = vunpack.c.l.b16 %v708_v5 }
  0x4c   : > { %v729_v9 = vunpack.c.l.b16 %v711_v6  ;;  %v930_v18 = vrot.slane %v928_v19, 5 }
  0x4d   : > { %v926_v15 = vrot.slane %v925_v62, 4 }
  0x4e   : > { %1585 = vmatmul.msk.bf16.vlgmr.msrb.gmra.mxu0 %vm451_vm3, %v444_v14  ;;  %v1559_v14 = vrot.slane %v1873_v41, 9  ;;  %v2144_v55 = vpack.c.b16 %v729_v9, %v728_v7 }
  0x4f   : > { %v931_v60 = vsel %vm1814_vm4, %v926_v15, %v930_v18 }
  0x50   : > { %1547 = vmatmul.msk.bf16.gmra.mxu1 %vm451_vm3, %v1639_v42  ;;  %v694_v21 = vsel %vm1968_vm7, %v1559_v14, %v693_v20  ;;  %v2106_v42 = vpack.c.b16 %v727_v26, %v726_v39  ;;  %v916_v14 = vrot.slane %v915_v4, 4  ;;  %v935_v37 = vunpack.c.l.b16 %v931_v60 }
  0x51   : > { %v724_v22 = vunpack.c.l.b16 %v694_v21 }
  0x53   : > { %v2078_v41 = vpack.c.b16 %v725_v23, %v724_v22  ;;  %v921_v23 = vsel %vm1814_vm4, %v916_v14, %v920_v52 }
  0x54   : > { %v934_v28 = vunpack.c.l.b16 %v921_v23 }
  0x56   : > { %1564 = vmatmul.msk.bf16.gmra.mxu2 %vm451_vm3, %v2010_v51  ;;  %v2163_v39 = vpack.c.b16 %v935_v37, %v934_v28 }
  0x5a   : > { %1577 = vmatmul.msk.bf16.gmra.mxu3 %vm451_vm3, %v2019_v16 }
  0x5e   : > { %1586 = vmatmul.msk.bf16.gmra.mxu0 %vm451_vm3, %v1833_v63 }
  0x60   : > { %1548 = vmatmul.msk.bf16.gmra.mxu1 %vm451_vm3, %v2019_v16 }
  0x66   : > { %1565 = vmatmul.msk.bf16.gmra.mxu2 %vm451_vm3, %v1998_v43 }
  0x6a   : > { %1578 = vmatmul.msk.bf16.gmra.mxu3 %vm451_vm3, %v2032_v33 }
  0x6e   : > { %1587 = vmatmul.msk.bf16.gmra.mxu0 %vm451_vm3, %v1919_v50 }
  0x70   : > { %1549 = vmatmul.msk.bf16.gmra.mxu1 %vm451_vm3, %v2032_v33 }
  0x76   : > { %1566 = vmatmul.msk.bf16.gmra.mxu2 %vm451_vm3, %v2021_v29 }
  0x7a   : > { %1579 = vmatmul.msk.bf16.gmra.mxu3 %vm451_vm3, %v2044_v3 }
  0x7e   : > { %1588 = vmatmul.msk.bf16.gmra.mxu0 %vm451_vm3, %v1856_v24 }
  0x80   : > { %1550 = vmatmul.msk.bf16.gmra.mxu1 %vm451_vm3, %v2044_v3 }
  0x86   : > { %1567 = vmatmul.msk.bf16.gmra.mxu2 %vm451_vm3, %v2058_v17 }
  0x8a   : > { %1580 = vmatmul.msk.bf16.gmra.mxu3 %vm451_vm3, %v2064_v13 }
  0x8e   : > { %1589 = vmatmul.msk.bf16.gmra.mxu0 %vm451_vm3, %v1941_v32 }
  0x90   : > { %1551 = vmatmul.msk.bf16.gmra.mxu1 %vm451_vm3, %v2064_v13 }
  0x96   : > { %1568 = vmatmul.msk.bf16.gmra.mxu2 %vm451_vm3, %v2078_v41 }
  0x9a   : > { %1581 = vmatmul.msk.bf16.gmra.mxu3 %vm451_vm3, %v2084_v25 }
  0x9b   : > { %v2090_v34 = vpop.f32.mrf.mxu1 }
  0x9e   : > { %1590 = vmatmul.msk.bf16.gmra.mxu0 %vm451_vm3, %v1877_v47 }
  0xa0   : > { %1552 = vmatmul.msk.bf16.gmra.mxu1 %vm451_vm3, %v2084_v25 }
  0xa3   : > { %v2111_v53 = vpop.f32.mrf.mxu1 }
  0xa5   : > { %v2115_v48 = vpop.f32.mrf.mxu2 }
  0xa6   : > { %1569 = vmatmul.msk.bf16.gmra.mxu2 %vm451_vm3, %v2106_v42 }
  0xa9   : > { %v489_v27 = vpop.f32.mrf.mxu0  ;;  %v2127_v2 = vpop.f32.mrf.mxu3 }
  0xaa   : > { %1582 = vmatmul.msk.bf16.gmra.mxu3 %vm451_vm3, %v2120_v38 }
  0xad   : > { %v2136_v30 = vpop.f32.mrf.mxu1  ;;  %v2140_v20 = vpop.f32.mrf.mxu2 }
  0xae   : > { %1591 = vmatmul.msk.bf16.gmra.mxu0 %vm451_vm3, %v1963_v1 }
  0xb0   : > { %1553 = vmatmul.msk.bf16.gmra.mxu1 %vm451_vm3, %v2120_v38 }
  0xb1   : > { %v491_v21 = vpop.f32.mrf.mxu0  ;;  %v2146_v22 = vpop.f32.mrf.mxu3 }
  0xb5   : > { %v2152_v31 = vpop.f32.mrf.mxu1 }
  0xb6   : > { %1570 = vmatmul.msk.bf16.gmra.mxu2 %vm451_vm3, %v2144_v55 }
  0xb9   : > { %v2159_v35 = vpop.f32.mrf.mxu2 }
  0xba   : > { %1583 = vmatmul.msk.bf16.gmra.mxu3 %vm451_vm3, %v2157_v8 }
  0xbb   : > { %v494_v26 = vpop.f32.mrf.mxu0 }
  0xbd   : > { %v2165_v10 = vpop.f32.mrf.mxu3  ;;  %v605_v11 = vpop.f32.mrf.mxu1 }
  0xbe   : > { %1592 = vmatmul.msk.bf16.gmra.mxu0 %vm451_vm3, %v2163_v39  ;;  %v606_v12 = vadd.f32 %v605_v11, %v489_v27 }
  0xc0   : > { %1595 = vmatmul.msk.bf16.vlgmr.msra.gmra.mxu1 %vm451_vm3, %v2010_v51 }
  0xc1   : > { %v2171_v44 = vpop.f32.mrf.mxu2 }
  0xc3   : > { %v496_v45 = vpop.f32.mrf.mxu0 }
  0xc5   : > { %v2173_v0 = vpop.f32.mrf.mxu3  ;;  %v607_v49 = vpop.f32.mrf.mxu1 }
  0xc6   : > { %1608 = vmatmul.msk.bf16.vlgmr.msra.gmra.mxu2 %vm451_vm3, %v2019_v16  ;;  %v608_v52 = vadd.f32 %v607_v49, %v491_v21 }
  0xc9   : > { %v774_v56 = vpop.f32.mrf.mxu2 }
  0xca   : > { %1617 = vmatmul.msk.bf16.vlgmr.msra.gmra.mxu3 %vm451_vm3, %v1833_v63  ;;  %v814_v57 = vadd.f32 %v774_v56, %v606_v12 }
  0xcb   : > { %v952_v58 = vpop.f32.mrf.mxu0 }
  0xcd   : > { %v852_v59 = vpop.f32.mrf.mxu3  ;;  %v610_v27 = vpop.f32.mrf.mxu1 }
  0xce   : > { %1627 = vmatmul.msk.bf16.vlgmr.msra.gmra.mxu0 %vm451_vm3, %v1998_v43  ;;  %v892_v51 = vadd.f32 %v852_v59, %v814_v57  ;;  %v611_v4 = vadd.f32 %v610_v27, %v494_v26 }
  0xd0   : > { %1596 = vmatmul.msk.bf16.gmra.mxu1 %vm451_vm3, %v1998_v43  ;;  %v2183_v5 = vadd.f32 %v952_v58, %v892_v51 }
  0xd1   : > { %v776_v16 = vpop.f32.mrf.mxu2 }
  0xd2   : > { %v815_v6 = vadd.f32 %v776_v16, %v608_v52 }
  0xd3   : > { %v954_v62 = vpop.f32.mrf.mxu0 }
  0xd5   : > { %v854_v19 = vpop.f32.mrf.mxu3  ;;  %v612_v7 = vpop.f32.mrf.mxu1 }
  0xd6   : > { %v893_v63 = vadd.f32 %v854_v19, %v815_v6  ;;  %1609 = vmatmul.msk.bf16.gmra.mxu2 %vm451_vm3, %v2032_v33  ;;  %v613_v9 = vadd.f32 %v612_v7, %v496_v45 }
  0xd8   : > { %v2187_v14 = vadd.f32 %v954_v62, %v893_v63 }
  0xd9   : > { %v779_v15 = vpop.f32.mrf.mxu2 }
  0xda   : > { %1618 = vmatmul.msk.bf16.gmra.mxu3 %vm451_vm3, %v1919_v50  ;;  %v816_v18 = vadd.f32 %v779_v15, %v611_v4 }
  0xdb   : > { %v957_v43 = vpop.f32.mrf.mxu0 }
  0xdd   : > { %v857_v21 = vpop.f32.mrf.mxu3  ;;  %v615_v23 = vpop.f32.mrf.mxu1 }
  0xde   : > { %1628 = vmatmul.msk.bf16.gmra.mxu0 %vm451_vm3, %v2021_v29  ;;  %v894_v60 = vadd.f32 %v857_v21, %v816_v18  ;;  %v616_v28 = vadd.f32 %v615_v23, %v2090_v34 }
  0xe0   : > { %1597 = vmatmul.msk.bf16.gmra.mxu1 %vm451_vm3, %v2021_v29  ;;  %v2196_v33 = vadd.f32 %v957_v43, %v894_v60 }
  0xe1   : > { %v781_v37 = vpop.f32.mrf.mxu2 }
  0xe2   : > { %v817_v26 = vadd.f32 %v781_v37, %v613_v9 }
  0xe3   : > { %v959_v11 = vpop.f32.mrf.mxu0 }
  0xe5   : > { %v859_v12 = vpop.f32.mrf.mxu3  ;;  %v617_v50 = vpop.f32.mrf.mxu1 }
  0xe6   : > { %v895_v45 = vadd.f32 %v859_v12, %v817_v26  ;;  %1610 = vmatmul.msk.bf16.gmra.mxu2 %vm451_vm3, %v2044_v3  ;;  %v618_v49 = vadd.f32 %v617_v50, %v2111_v53 }
  0xe8   : > { %v2201_v52 = vadd.f32 %v959_v11, %v895_v45 }
  0xe9   : > { %v784_v56 = vpop.f32.mrf.mxu2 }
  0xea   : > { %1619 = vmatmul.msk.bf16.gmra.mxu3 %vm451_vm3, %v1856_v24  ;;  %v818_v29 = vadd.f32 %v784_v56, %v616_v28 }
  0xeb   : > { %v962_v34 = vpop.f32.mrf.mxu0 }
  0xed   : > { %v862_v57 = vpop.f32.mrf.mxu3  ;;  %v620_v58 = vpop.f32.mrf.mxu1 }
  0xee   : > { %1629 = vmatmul.msk.bf16.gmra.mxu0 %vm451_vm3, %v2058_v17  ;;  %v896_v59 = vadd.f32 %v862_v57, %v818_v29  ;;  %v621_v27 = vadd.f32 %v620_v58, %v2136_v30 }
  0xf0   : > { %1598 = vmatmul.msk.bf16.gmra.mxu1 %vm451_vm3, %v2058_v17  ;;  %v2210_v3 = vadd.f32 %v962_v34, %v896_v59 }
  0xf1   : > { %v786_v53 = vpop.f32.mrf.mxu2 }
  0xf2   : > { %v819_v51 = vadd.f32 %v786_v53, %v618_v49  ;;  %v2248_v53 = vld [vmem:[%s1776_s30 + $0x6c] sm:$0xf] }
  0xf3   : > { %v964_v4 = vpop.f32.mrf.mxu0 }
  0xf5   : > { %v864_v16 = vpop.f32.mrf.mxu3  ;;  %v622_v24 = vpop.f32.mrf.mxu1 }
  0xf6   : > { %v897_v6 = vadd.f32 %v864_v16, %v819_v51  ;;  %1611 = vmatmul.msk.bf16.gmra.mxu2 %vm451_vm3, %v2064_v13  ;;  %v623_v62 = vadd.f32 %v622_v24, %v2152_v31  ;;  %v2251_v51 = vld [vmem:[%s1776_s30 + $0x70] sm:$0xf]  ;;  %v1171_v24 = vshrl.u32 %v2248_v53, 16 }
  0xf8   : > { %v2215_v19 = vadd.f32 %v964_v4, %v897_v6  ;;  %v1593_v6 = vrot.slane %v2099_v40, 9 }
  0xf9   : > { %v789_v7 = vpop.f32.mrf.mxu2 }
  0xfa   : > { %1620 = vmatmul.msk.bf16.gmra.mxu3 %vm451_vm3, %v1941_v32  ;;  %v820_v17 = vadd.f32 %v789_v7, %v621_v27  ;;  %v1011_v27 = vrot.slane %v2102_v46, 5  ;;  %v1184_v7 = vshrl.u32 %v2251_v51, 16 }
  0xfb   : > { %v967_v30 = vpop.f32.mrf.mxu0 }
  0xfc   : > { %v1013_v46 = vrot.slane %v1011_v27, 4  ;;  %v1012_v40 = vsel %vm1968_vm7, %v1593_v6, %v1011_v27 }
  0xfd   : > { %v867_v63 = vpop.f32.mrf.mxu3  ;;  %v625_v9 = vpop.f32.mrf.mxu1 }
  0xfe   : > { %1630 = vmatmul.msk.bf16.gmra.mxu0 %vm451_vm3, %v2078_v41  ;;  %v898_v15 = vadd.f32 %v867_v63, %v820_v17  ;;  %v626_v32 = vadd.f32 %v625_v9, %v2115_v48  ;;  %v1173_v9 = vrot.slane %v1171_v24, 4  ;;  %v1647_v24 = vld [vmem:[%s1776_s30 + $0x6c] sm:$0xff] }
 0x100   : > { %1599 = vmatmul.msk.bf16.gmra.mxu1 %vm451_vm3, %v2078_v41  ;;  %v2223_v13 = vadd.f32 %v967_v30, %v898_v15 }
 0x101   : > { %v791_v31 = vpop.f32.mrf.mxu2 }
 0x102   : > { %v821_v18 = vadd.f32 %v791_v31, %v623_v62  ;;  %v1180_v62 = vshll.u32 %v2251_v51, 16 }
 0x103   : > { %v969_v43 = vpop.f32.mrf.mxu0 }
 0x105   : > { %v869_v21 = vpop.f32.mrf.mxu3  ;;  %v627_v23 = vpop.f32.mrf.mxu1 }
 0x106   : > { %v899_v60 = vadd.f32 %v869_v21, %v821_v18  ;;  %1612 = vmatmul.msk.bf16.gmra.mxu2 %vm451_vm3, %v2084_v25  ;;  %v628_v45 = vadd.f32 %v627_v23, %v2140_v20  ;;  %v1186_v21 = vrot.slane %v1184_v7, 4  ;;  %v228_v23 = vld [vmem:[%s1776_s30 + $0x74] sm:$0x1] }
 0x108   : > { %v2228_v28 = vadd.f32 %v969_v43, %v899_v60  ;;  %v1182_v43 = vrot.slane %v1180_v62, 5 }
 0x109   : > { %v794_v37 = vpop.f32.mrf.mxu2 }
 0x10a   : > { %1621 = vmatmul.msk.bf16.gmra.mxu3 %vm451_vm3, %v1877_v47  ;;  %v822_v41 = vadd.f32 %v794_v37, %v626_v32 }
 0x10b   : > { %v972_v26 = vpop.f32.mrf.mxu0 }
 0x10d   : > { %v872_v11 = vpop.f32.mrf.mxu3  ;;  %v630_v12 = vpop.f32.mrf.mxu1 }
 0x10e   : > { %1631 = vmatmul.msk.bf16.gmra.mxu0 %vm451_vm3, %v2106_v42  ;;  %v900_v50 = vadd.f32 %v872_v11, %v822_v41  ;;  %v631_v57 = vadd.f32 %v630_v12, %v2159_v35  ;;  %v1190_v11 = vshll.u32 %v228_v23, 16 }
 0x110   : > { %1600 = vmatmul.msk.bf16.gmra.mxu1 %vm451_vm3, %v2106_v42  ;;  %v2237_v25 = vadd.f32 %v972_v26, %v900_v50  ;;  %v1187_v26 = vor.u32 %v1186_v21, %v1182_v43 }
 0x111   : > { %v796_v48 = vpop.f32.mrf.mxu2 }
 0x112   : > { %v823_v49 = vadd.f32 %v796_v48, %v628_v45 }
 0x113   : > { %v974_v47 = vpop.f32.mrf.mxu0 }
 0x115   : > { %v874_v56 = vpop.f32.mrf.mxu3  ;;  %v632_v29 = vpop.f32.mrf.mxu1 }
 0x116   : > { %v901_v34 = vadd.f32 %v874_v56, %v823_v49  ;;  %1613 = vmatmul.msk.bf16.gmra.mxu2 %vm451_vm3, %v2120_v38  ;;  %v1014_v38 = vrot.slane %v2125_v61, 5  ;;  %v633_v17 = vadd.f32 %v632_v29, %v2171_v44  ;;  %v1188_v29 = vrot.slane %v1187_v26, 4 }
 0x118   : > { %v2242_v58 = vadd.f32 %v974_v47, %v901_v34  ;;  %v1015_v18 = vsel %vm1968_vm7, %v1013_v46, %v1014_v38  ;;  %v1192_v34 = vrot.slane %v1190_v11, 5 }
 0x119   : > { %v799_v20 = vpop.f32.mrf.mxu2  ;;  %v1019_v37 = vunpack.c.l.b16 %v1015_v18 }
 0x11a   : > { %1622 = vmatmul.msk.bf16.gmra.mxu3 %vm451_vm3, %v1963_v1  ;;  %v824_v42 = vadd.f32 %v799_v20, %v631_v57  ;;  %v1174_v1 = vshll.u32 %v2248_v53, 16 }
 0x11b   : > { %v977_v59 = vpop.f32.mrf.mxu0 }
 0x11c   : > { %v1176_v15 = vrot.slane %v1174_v1, 5 }
 0x11d   : > { %v877_v4 = vpop.f32.mrf.mxu3  ;;  %v635_v16 = vpop.f32.mrf.mxu1 }
 0x11e   : > { %1632 = vmatmul.msk.bf16.gmra.mxu0 %vm451_vm3, %v2144_v55  ;;  %v902_v35 = vadd.f32 %v877_v4, %v824_v42  ;;  %v1177_v41 = vor.u32 %v1176_v15, %v1173_v9  ;;  %v636_v12 = vadd.f32 %v635_v16, %v2127_v2  ;;  %v1276_v4 = vrot.slane %v228_v23, 5 }
 0x120   : > { %1601 = vmatmul.msk.bf16.gmra.mxu1 %vm451_vm3, %v2144_v55  ;;  %v2264_v61 = vadd.f32 %v977_v59, %v902_v35  ;;  %v1018_v55 = vunpack.c.l.b16 %v1012_v40  ;;  %v1178_v47 = vrot.slane %v1177_v41, 4  ;;  %v1625_v59 = vrot.slane %v2248_v53, 9 }
 0x121   : > { %v801_v30 = vpop.f32.mrf.mxu2 }
 0x122   : > { %v825_v63 = vadd.f32 %v801_v30, %v633_v17  ;;  %v1020_v48 = vpack.c.b16 %v1019_v37, %v1018_v55  ;;  %v1183_v42 = vsel %vm1814_vm4, %v1178_v47, %v1182_v43 }
 0x123   : > { %v979_v31 = vpop.f32.mrf.mxu0  ;;  %v1196_v1 = vunpack.c.l.b16 %v1183_v42 }
 0x125   : > { %v879_v44 = vpop.f32.mrf.mxu3  ;;  %v637_v60 = vpop.f32.mrf.mxu1 }
 0x126   : > { %v903_v32 = vadd.f32 %v879_v44, %v825_v63  ;;  %1614 = vmatmul.msk.bf16.gmra.mxu2 %vm451_vm3, %v2157_v8  ;;  %v1273_v8 = vrot.slane %v2251_v51, 5  ;;  %v638_v16 = vadd.f32 %v637_v60, %v2146_v22 }
 0x128   : > { %v2274_v50 = vadd.f32 %v979_v31, %v903_v32  ;;  %v1275_v27 = vrot.slane %v1273_v8, 4  ;;  %v1274_v36 = vsel %vm1968_vm7, %v1625_v59, %v1273_v8  ;;  %v2316_v59 = vld [vmem:[%s2383_s3] ss:$0 sm:$0xff] }
 0x129   : > { %v804_v45 = vpop.f32.mrf.mxu2  ;;  %v1280_v30 = vunpack.c.l.b16 %v1274_v36 }
 0x12a   : > { %1623 = vmatmul.msk.bf16.gmra.mxu3 %vm451_vm3, %v2163_v39  ;;  %v826_v49 = vadd.f32 %v804_v45, %v636_v12  ;;  %v1193_v39 = vsel %vm1814_vm4, %v1188_v29, %v1192_v34  ;;  %v1277_v53 = vsel %vm1968_vm7, %v1275_v27, %v1276_v4 }
 0x12b   : > { %v982_v56 = vpop.f32.mrf.mxu0  ;;  %v1197_v6 = vunpack.c.l.b16 %v1193_v39  ;;  %v1281_v63 = vunpack.c.l.b16 %v1277_v53 }
 0x12d   : > { %v882_v57 = vpop.f32.mrf.mxu3  ;;  %v640_v20 = vpop.f32.mrf.mxu1  ;;  %v1198_v22 = vpack.c.b16 %v1197_v6, %v1196_v1  ;;  %v1282_v40 = vpack.c.b16 %v1281_v63, %v1280_v30 }
 0x12e   : > { %1633 = vmatmul.msk.bf16.gmra.mxu0 %vm451_vm3, %v1020_v48  ;;  %v904_v2 = vadd.f32 %v882_v57, %v826_v49  ;;  %v641_v9 = vadd.f32 %v640_v20, %v2165_v10  ;;  %v2310_v57 = vld [vmem:[%s2382_s2] ss:$0 sm:$0xff] }
 0x130   : > { %1602 = vmatmul.msk.bf16.gmra.mxu1 %vm451_vm3, %v1020_v48  ;;  %v2287_v51 = vadd.f32 %v982_v56, %v904_v2 }
 0x131   : > { %v806_v38 = vpop.f32.mrf.mxu2 }
 0x132   : > { %v827_v35 = vadd.f32 %v806_v38, %v638_v16 }
 0x133   : > { %v984_v46 = vpop.f32.mrf.mxu0 }
 0x135   : > { %v884_v62 = vpop.f32.mrf.mxu3  ;;  %v642_v7 = vpop.f32.mrf.mxu1 }
 0x136   : > { %v905_v17 = vadd.f32 %v884_v62, %v827_v35  ;;  %1615 = vmatmul.msk.bf16.gmra.mxu2 %vm451_vm3, %v1647_v24  ;;  %v643_v44 = vadd.f32 %v642_v7, %v2173_v0 }
 0x138   : > { %v2296_v15 = vadd.f32 %v984_v46, %v905_v17 }
 0x139   : > { %v809_v31 = vpop.f32.mrf.mxu2 }
 0x13a   : > { %1624 = vmatmul.msk.bf16.gmra.mxu3 %vm451_vm3, %v1198_v22  ;;  %v828_v18 = vadd.f32 %v809_v31, %v641_v9 }
 0x13b   : > { %v987_v43 = vpop.f32.mrf.mxu0 }
 0x13d   : > { %v887_v54 = vpop.f32.mrf.mxu3  ;;  %v1036_v21 = vpop.f32.mrf.mxu1 }
 0x13e   : > { %1634 = vmatmul.msk.bf16.gmra.mxu0 %vm451_vm3, %v1282_v40  ;;  %v906_v23 = vadd.f32 %v887_v54, %v828_v18  ;;  %v1076_v11 = vadd.f32 %v1036_v21, %v2183_v5 }
 0x140   : > { %v2301_v60 = vadd.f32 %v987_v43, %v906_v23 }
 0x141   : > { %v811_v32 = vpop.f32.mrf.mxu2 }
 0x142   : > { %v829_v55 = vadd.f32 %v811_v32, %v643_v44 }
 0x143   : > { %v989_v10 = vpop.f32.mrf.mxu0 }
 0x145   : > { %v889_v37 = vpop.f32.mrf.mxu3  ;;  %v1038_v41 = vpop.f32.mrf.mxu1 }
 0x146   : > { %v907_v26 = vadd.f32 %v889_v37, %v829_v55  ;;  %v1077_v0 = vadd.f32 %v1038_v41, %v2187_v14 }
 0x148   : > { %v2304_v12 = vadd.f32 %v989_v10, %v907_v26 }
 0x149   : > { %v1114_v45 = vpop.f32.mrf.mxu2 }
 0x14a   : > { %v1154_v48 = vadd.f32 %v1114_v45, %v1076_v11 }
 0x14b   : > { %v1298_v49 = vpop.f32.mrf.mxu0 }
 0x14d   : > { %v1214_v47 = vpop.f32.mrf.mxu3  ;;  %v1041_v56 = vpop.f32.mrf.mxu1 }
 0x14e   : > { %v1254_v29 = vadd.f32 %v1214_v47, %v1154_v48  ;;  %v1078_v4 = vadd.f32 %v1041_v56, %v2196_v33 }
 0x150   : > { %v1338_v8 = vadd.f32 %v1298_v49, %v1254_v29 }
 0x151   : > { %v1116_v34 = vpop.f32.mrf.mxu2 }
 0x152   : > { %v1155_v20 = vadd.f32 %v1116_v34, %v1077_v0  ;;  %v1358_v39 = vmul.f32 %v2310_v57, %v1338_v8 }
 0x153   : > { %v1300_v5 = vpop.f32.mrf.mxu0 }
 0x154   : > { %v1378_v38 = vadd.f32 %v2316_v59, %v1358_v39 }
 0x155   : > { %v1216_v2 = vpop.f32.mrf.mxu3  ;;  %v1043_v42 = vpop.f32.mrf.mxu1 }
 0x156   : > { %v1255_v14 = vadd.f32 %v1216_v2, %v1155_v20  ;;  %v1394_v53 = vmax.f32 %v1378_v38, 0.0  ;;  %v1079_v17 = vadd.f32 %v1043_v42, %v2201_v52 }
 0x158   : > { %v1339_v27 = vadd.f32 %v1300_v5, %v1255_v14 }
 0x159   : > { %v1119_v16 = vpop.f32.mrf.mxu2 }
 0x15a   : > { %v1359_v35 = vmul.f32 %v2310_v57, %v1339_v27  ;;  %v1156_v24 = vadd.f32 %v1119_v16, %v1078_v4 }
 0x15b   : > { %v1303_v1 = vpop.f32.mrf.mxu0 }
 0x15c   : > { %v1379_v6 = vadd.f32 %v2316_v59, %v1359_v35 }
 0x15d   : > { %v1219_v46 = vpop.f32.mrf.mxu3  ;;  %v1046_v36 = vpop.f32.mrf.mxu1 }
 0x15e   : > { %v1395_v62 = vmax.f32 %v1379_v6, 0.0  ;;  %v1256_v7 = vadd.f32 %v1219_v46, %v1156_v24  ;;  %v1080_v21 = vadd.f32 %v1046_v36, %v2210_v3 }
 0x160   : > { %v1651_v33 = vpack.c.bf16 %v1395_v62, %v1394_v53  ;;  %v1340_v30 = vadd.f32 %v1303_v1, %v1256_v7 }
 0x161   : > { %v1121_v22 = vpop.f32.mrf.mxu2 }
 0x162   : > { %1652 = vst [vmem:[%s2326_s22] sm:$0xff] %v1651_v33   ;;  %v1157_v63 = vadd.f32 %v1121_v22, %v1079_v17  ;;  %v1360_v18 = vmul.f32 %v2310_v57, %v1340_v30 }
 0x163   : > { %v1305_v9 = vpop.f32.mrf.mxu0 }
 0x164   : > { %v1380_v44 = vadd.f32 %v2316_v59, %v1360_v18 }
 0x165   : > { %v1221_v31 = vpop.f32.mrf.mxu3  ;;  %v1048_v40 = vpop.f32.mrf.mxu1 }
 0x166   : > { %v1257_v43 = vadd.f32 %v1221_v31, %v1157_v63  ;;  %v1396_v26 = vmax.f32 %v1380_v44, 0.0  ;;  %v1081_v49 = vadd.f32 %v1048_v40, %v2215_v19 }
 0x168   : > { %v1341_v54 = vadd.f32 %v1305_v9, %v1257_v43 }
 0x169   : > { %v1124_v23 = vpop.f32.mrf.mxu2 }
 0x16a   : > { %v1361_v32 = vmul.f32 %v2310_v57, %v1341_v54  ;;  %v1158_v52 = vadd.f32 %v1124_v23, %v1080_v21 }
 0x16b   : > { %v1308_v55 = vpop.f32.mrf.mxu0 }
 0x16c   : > { %v1381_v10 = vadd.f32 %v2316_v59, %v1361_v32 }
 0x16d   : > { %v1224_v37 = vpop.f32.mrf.mxu3  ;;  %v1051_v41 = vpop.f32.mrf.mxu1 }
 0x16e   : > { %v1397_v11 = vmax.f32 %v1381_v10, 0.0  ;;  %v1258_v45 = vadd.f32 %v1224_v37, %v1158_v52  ;;  %v1082_v2 = vadd.f32 %v1051_v41, %v2223_v13 }
 0x170   : > { %v1656_v48 = vpack.c.bf16 %v1397_v11, %v1396_v26  ;;  %v1342_v3 = vadd.f32 %v1308_v55, %v1258_v45 }
 0x171   : > { %v1126_v47 = vpop.f32.mrf.mxu2 }
 0x172   : > { %1688 = vst [vmem:[%s2326_s22 + $0x8] sm:$0xff] %v1656_v48   ;;  %v1159_v56 = vadd.f32 %v1126_v47, %v1081_v49  ;;  %v1362_v8 = vmul.f32 %v2310_v57, %v1342_v3 }
 0x173   : > { %v1310_v29 = vpop.f32.mrf.mxu0 }
 0x174   : > { %v1382_v39 = vadd.f32 %v2316_v59, %v1362_v8 }
 0x175   : > { %v1226_v0 = vpop.f32.mrf.mxu3  ;;  %v1053_v34 = vpop.f32.mrf.mxu1 }
 0x176   : > { %v1259_v20 = vadd.f32 %v1226_v0, %v1159_v56  ;;  %v1398_v35 = vmax.f32 %v1382_v39, 0.0  ;;  %v1083_v46 = vadd.f32 %v1053_v34, %v2228_v28 }
 0x178   : > { %v1343_v5 = vadd.f32 %v1310_v29, %v1259_v20 }
 0x179   : > { %v1129_v42 = vpop.f32.mrf.mxu2 }
 0x17a   : > { %v1363_v14 = vmul.f32 %v2310_v57, %v1343_v5  ;;  %v1160_v19 = vadd.f32 %v1129_v42, %v1082_v2 }
 0x17b   : > { %v1313_v27 = vpop.f32.mrf.mxu0 }
 0x17c   : > { %v1383_v4 = vadd.f32 %v2316_v59, %v1363_v14 }
 0x17d   : > { %v1229_v16 = vpop.f32.mrf.mxu3  ;;  %v1056_v38 = vpop.f32.mrf.mxu1 }
 0x17e   : > { %v1399_v24 = vmax.f32 %v1383_v4, 0.0  ;;  %v1260_v1 = vadd.f32 %v1229_v16, %v1160_v19  ;;  %v1084_v63 = vadd.f32 %v1056_v38, %v2237_v25 }
 0x180   : > { %v1661_v6 = vpack.c.bf16 %v1399_v24, %v1398_v35  ;;  %v1344_v13 = vadd.f32 %v1313_v27, %v1260_v1 }
 0x181   : > { %v1131_v36 = vpop.f32.mrf.mxu2 }
 0x182   : > { %1689 = vst [vmem:[%s2326_s22 + $0x10] sm:$0xff] %v1661_v6   ;;  %v1161_v53 = vadd.f32 %v1131_v36, %v1083_v46  ;;  %v1364_v17 = vmul.f32 %v2310_v57, %v1344_v13 }
 0x183   : > { %v1315_v62 = vpop.f32.mrf.mxu0 }
 0x184   : > { %v1384_v31 = vadd.f32 %v2316_v59, %v1364_v17 }
 0x185   : > { %v1231_v7 = vpop.f32.mrf.mxu3  ;;  %v1058_v33 = vpop.f32.mrf.mxu1 }
 0x186   : > { %v1261_v22 = vadd.f32 %v1231_v7, %v1161_v53  ;;  %v1400_v23 = vmax.f32 %v1384_v31, 0.0  ;;  %v1085_v55 = vadd.f32 %v1058_v33, %v2242_v58 }
 0x188   : > { %v1345_v30 = vadd.f32 %v1315_v62, %v1261_v22 }
 0x189   : > { %v1134_v9 = vpop.f32.mrf.mxu2 }
 0x18a   : > { %v1365_v40 = vmul.f32 %v2310_v57, %v1345_v30  ;;  %v1162_v28 = vadd.f32 %v1134_v9, %v1084_v63 }
 0x18b   : > { %v1318_v18 = vpop.f32.mrf.mxu0 }
 0x18c   : > { %v1385_v43 = vadd.f32 %v2316_v59, %v1365_v40 }
 0x18d   : > { %v1234_v54 = vpop.f32.mrf.mxu3  ;;  %v1061_v21 = vpop.f32.mrf.mxu1 }
 0x18e   : > { %v1401_v44 = vmax.f32 %v1385_v43, 0.0  ;;  %v1262_v32 = vadd.f32 %v1234_v54, %v1162_v28  ;;  %v1086_v47 = vadd.f32 %v1061_v21, %v2264_v61 }
 0x190   : > { %v1666_v52 = vpack.c.bf16 %v1401_v44, %v1400_v23  ;;  %v1346_v25 = vadd.f32 %v1318_v18, %v1262_v32 }
 0x191   : > { %v1136_v10 = vpop.f32.mrf.mxu2 }
 0x192   : > { %1690 = vst [vmem:[%s2326_s22 + $0x18] sm:$0xff] %v1666_v52   ;;  %v1163_v37 = vadd.f32 %v1136_v10, %v1085_v55  ;;  %v1366_v45 = vmul.f32 %v2310_v57, %v1346_v25 }
 0x193   : > { %v1320_v41 = vpop.f32.mrf.mxu0 }
 0x194   : > { %v1386_v56 = vadd.f32 %v2316_v59, %v1366_v45 }
 0x195   : > { %v1236_v26 = vpop.f32.mrf.mxu3  ;;  %v1063_v11 = vpop.f32.mrf.mxu1 }
 0x196   : > { %v1263_v48 = vadd.f32 %v1236_v26, %v1163_v37  ;;  %v1402_v20 = vmax.f32 %v1386_v56, 0.0  ;;  %v1087_v14 = vadd.f32 %v1063_v11, %v2274_v50 }
 0x198   : > { %v1347_v49 = vadd.f32 %v1320_v41, %v1263_v48 }
 0x199   : > { %v1139_v3 = vpop.f32.mrf.mxu2 }
 0x19a   : > { %v1367_v29 = vmul.f32 %v2310_v57, %v1347_v49  ;;  %v1164_v58 = vadd.f32 %v1139_v3, %v1086_v47 }
 0x19b   : > { %v1323_v0 = vpop.f32.mrf.mxu0 }
 0x19c   : > { %v1387_v34 = vadd.f32 %v2316_v59, %v1367_v29 }
 0x19d   : > { %v1239_v8 = vpop.f32.mrf.mxu3  ;;  %v1066_v42 = vpop.f32.mrf.mxu1 }
 0x19e   : > { %v1403_v5 = vmax.f32 %v1387_v34, 0.0  ;;  %v1264_v2 = vadd.f32 %v1239_v8, %v1164_v58  ;;  %v1088_v1 = vadd.f32 %v1066_v42, %v2287_v51 }
 0x1a0   : > { %v1671_v39 = vpack.c.bf16 %v1403_v5, %v1402_v20  ;;  %v1348_v61 = vadd.f32 %v1323_v0, %v1264_v2 }
 0x1a1   : > { %v1141_v19 = vpop.f32.mrf.mxu2 }
 0x1a2   : > { %1691 = vst [vmem:[%s2326_s22 + $0x20] sm:$0xff] %v1671_v39   ;;  %v1165_v27 = vadd.f32 %v1141_v19, %v1087_v14  ;;  %v1368_v38 = vmul.f32 %v2310_v57, %v1348_v61 }
 0x1a3   : > { %v1325_v4 = vpop.f32.mrf.mxu0 }
 0x1a4   : > { %v1388_v36 = vadd.f32 %v2316_v59, %v1368_v38 }
 0x1a5   : > { %v1241_v16 = vpop.f32.mrf.mxu3  ;;  %v1068_v6 = vpop.f32.mrf.mxu1 }
 0x1a6   : > { %v1265_v35 = vadd.f32 %v1241_v16, %v1165_v27  ;;  %v1404_v33 = vmax.f32 %v1388_v36, 0.0  ;;  %v1089_v63 = vadd.f32 %v1068_v6, %v2296_v15 }
 0x1a8   : > { %v1349_v24 = vadd.f32 %v1325_v4, %v1265_v35 }
 0x1a9   : > { %v1144_v46 = vpop.f32.mrf.mxu2 }
 0x1aa   : > { %v1369_v13 = vmul.f32 %v2310_v57, %v1349_v24  ;;  %v1166_v50 = vadd.f32 %v1144_v46, %v1088_v1 }
 0x1ab   : > { %v1328_v53 = vpop.f32.mrf.mxu0 }
 0x1ac   : > { %v1389_v62 = vadd.f32 %v2316_v59, %v1369_v13 }
 0x1ad   : > { %v1244_v7 = vpop.f32.mrf.mxu3  ;;  %v1071_v40 = vpop.f32.mrf.mxu1 }
 0x1ae   : > { %v1405_v17 = vmax.f32 %v1389_v62, 0.0  ;;  %v1266_v22 = vadd.f32 %v1244_v7, %v1166_v50  ;;  %v1090_v23 = vadd.f32 %v1071_v40, %v2301_v60 }
 0x1b0   : > { %v1676_v30 = vpack.c.bf16 %v1405_v17, %v1404_v33  ;;  %v1350_v51 = vadd.f32 %v1328_v53, %v1266_v22 }
 0x1b1   : > { %v1146_v9 = vpop.f32.mrf.mxu2 }
 0x1b2   : > { %1692 = vst [vmem:[%s2326_s22 + $0x28] sm:$0xff] %v1676_v30   ;;  %v1167_v31 = vadd.f32 %v1146_v9, %v1089_v63  ;;  %v1370_v43 = vmul.f32 %v2310_v57, %v1350_v51 }
 0x1b3   : > { %v1330_v28 = vpop.f32.mrf.mxu0 }
 0x1b4   : > { %v1390_v32 = vadd.f32 %v2316_v59, %v1370_v43 }
 0x1b5   : > { %v1246_v18 = vpop.f32.mrf.mxu3  ;;  %v1073_v10 = vpop.f32.mrf.mxu1 }
 0x1b6   : > { %v1267_v54 = vadd.f32 %v1246_v18, %v1167_v31  ;;  %v1406_v41 = vmax.f32 %v1390_v32, 0.0  ;;  %v1091_v48 = vadd.f32 %v1073_v10, %v2304_v12 }
 0x1b8   : > { %v1351_v21 = vadd.f32 %v1330_v28, %v1267_v54 }
 0x1b9   : > { %v1149_v44 = vpop.f32.mrf.mxu2 }
 0x1ba   : > { %v1371_v52 = vmul.f32 %v2310_v57, %v1351_v21  ;;  %v1168_v15 = vadd.f32 %v1149_v44, %v1090_v23 }
 0x1bb   : > { %v1333_v25 = vpop.f32.mrf.mxu0 }
 0x1bc   : > { %v1391_v55 = vadd.f32 %v2316_v59, %v1371_v52 }
 0x1bd   : > { %v1249_v37 = vpop.f32.mrf.mxu3 }
 0x1be   : > { %v1407_v26 = vmax.f32 %v1391_v55, 0.0  ;;  %v1268_v11 = vadd.f32 %v1249_v37, %v1168_v15 }
 0x1c0   : > { %v1681_v45 = vpack.c.bf16 %v1407_v26, %v1406_v41  ;;  %v1352_v60 = vadd.f32 %v1333_v25, %v1268_v11 }
 0x1c1   : > { %v1151_v49 = vpop.f32.mrf.mxu2 }
 0x1c2   : > { %1693 = vst [vmem:[%s2326_s22 + $0x30] sm:$0xff] %v1681_v45   ;;  %v1169_v47 = vadd.f32 %v1151_v49, %v1091_v48  ;;  %v1372_v56 = vmul.f32 %v2310_v57, %v1352_v60 }
 0x1c3   : > { %v1335_v58 = vpop.f32.mrf.mxu0 }
 0x1c4   : > { %v1392_v34 = vadd.f32 %v2316_v59, %v1372_v56 }
 0x1c5   : > { %v1251_v3 = vpop.f32.mrf.mxu3 }
 0x1c6   : > { %v1269_v29 = vadd.f32 %v1251_v3, %v1169_v47  ;;  %v1408_v5 = vmax.f32 %v1392_v34, 0.0 }
 0x1c8   : > { %v1353_v0 = vadd.f32 %v1335_v58, %v1269_v29 }
 0x1ca   : > { %v1373_v8 = vmul.f32 %v2310_v57, %v1353_v0 }
 0x1cc   : > { %v1393_v20 = vadd.f32 %v2316_v59, %v1373_v8 }
 0x1ce   : > { %v1409_v2 = vmax.f32 %v1393_v20, 0.0 }
 0x1d0   : > { %v1686_v12 = vpack.c.bf16 %v1409_v2, %v1408_v5 }
 0x1d2   : > { %1694 = vst [vmem:[%s2326_s22 + $0x38] sm:$0xff] %v1686_v12  }
 0x1d3 PF: > { %s14_s15 = sadd.s32 1, %s1715_s15  }
 0x1d4   : > { %p11_p4 = scmp.ge.s32.totalorder %s14_s15, 6  }
 0x1d6   :  { %13 = sbr.rel (!%p11_p4) target bundleno = 1 (0x1), region = 74 }

// kernel: unet_block_forward.6
= control target key start
LH: loop header
LB: loop body
LE: loop exit
PB: predicated region body
PF: predicated region fallthrough
CT: control target
= control target key end

     0   :  { %s1599_s9 = smov 0   ;;  %s2224_s0 = inlined_call_operand.vmem [shape: bf16[4,10,18,8], index: 0, kind: input, shape index: {}]   ;;  %s2225_s1 = inlined_call_operand.vmem [shape: bf16[9,8,128], index: 1, kind: input, shape index: {}]   ;;  %s2226_s2 = inlined_call_operand.vmem [shape: f32[4,2,128], index: 2, kind: output, shape index: {}]  }
   0x1 LB: > { %s1413_s10 = sadd.s32 4294967295, %s1581_s9   ;;  %p1417_p0 = scmp.ge.s32.totalorder %s1581_s9, 1  ;;  %s1581_s9 = sphi %s1599_s9, %s12_s9  }
   0x2   : > { %p112_p1 = scmp.lt.s32.totalorder %s1581_s9, 5 }
   0x4   : > { %p113_p2 = pnand %p1417_p0, %p112_p1 }
   0x5   : > { %p133_p3 = scmp.lt.s32.totalorder (!%p113_p2), %s1413_s10, 3 }
   0x6   : > { %116 = sbr.rel (%p113_p2) target bundleno = 638 (0x27e), region = 28 }
   0xb   : > { %v1420_v0 = vld [vmem:[%s2225_s1 + $0x4] sm:$0xf]  ;;  %vm420_vm0 = vcmask 1043456   ;;  %s2232_s10 = smov (!%p133_p3, %s1413_s10), 3  ;;  %vm174_vm1 = vsmask.f32 3328 }
   0xc   : > { %v422_v1 = vsel %vm420_vm0, %v1420_v0, 0  ;;  %s1565_s13 = smul.u32 120, %s2232_s10  ;;  %vm175_vm2 = vsmask.f32 7440  ;;  %vm395_vm3 = vcmask 64512   ;;  %vm597_vm5 = vcmask 1042432  }
   0xd   : > { %1562 = vmatpush.bf16.msra.mxu1 %v422_v1  ;;  %1563 = vmatpush.bf16.msra.mxu2 %v422_v1  ;;  %vm1655_vm4 = vmor %vm174_vm1, %vm175_vm2  ;;  %vm598_vm6 = vcmask 1046532   ;;  %s1419_s5 = sshll.u32 %s2232_s10, 1  ;;  %vm1357_vm8 = vcmask 1040384  }
   0xe   : > { %1564 = vmatpush.bf16.msra.mxu3 %v422_v1  ;;  %431 = vmatpush.bf16.msra.mxu0 %v422_v1  ;;  %s1617_s16 = scalar_lea.vmem %s2224_s0, %s1565_s13  ;;  %vm1805_vm7 = vmor %vm597_vm5, %vm598_vm6  ;;  %s141_s8 = scalar_lea.vmem %s2226_s2, %s1419_s5 }
   0xf   : > { %v1620_v2 = vld [vmem:[%s1617_s16 + $0xc] sm:$0xf]  ;;  %v1623_v3 = vld [vmem:[%s1617_s16 + $0x10] sm:$0xf]  ;;  %v1626_v4 = vld [vmem:[%s1617_s16 + $0x14] sm:$0x1] }
  0x10   : > { %v202_v5 = vshrl.u32 %v1620_v2, 16  ;;  %v205_v6 = vshll.u32 %v1620_v2, 16  ;;  %v211_v7 = vshll.u32 %v1623_v3, 16  ;;  %v215_v8 = vshrl.u32 %v1623_v3, 16  ;;  %v1633_v9 = vld [vmem:[%s1617_s16 + $0x24] sm:$0xf] }
  0x11   : > { %v221_v10 = vshll.u32 %v1626_v4, 16  ;;  %v1637_v11 = vld [vmem:[%s1617_s16 + $0x28] sm:$0xf]  ;;  %v1640_v12 = vld [vmem:[%s1617_s16 + $0x2c] sm:$0x1]  ;;  %v250_v13 = vshrl.u32 %v1633_v9, 16 }
  0x12   : > { %v204_v14 = vrot.slane %v202_v5, 4  ;;  %v207_v15 = vrot.slane %v205_v6, 5  ;;  %v213_v16 = vrot.slane %v211_v7, 5  ;;  %v217_v17 = vrot.slane %v215_v8, 4  ;;  %v1644_v18 = vld [vmem:[%s1617_s16 + $0x3c] sm:$0xf] }
  0x13   : > { %v223_v19 = vrot.slane %v221_v10, 5  ;;  %v252_v20 = vrot.slane %v250_v13, 4  ;;  %v253_v21 = vshll.u32 %v1633_v9, 16  ;;  %v259_v22 = vshll.u32 %v1637_v11, 16  ;;  %v1651_v27 = vld [vmem:[%s1617_s16 + $0x40] sm:$0xf] }
  0x14   : > { %v208_v23 = vor.u32 %v207_v15, %v204_v14  ;;  %v218_v24 = vor.u32 %v217_v17, %v213_v16  ;;  %v263_v25 = vshrl.u32 %v1637_v11, 16  ;;  %v269_v26 = vshll.u32 %v1640_v12, 16  ;;  %v1662_v38 = vld [vmem:[%s1617_s16 + $0x44] sm:$0x1]  ;;  %v1671_v46 = vld [vmem:[%s1617_s16 + $0x18] sm:$0xf] }
  0x15   : > { %v255_v29 = vrot.slane %v253_v21, 5  ;;  %v261_v30 = vrot.slane %v259_v22, 5  ;;  %v298_v31 = vshrl.u32 %v1644_v18, 16  ;;  %v301_v32 = vshll.u32 %v1644_v18, 16  ;;  %v1679_v58 = vld [vmem:[%s1617_s16 + $0x1c] sm:$0xf] }
  0x16   : > { %v209_v33 = vrot.slane %v208_v23, 4  ;;  %v219_v34 = vrot.slane %v218_v24, 4  ;;  %v265_v35 = vrot.slane %v263_v25, 4  ;;  %v271_v36 = vrot.slane %v269_v26, 5  ;;  %v1685_v0 = vld [vmem:[%s1617_s16 + $0x20] sm:$0x1] }
  0x17   : > { %v256_v37 = vor.u32 %v255_v29, %v252_v20  ;;  %v300_v39 = vrot.slane %v298_v31, 4  ;;  %v303_v40 = vrot.slane %v301_v32, 5  ;;  %v307_v41 = vshll.u32 %v1651_v27, 16  ;;  %v1688_v1 = vld [vmem:[%s1617_s16 + $0x30] sm:$0xf] }
  0x18   : > { %v214_v42 = vsel %vm1655_vm4, %v209_v33, %v213_v16  ;;  %v224_v43 = vsel %vm1655_vm4, %v219_v34, %v223_v19  ;;  %v266_v44 = vor.u32 %v265_v35, %v261_v30  ;;  %v311_v45 = vshrl.u32 %v1651_v27, 16  ;;  %v1698_v16 = vld [vmem:[%s1617_s16 + $0x34] sm:$0xf]  ;;  %v1704_v21 = vld [vmem:[%s1617_s16 + $0x38] sm:$0x1] }
  0x19   : > { %v373_v47 = vunpack.c.l.b16 %v214_v42  ;;  %v374_v48 = vunpack.c.l.b16 %v224_v43  ;;  %v257_v49 = vrot.slane %v256_v37, 4  ;;  %v304_v50 = vor.u32 %v303_v40, %v300_v39  ;;  %v1711_v29 = vld [vmem:[%s1617_s16 + $0x48] sm:$0xf]  ;;  %v1721_v42 = vld [vmem:[%s1617_s16 + $0x4c] sm:$0xf] }
  0x1a   : > { %v267_v51 = vrot.slane %v266_v44, 4  ;;  %v309_v52 = vrot.slane %v307_v41, 5  ;;  %v313_v53 = vrot.slane %v311_v45, 4  ;;  %v317_v54 = vshll.u32 %v1662_v38, 16 }
  0x1b   : > { %v1674_v55 = vpack.c.b16 %v374_v48, %v373_v47  ;;  %v262_v56 = vsel %vm1655_vm4, %v257_v49, %v261_v30  ;;  %v305_v57 = vrot.slane %v304_v50, 4  ;;  %v226_v59 = vshrl.u32 %v1671_v46, 16  ;;  %v1725_v49 = vld [vmem:[%s1617_s16 + $0x50] sm:$0x1] }
  0x1c   : > { %v272_v60 = vsel %vm1655_vm4, %v267_v51, %v271_v36  ;;  %v377_v61 = vunpack.c.l.b16 %v262_v56  ;;  %v314_v62 = vor.u32 %v313_v53, %v309_v52  ;;  %v319_v63 = vrot.slane %v317_v54, 5  ;;  %v173_v54 = vld [vmem:[%s2225_s1] sm:$0xf] }
  0x1d   : > { %1422 = vmatmul.msk.bf16.vlgmr.msra.gmra.mxu1 %vm395_vm3, %v1674_v55  ;;  %v378_v5 = vunpack.c.l.b16 %v272_v60  ;;  %v310_v6 = vsel %vm1655_vm4, %v305_v57, %v309_v52  ;;  %v228_v7 = vrot.slane %v226_v59, 4  ;;  %v229_v8 = vshll.u32 %v1671_v46, 16 }
  0x1e   : > { %v315_v10 = vrot.slane %v314_v62, 4  ;;  %v381_v13 = vunpack.c.l.b16 %v310_v6  ;;  %v235_v14 = vshll.u32 %v1679_v58, 16  ;;  %v239_v15 = vshrl.u32 %v1679_v58, 16  ;;  %v1477_v6 = vld [vmem:[%s2225_s1 + $0x8] sm:$0xf] }
  0x1f   : > { %v1700_v17 = vpack.c.b16 %v378_v5, %v377_v61  ;;  %v231_v19 = vrot.slane %v229_v8, 5  ;;  %v245_v20 = vshll.u32 %v1685_v0, 16  ;;  %v274_v22 = vshrl.u32 %v1688_v1, 16 }
  0x20   : > { %v320_v23 = vsel %vm1655_vm4, %v315_v10, %v319_v63  ;;  %v237_v24 = vrot.slane %v235_v14, 5  ;;  %v241_v25 = vrot.slane %v239_v15, 4  ;;  %v277_v26 = vshll.u32 %v1688_v1, 16  ;;  %v1747_v14 = vld [vmem:[%s1617_s16] sm:$0xf] }
  0x21   : > { %1424 = vmatmul.msk.bf16.vlgmr.msra.gmra.mxu2 %vm395_vm3, %v1700_v17  ;;  %v382_v30 = vunpack.c.l.b16 %v320_v23  ;;  %v232_v31 = vor.u32 %v231_v19, %v228_v7  ;;  %v247_v32 = vrot.slane %v245_v20, 5  ;;  %v276_v33 = vrot.slane %v274_v22, 4  ;;  %v1752_v23 = vld [vmem:[%s1617_s16 + $0x4] sm:$0xf] }
  0x22   : > { %v242_v34 = vor.u32 %v241_v25, %v237_v24  ;;  %v279_v35 = vrot.slane %v277_v26, 5  ;;  %v283_v36 = vshll.u32 %v1698_v16, 16  ;;  %v287_v37 = vshrl.u32 %v1698_v16, 16 }
  0x23   : > { %v1717_v39 = vpack.c.b16 %v382_v30, %v381_v13  ;;  %v233_v40 = vrot.slane %v232_v31, 4  ;;  %v293_v41 = vshll.u32 %v1704_v21, 16  ;;  %v322_v43 = vshrl.u32 %v1711_v29, 16 }
  0x24   : > { %v243_v44 = vrot.slane %v242_v34, 4  ;;  %v280_v45 = vor.u32 %v279_v35, %v276_v33  ;;  %v285_v47 = vrot.slane %v283_v36, 5  ;;  %v289_v48 = vrot.slane %v287_v37, 4 }
  0x25   : > { %1426 = vmatmul.msk.bf16.vlgmr.msra.gmra.mxu3 %vm395_vm3, %v1717_v39  ;;  %v238_v50 = vsel %vm1655_vm4, %v233_v40, %v237_v24  ;;  %v295_v51 = vrot.slane %v293_v41, 5  ;;  %v324_v52 = vrot.slane %v322_v43, 4  ;;  %v325_v53 = vshll.u32 %v1711_v29, 16  ;;  %v1755_v24 = vld [vmem:[%s1617_s16 + $0x8] sm:$0x1] }
  0x26   : > { %v248_v56 = vsel %vm1655_vm4, %v243_v44, %v247_v32  ;;  %v375_v57 = vunpack.c.l.b16 %v238_v50  ;;  %v281_v59 = vrot.slane %v280_v45, 4  ;;  %v290_v60 = vor.u32 %v289_v48, %v285_v47  ;;  %v1766_v43 = vld [vmem:[%s1617_s16 + $0x54] sm:$0xf]  ;;  %v1775_v50 = vld [vmem:[%s1617_s16 + $0x58] sm:$0xf] }
  0x27   : > { %v376_v61 = vunpack.c.l.b16 %v248_v56  ;;  %v327_v62 = vrot.slane %v325_v53, 5  ;;  %v331_v63 = vshll.u32 %v1721_v42, 16  ;;  %v335_v5 = vshrl.u32 %v1721_v42, 16 }
  0x28   : > { %v286_v7 = vsel %vm1655_vm4, %v281_v59, %v285_v47  ;;  %v291_v8 = vrot.slane %v290_v60, 4  ;;  %v341_v10 = vshll.u32 %v1725_v49, 16  ;;  %v538_v13 = vsel %vm420_vm0, %v173_v54, 0  ;;  %v1779_v60 = vld [vmem:[%s1617_s16 + $0x5c] sm:$0x1] }
  0x29   : > { %v1749_v15 = vpack.c.b16 %v376_v61, %v375_v57  ;;  %v379_v19 = vunpack.c.l.b16 %v286_v7  ;;  %v328_v20 = vor.u32 %v327_v62, %v324_v52  ;;  %v333_v22 = vrot.slane %v331_v63, 5  ;;  %547 = vmatpush.bf16.msrb.mxu1 %v538_v13 }
  0x2a   : > { %v296_v25 = vsel %vm1655_vm4, %v291_v8, %v295_v51  ;;  %v337_v26 = vrot.slane %v335_v5, 4  ;;  %v343_v30 = vrot.slane %v341_v10, 5  ;;  %v707_v31 = vsel %vm420_vm0, %v1477_v6, 0 }
  0x2b   : > { %v380_v32 = vunpack.c.l.b16 %v296_v25  ;;  %v329_v33 = vrot.slane %v328_v20, 4  ;;  %716 = vmatpush.bf16.msrb.mxu2 %v707_v31  ;;  %v178_v34 = vshrl.u32 %v1747_v14, 16  ;;  %v181_v35 = vshll.u32 %v1747_v14, 16  ;;  %v1486_v31 = vld [vmem:[%s2225_s1 + $0xc] sm:$0xf] }
  0x2c   : > { %v338_v36 = vor.u32 %v337_v26, %v333_v22  ;;  %v187_v37 = vshll.u32 %v1752_v23, 16  ;;  %v191_v40 = vshrl.u32 %v1752_v23, 16  ;;  %v197_v41 = vshll.u32 %v1755_v24, 16 }
  0x2d   : > { %1423 = vmatmul.msk.bf16.gmra.mxu1 %vm395_vm3, %v1749_v15  ;;  %v1770_v44 = vpack.c.b16 %v380_v32, %v379_v19  ;;  %v334_v45 = vsel %vm1655_vm4, %v329_v33, %v333_v22  ;;  %v180_v47 = vrot.slane %v178_v34, 4  ;;  %v183_v48 = vrot.slane %v181_v35, 5  ;;  %v1499_v32 = vld [vmem:[%s2225_s1 + $0x10] sm:$0xf] }
  0x2e   : > { %v339_v51 = vrot.slane %v338_v36, 4  ;;  %v383_v52 = vunpack.c.l.b16 %v334_v45  ;;  %v189_v53 = vrot.slane %v187_v37, 5  ;;  %v193_v54 = vrot.slane %v191_v40, 4 }
  0x2f   : > { %v184_v56 = vor.u32 %v183_v48, %v180_v47  ;;  %v199_v57 = vrot.slane %v197_v41, 5  ;;  %v605_v59 = vrot.slane %v1755_v24, 5  ;;  %v346_v61 = vshrl.u32 %v1766_v43, 16 }
  0x30   : > { %v344_v62 = vsel %vm1655_vm4, %v339_v51, %v343_v30  ;;  %v194_v63 = vor.u32 %v193_v54, %v189_v53  ;;  %v349_v5 = vshll.u32 %v1766_v43, 16  ;;  %v355_v6 = vshll.u32 %v1775_v50, 16 }
  0x31   : > { %1425 = vmatmul.msk.bf16.gmra.mxu2 %vm395_vm3, %v1770_v44  ;;  %v384_v7 = vunpack.c.l.b16 %v344_v62  ;;  %v185_v8 = vrot.slane %v184_v56, 4  ;;  %v348_v10 = vrot.slane %v346_v61, 4  ;;  %v359_v13 = vshrl.u32 %v1775_v50, 16 }
  0x32   : > { %v195_v19 = vrot.slane %v194_v63, 4  ;;  %v351_v20 = vrot.slane %v349_v5, 5  ;;  %v357_v22 = vrot.slane %v355_v6, 5  ;;  %v365_v24 = vshll.u32 %v1779_v60, 16 }
  0x33   : > { %v1790_v25 = vpack.c.b16 %v384_v7, %v383_v52  ;;  %v190_v26 = vsel %vm1655_vm4, %v185_v8, %v189_v53  ;;  %v361_v30 = vrot.slane %v359_v13, 4  ;;  %v1469_v41 = vrot.slane %v1747_v14, 9  ;;  %v1552_v14 = vld [vmem:[%s1617_s16] sm:$0xff] }
  0x34   : > { %v200_v33 = vsel %vm1655_vm4, %v195_v19, %v199_v57  ;;  %v371_v34 = vunpack.c.l.b16 %v190_v26  ;;  %v352_v35 = vor.u32 %v351_v20, %v348_v10  ;;  %v367_v36 = vrot.slane %v365_v24, 5  ;;  %v1553_v26 = vld [vmem:[%s1617_s16 + $0xc] sm:$0xff] }
  0x35   : > { %1427 = vmatmul.msk.bf16.gmra.mxu3 %vm395_vm3, %v1790_v25  ;;  %v372_v37 = vunpack.c.l.b16 %v200_v33  ;;  %v362_v40 = vor.u32 %v361_v30, %v357_v22  ;;  %v602_v48 = vrot.slane %v1752_v23, 5  ;;  %v785_v51 = vsel %vm420_vm0, %v1486_v31, 0 }
  0x36   : > { %v353_v45 = vrot.slane %v352_v35, 4  ;;  %v885_v52 = vsel %vm420_vm0, %v1499_v32, 0  ;;  %794 = vmatpush.bf16.msrb.mxu3 %v785_v51  ;;  %v609_v10 = vrot.slane %v1623_v3, 5  ;;  %v1470_v19 = vrot.slane %v1620_v2, 9 }
  0x37   : > { %v387_v53 = vpack.c.b16 %v372_v37, %v371_v34  ;;  %v363_v54 = vrot.slane %v362_v40, 4  ;;  %894 = vmatpush.bf16.msrb.mxu0 %v885_v52  ;;  %v603_v56 = vsel %vm1805_vm7, %v1469_v41, %v602_v48  ;;  %v604_v57 = vrot.slane %v602_v48, 4 }
  0x38   : > { %v658_v61 = vunpack.c.l.b16 %v603_v56  ;;  %v358_v62 = vsel %vm1655_vm4, %v353_v45, %v357_v22  ;;  %v611_v20 = vrot.slane %v609_v10, 4  ;;  %v612_v22 = vrot.slane %v1626_v4, 5  ;;  %v1861_v45 = vld [vmem:[%s1617_s16 + $0x18] sm:$0xff] }
  0x39   : > { %1421 = vmatmul.msk.bf16.vlgmr.msra.gmra.mxu0 %vm395_vm3, %v387_v53  ;;  %v368_v23 = vsel %vm1655_vm4, %v363_v54, %v367_v36  ;;  %v606_v63 = vsel %vm1805_vm7, %v604_v57, %v605_v59  ;;  %v385_v6 = vunpack.c.l.b16 %v358_v62  ;;  %v610_v59 = vsel %vm1805_vm7, %v1470_v19, %v609_v10  ;;  %v1518_v19 = vld [vmem:[%s2225_s1 + $0x18] sm:$0xf] }
  0x3a   : > { %v659_v5 = vunpack.c.l.b16 %v606_v63  ;;  %v386_v7 = vunpack.c.l.b16 %v368_v23  ;;  %v613_v24 = vsel %vm1805_vm7, %v611_v20, %v612_v22  ;;  %v660_v3 = vunpack.c.l.b16 %v610_v59 }
  0x3b   : > { %v661_v30 = vunpack.c.l.b16 %v613_v24  ;;  %v623_v2 = vrot.slane %v1637_v11, 5  ;;  %v1472_v31 = vrot.slane %v1633_v9, 9  ;;  %v626_v32 = vrot.slane %v1640_v12, 5 }
  0x3c   : > { %v674_v8 = vpack.c.b16 %v659_v5, %v658_v61  ;;  %v1824_v13 = vpack.c.b16 %v386_v7, %v385_v6  ;;  %v616_v33 = vrot.slane %v1679_v58, 5  ;;  %v1471_v37 = vrot.slane %v1671_v46, 9 }
  0x3d   : > { %1461 = vmatmul.msk.bf16.vlgmr.msrb.gmra.mxu1 %vm395_vm3, %v1552_v14  ;;  %v1840_v4 = vpack.c.b16 %v661_v30, %v660_v3  ;;  %v625_v34 = vrot.slane %v623_v2, 4  ;;  %v624_v35 = vsel %vm1805_vm7, %v1472_v31, %v623_v2  ;;  %v619_v40 = vrot.slane %v1685_v0, 5  ;;  %v1541_v30 = vld [vmem:[%s2225_s1 + $0x20] sm:$0xf]  ;;  %v1946_v2 = vld [vmem:[%s1617_s16 + $0x48] sm:$0xff] }
  0x3e   : > { %v664_v36 = vunpack.c.l.b16 %v624_v35  ;;  %v618_v9 = vrot.slane %v616_v33, 4  ;;  %v617_v58 = vsel %vm1805_vm7, %v1471_v37, %v616_v33  ;;  %v630_v46 = vrot.slane %v1698_v16, 5 }
  0x3f   : > { %v662_v48 = vunpack.c.l.b16 %v617_v58  ;;  %v1473_v52 = vrot.slane %v1688_v1, 9  ;;  %v633_v53 = vrot.slane %v1704_v21, 5  ;;  %v1883_v1 = vld [vmem:[%s1617_s16 + $0x24] sm:$0xff]  ;;  %v1894_v21 = vld [vmem:[%s1617_s16 + $0x30] sm:$0xff]  ;;  %v637_v62 = vrot.slane %v1651_v27, 5 }
  0x40   : > { %v620_v41 = vsel %vm1805_vm7, %v618_v9, %v619_v40  ;;  %v632_v54 = vrot.slane %v630_v46, 4  ;;  %v1474_v23 = vrot.slane %v1644_v18, 9  ;;  %v640_v5 = vrot.slane %v1662_v38, 5 }
  0x41   : > { %1478 = vmatmul.msk.bf16.vlgmr.msrb.gmra.mxu2 %vm395_vm3, %v674_v8  ;;  %v663_v51 = vunpack.c.l.b16 %v620_v41  ;;  %v631_v56 = vsel %vm1805_vm7, %v1473_v52, %v630_v46  ;;  %v639_v63 = vrot.slane %v637_v62, 4  ;;  %v1912_v8 = vld [vmem:[%s1617_s16 + $0x3c] sm:$0xff]  ;;  %v644_v38 = vrot.slane %v1721_v42, 5 }
  0x42   : > { %v634_v57 = vsel %vm1805_vm7, %v632_v54, %v633_v53  ;;  %v666_v14 = vunpack.c.l.b16 %v631_v56  ;;  %v638_v6 = vsel %vm1805_vm7, %v1474_v23, %v637_v62  ;;  %v1047_v20 = vsel %vm420_vm0, %v1518_v19, 0  ;;  %v1531_v42 = vld [vmem:[%s2225_s1 + $0x1c] sm:$0xf] }
  0x43   : > { %v1868_v0 = vpack.c.b16 %v663_v51, %v662_v48  ;;  %v667_v16 = vunpack.c.l.b16 %v634_v57  ;;  %v641_v7 = vsel %vm1805_vm7, %v639_v63, %v640_v5  ;;  %v668_v27 = vunpack.c.l.b16 %v638_v6  ;;  %1056 = vmatpush.bf16.msra.mxu2 %v1047_v20  ;;  %v1976_v57 = vld [vmem:[%s1617_s16 + $0x68] sm:$0x1]  ;;  %v1990_v5 = vld [vmem:[%s1617_s16 + $0x54] sm:$0xff] }
  0x44   : > { %v669_v10 = vunpack.c.l.b16 %v641_v7  ;;  %v1475_v22 = vrot.slane %v1711_v29, 9  ;;  %v646_v59 = vrot.slane %v644_v38, 4  ;;  %v647_v24 = vrot.slane %v1725_v49, 5  ;;  %v1509_v49 = vld [vmem:[%s2225_s1 + $0x14] sm:$0xf] }
  0x45   : > { %1428 = vmatmul.msk.bf16.gmra.mxu3 %vm395_vm3, %v1824_v13  ;;  %v1878_v61 = vpack.c.b16 %v667_v16, %v666_v14  ;;  %v1147_v29 = vsel %vm420_vm0, %v1531_v42, 0  ;;  %v969_v33 = vsel %vm420_vm0, %v1509_v49, 0  ;;  %v651_v37 = vrot.slane %v1775_v50, 5 }
  0x46   : > { %v1918_v18 = vpack.c.b16 %v669_v10, %v668_v27  ;;  %v648_v3 = vsel %vm1805_vm7, %v646_v59, %v647_v24  ;;  %1156 = vmatpush.bf16.msra.mxu3 %v1147_v29  ;;  %978 = vmatpush.bf16.msra.mxu1 %v969_v33  ;;  %v1476_v48 = vrot.slane %v1766_v43, 9  ;;  %v654_v46 = vrot.slane %v1779_v60, 5 }
  0x47   : > { %v653_v51 = vrot.slane %v651_v37, 4  ;;  %v872_v23 = vshll.u32 %v1976_v57, 16 }
  0x48   : > { %v652_v43 = vsel %vm1805_vm7, %v1476_v48, %v651_v37 }
  0x49   : > { %1500 = vmatmul.msk.bf16.vlgmr.msrb.gmra.mxu0 %vm395_vm3, %v1674_v55  ;;  %v627_v55 = vsel %vm1805_vm7, %v625_v34, %v626_v32  ;;  %v671_v32 = vunpack.c.l.b16 %v648_v3  ;;  %v1231_v34 = vsel %vm420_vm0, %v1541_v30, 0  ;;  %v655_v16 = vsel %vm1805_vm7, %v653_v51, %v654_v46 }
  0x4a   : > { %v665_v11 = vunpack.c.l.b16 %v627_v55  ;;  %1240 = vmatpush.bf16.msra.mxu0 %v1231_v34  ;;  %v1955_v55 = vld [vmem:[%s1617_s16 + $0x60] sm:$0xf]  ;;  %v672_v6 = vunpack.c.l.b16 %v652_v43  ;;  %v673_v7 = vunpack.c.l.b16 %v655_v16  ;;  %v874_v19 = vrot.slane %v872_v23, 5 }
  0x4b   : > { %v853_v9 = vshrl.u32 %v1955_v55, 16  ;;  %v856_v40 = vshll.u32 %v1955_v55, 16 }
  0x4c   : > { %v1853_v12 = vpack.c.b16 %v665_v11, %v664_v36  ;;  %v1958_v36 = vld [vmem:[%s1617_s16 + $0x64] sm:$0xf] }
  0x4d   : > { %1462 = vmatmul.msk.bf16.gmra.mxu1 %vm395_vm3, %v1553_v26  ;;  %v862_v58 = vshll.u32 %v1958_v36, 16  ;;  %v866_v41 = vshrl.u32 %v1958_v36, 16  ;;  %v855_v50 = vrot.slane %v853_v9, 4  ;;  %v858_v53 = vrot.slane %v856_v40, 5 }
  0x4f   : > { %v864_v54 = vrot.slane %v862_v58, 5  ;;  %v868_v56 = vrot.slane %v866_v41, 4  ;;  %v859_v60 = vor.u32 %v858_v53, %v855_v50  ;;  %v2025_v58 = vld [vmem:[%s1617_s16 + $0x60] sm:$0xff] }
  0x51   : > { %1479 = vmatmul.msk.bf16.gmra.mxu2 %vm395_vm3, %v1840_v4  ;;  %v869_v62 = vor.u32 %v868_v56, %v864_v54  ;;  %v860_v10 = vrot.slane %v859_v60, 4 }
  0x53   : > { %v865_v59 = vsel %vm1655_vm4, %v860_v10, %v864_v54 }
  0x55   : > { %1491 = vmatmul.msk.bf16.vlgmr.msrb.gmra.mxu3 %vm395_vm3, %v1553_v26  ;;  %v645_v26 = vsel %vm1805_vm7, %v1475_v22, %v644_v38  ;;  %v870_v38 = vrot.slane %v869_v62, 4  ;;  %v1998_v22 = vpack.c.b16 %v673_v7, %v672_v6 }
  0x56   : > { %v670_v31 = vunpack.c.l.b16 %v645_v26  ;;  %v878_v26 = vunpack.c.l.b16 %v865_v59 }
  0x57   : > { %v875_v24 = vsel %vm1655_vm4, %v870_v38, %v874_v19 }
  0x58   : > { %v1962_v11 = vpack.c.b16 %v671_v32, %v670_v31  ;;  %v879_v3 = vunpack.c.l.b16 %v875_v24 }
  0x59   : > { %1501 = vmatmul.msk.bf16.gmra.mxu0 %vm395_vm3, %v1749_v15 }
  0x5a   : > { %v2012_v30 = vpack.c.b16 %v879_v3, %v878_v26 }
  0x5d   : > { %1463 = vmatmul.msk.bf16.gmra.mxu1 %vm395_vm3, %v1861_v45 }
  0x61   : > { %1480 = vmatmul.msk.bf16.gmra.mxu2 %vm395_vm3, %v1868_v0 }
  0x65   : > { %1492 = vmatmul.msk.bf16.gmra.mxu3 %vm395_vm3, %v1861_v45 }
  0x69   : > { %1502 = vmatmul.msk.bf16.gmra.mxu0 %vm395_vm3, %v1700_v17 }
  0x6d   : > { %1464 = vmatmul.msk.bf16.gmra.mxu1 %vm395_vm3, %v1883_v1 }
  0x71   : > { %1481 = vmatmul.msk.bf16.gmra.mxu2 %vm395_vm3, %v1853_v12 }
  0x75   : > { %1493 = vmatmul.msk.bf16.gmra.mxu3 %vm395_vm3, %v1883_v1 }
  0x79   : > { %1503 = vmatmul.msk.bf16.gmra.mxu0 %vm395_vm3, %v1770_v44 }
  0x7d   : > { %1465 = vmatmul.msk.bf16.gmra.mxu1 %vm395_vm3, %v1894_v21 }
  0x81   : > { %1482 = vmatmul.msk.bf16.gmra.mxu2 %vm395_vm3, %v1878_v61 }
  0x85   : > { %1494 = vmatmul.msk.bf16.gmra.mxu3 %vm395_vm3, %v1894_v21 }
  0x89   : > { %1504 = vmatmul.msk.bf16.gmra.mxu0 %vm395_vm3, %v1717_v39 }
  0x8d   : > { %1466 = vmatmul.msk.bf16.gmra.mxu1 %vm395_vm3, %v1912_v8 }
  0x91   : > { %1483 = vmatmul.msk.bf16.gmra.mxu2 %vm395_vm3, %v1918_v18 }
  0x95   : > { %1495 = vmatmul.msk.bf16.gmra.mxu3 %vm395_vm3, %v1912_v8 }
  0x99   : > { %1505 = vmatmul.msk.bf16.gmra.mxu0 %vm395_vm3, %v1790_v25 }
  0x9a   : > { %v1952_v35 = vpop.f32.mrf.mxu1 }
  0x9d   : > { %1467 = vmatmul.msk.bf16.gmra.mxu1 %vm395_vm3, %v1946_v2 }
  0xa1   : > { %1484 = vmatmul.msk.bf16.gmra.mxu2 %vm395_vm3, %v1962_v11 }
  0xa2   : > { %v1973_v52 = vpop.f32.mrf.mxu1 }
  0xa4   : > { %v1978_v14 = vpop.f32.mrf.mxu2 }
  0xa5   : > { %1496 = vmatmul.msk.bf16.gmra.mxu3 %vm395_vm3, %v1946_v2 }
  0xa8   : > { %v1987_v63 = vpop.f32.mrf.mxu3 }
  0xa9   : > { %1506 = vmatmul.msk.bf16.gmra.mxu0 %vm395_vm3, %v1824_v13 }
  0xaa   : > { %v443_v27 = vpop.f32.mrf.mxu1 }
  0xac   : > { %v1994_v20 = vpop.f32.mrf.mxu2 }
  0xad   : > { %1468 = vmatmul.msk.bf16.gmra.mxu1 %vm395_vm3, %v1990_v5 }
  0xb0   : > { %v2004_v42 = vpop.f32.mrf.mxu3 }
  0xb1   : > { %1485 = vmatmul.msk.bf16.gmra.mxu2 %vm395_vm3, %v1998_v22 }
  0xb2   : > { %v445_v29 = vpop.f32.mrf.mxu1 }
  0xb4   : > { %v2008_v49 = vpop.f32.mrf.mxu2 }
  0xb5   : > { %1497 = vmatmul.msk.bf16.gmra.mxu3 %vm395_vm3, %v1990_v5 }
  0xb6   : > { %v433_v31 = vpop.f32.mrf.mxu0 }
  0xb8   : > { %v2014_v32 = vpop.f32.mrf.mxu3 }
  0xb9   : > { %1507 = vmatmul.msk.bf16.gmra.mxu0 %vm395_vm3, %v2012_v30 }
  0xba   : > { %v549_v33 = vpop.f32.mrf.mxu1 }
  0xbb   : > { %v550_v34 = vadd.f32 %v549_v33, %v433_v31 }
  0xbc   : > { %v2018_v37 = vpop.f32.mrf.mxu2 }
  0xbd   : > { %1510 = vmatmul.msk.bf16.vlgmr.msra.gmra.mxu1 %vm395_vm3, %v1840_v4 }
  0xbe   : > { %v435_v9 = vpop.f32.mrf.mxu0 }
  0xc0   : > { %v2022_v40 = vpop.f32.mrf.mxu3 }
  0xc1   : > { %1523 = vmatmul.msk.bf16.vlgmr.msra.gmra.mxu2 %vm395_vm3, %v1861_v45 }
  0xc2   : > { %v551_v41 = vpop.f32.mrf.mxu1 }
  0xc3   : > { %v552_v48 = vadd.f32 %v551_v41, %v435_v9 }
  0xc4   : > { %v718_v51 = vpop.f32.mrf.mxu2 }
  0xc5   : > { %1498 = vmatmul.msk.bf16.gmra.mxu3 %vm395_vm3, %v2025_v58  ;;  %v758_v46 = vadd.f32 %v718_v51, %v550_v34 }
  0xc6   : > { %v896_v50 = vpop.f32.mrf.mxu0 }
  0xc8   : > { %v2031_v53 = vpop.f32.mrf.mxu3 }
  0xc9   : > { %1542 = vmatmul.msk.bf16.vlgmr.msra.gmra.mxu0 %vm395_vm3, %v1868_v0 }
  0xca   : > { %v554_v4 = vpop.f32.mrf.mxu1 }
  0xcb   : > { %v555_v54 = vadd.f32 %v554_v4, %v1952_v35 }
  0xcc   : > { %v720_v56 = vpop.f32.mrf.mxu2 }
  0xcd   : > { %v759_v43 = vadd.f32 %v720_v56, %v552_v48  ;;  %1511 = vmatmul.msk.bf16.gmra.mxu1 %vm395_vm3, %v1868_v0 }
  0xce   : > { %v898_v45 = vpop.f32.mrf.mxu0 }
  0xd0   : > { %v2038_v16 = vpop.f32.mrf.mxu3 }
  0xd1   : > { %1524 = vmatmul.msk.bf16.gmra.mxu2 %vm395_vm3, %v1883_v1 }
  0xd2   : > { %v556_v60 = vpop.f32.mrf.mxu1 }
  0xd3   : > { %v557_v62 = vadd.f32 %v556_v60, %v1973_v52 }
  0xd4   : > { %v723_v23 = vpop.f32.mrf.mxu2 }
  0xd5   : > { %1532 = vmatmul.msk.bf16.vlgmr.msra.gmra.mxu3 %vm395_vm3, %v1749_v15  ;;  %v760_v6 = vadd.f32 %v723_v23, %v555_v54 }
  0xd6   : > { %v901_v35 = vpop.f32.mrf.mxu0 }
  0xd8   : > { %v796_v7 = vpop.f32.mrf.mxu3 }
  0xd9   : > { %v836_v10 = vadd.f32 %v796_v7, %v758_v46  ;;  %1543 = vmatmul.msk.bf16.gmra.mxu0 %vm395_vm3, %v1853_v12 }
  0xda   : > { %v559_v0 = vpop.f32.mrf.mxu1 }
  0xdb   : > { %v560_v38 = vadd.f32 %v559_v0, %v443_v27  ;;  %v2047_v19 = vadd.f32 %v896_v50, %v836_v10 }
  0xdc   : > { %v725_v59 = vpop.f32.mrf.mxu2 }
  0xdd   : > { %v761_v1 = vadd.f32 %v725_v59, %v557_v62  ;;  %1512 = vmatmul.msk.bf16.gmra.mxu1 %vm395_vm3, %v1853_v12 }
  0xde   : > { %v903_v52 = vpop.f32.mrf.mxu0 }
  0xe0   : > { %v798_v24 = vpop.f32.mrf.mxu3 }
  0xe1   : > { %v837_v26 = vadd.f32 %v798_v24, %v759_v43  ;;  %1525 = vmatmul.msk.bf16.gmra.mxu2 %vm395_vm3, %v1894_v21 }
  0xe2   : > { %v561_v15 = vpop.f32.mrf.mxu1 }
  0xe3   : > { %v562_v3 = vadd.f32 %v561_v15, %v445_v29  ;;  %v2053_v31 = vadd.f32 %v898_v45, %v837_v26 }
  0xe4   : > { %v728_v33 = vpop.f32.mrf.mxu2 }
  0xe5   : > { %1533 = vmatmul.msk.bf16.gmra.mxu3 %vm395_vm3, %v1700_v17  ;;  %v762_v27 = vadd.f32 %v728_v33, %v560_v38 }
  0xe6   : > { %v906_v34 = vpop.f32.mrf.mxu0 }
  0xe8   : > { %v801_v9 = vpop.f32.mrf.mxu3 }
  0xe9   : > { %v838_v41 = vadd.f32 %v801_v9, %v760_v6  ;;  %1544 = vmatmul.msk.bf16.gmra.mxu0 %vm395_vm3, %v1878_v61 }
  0xea   : > { %v564_v12 = vpop.f32.mrf.mxu1 }
  0xeb   : > { %v565_v48 = vadd.f32 %v564_v12, %v1978_v14  ;;  %v2060_v51 = vadd.f32 %v901_v35, %v838_v41 }
  0xec   : > { %v730_v21 = vpop.f32.mrf.mxu2 }
  0xed   : > { %v763_v29 = vadd.f32 %v730_v21, %v562_v3  ;;  %1513 = vmatmul.msk.bf16.gmra.mxu1 %vm395_vm3, %v1878_v61 }
  0xee   : > { %v908_v46 = vpop.f32.mrf.mxu0 }
  0xf0   : > { %v803_v50 = vpop.f32.mrf.mxu3 }
  0xf1   : > { %v839_v17 = vadd.f32 %v803_v50, %v761_v1  ;;  %1526 = vmatmul.msk.bf16.gmra.mxu2 %vm395_vm3, %v1912_v8 }
  0xf2   : > { %v566_v4 = vpop.f32.mrf.mxu1 }
  0xf3   : > { %v567_v54 = vadd.f32 %v566_v4, %v1994_v20  ;;  %v2067_v56 = vadd.f32 %v903_v52, %v839_v17 }
  0xf4   : > { %v733_v43 = vpop.f32.mrf.mxu2 }
  0xf5   : > { %1534 = vmatmul.msk.bf16.gmra.mxu3 %vm395_vm3, %v1770_v44  ;;  %v764_v14 = vadd.f32 %v733_v43, %v565_v48 }
  0xf6   : > { %v911_v45 = vpop.f32.mrf.mxu0 }
  0xf8   : > { %v806_v60 = vpop.f32.mrf.mxu3 }
  0xf9   : > { %v840_v62 = vadd.f32 %v806_v60, %v762_v27  ;;  %1545 = vmatmul.msk.bf16.gmra.mxu0 %vm395_vm3, %v1918_v18 }
  0xfa   : > { %v569_v61 = vpop.f32.mrf.mxu1 }
  0xfb   : > { %v2073_v23 = vadd.f32 %v906_v34, %v840_v62  ;;  %v570_v9 = vadd.f32 %v569_v61, %v2008_v49 }
  0xfc   : > { %v735_v8 = vpop.f32.mrf.mxu2 }
  0xfd   : > { %v765_v6 = vadd.f32 %v735_v8, %v567_v54  ;;  %1514 = vmatmul.msk.bf16.gmra.mxu1 %vm395_vm3, %v1918_v18 }
  0xfe   : > { %v913_v20 = vpop.f32.mrf.mxu0 }
 0x100   : > { %v808_v35 = vpop.f32.mrf.mxu3 }
 0x101   : > { %v841_v7 = vadd.f32 %v808_v35, %v763_v29  ;;  %1527 = vmatmul.msk.bf16.gmra.mxu2 %vm395_vm3, %v1946_v2  ;;  %v170_v35 = vld [vmem:[%s1617_s16 + $0x6c] sm:$0xf] }
 0x102   : > { %v571_v44 = vpop.f32.mrf.mxu1 }
 0x103   : > { %v572_v10 = vadd.f32 %v571_v44, %v2018_v37  ;;  %v2080_v0 = vadd.f32 %v908_v46, %v841_v7  ;;  %v1508_v46 = vrot.slane %v1955_v55, 9 }
 0x104   : > { %v738_v38 = vpop.f32.mrf.mxu2 }
 0x105   : > { %1535 = vmatmul.msk.bf16.gmra.mxu3 %vm395_vm3, %v1717_v39  ;;  %v766_v48 = vadd.f32 %v738_v38, %v570_v9  ;;  %v1115_v38 = vshrl.u32 %v170_v35, 16 }
 0x106   : > { %v916_v59 = vpop.f32.mrf.mxu0 }
 0x108   : > { %v811_v1 = vpop.f32.mrf.mxu3 }
 0x109   : > { %v842_v52 = vadd.f32 %v811_v1, %v764_v14  ;;  %1546 = vmatmul.msk.bf16.gmra.mxu0 %vm395_vm3, %v1962_v11 }
 0x10a   : > { %v574_v18 = vpop.f32.mrf.mxu1 }
 0x10b   : > { %v2086_v24 = vadd.f32 %v911_v45, %v842_v52  ;;  %v575_v33 = vadd.f32 %v574_v18, %v1987_v63  ;;  %v958_v63 = vrot.slane %v1976_v57, 5  ;;  %v1540_v18 = vrot.slane %v170_v35, 9 }
 0x10c   : > { %v740_v26 = vpop.f32.mrf.mxu2 }
 0x10d   : > { %v767_v2 = vadd.f32 %v740_v26, %v572_v10  ;;  %1515 = vmatmul.msk.bf16.gmra.mxu1 %vm395_vm3, %v1962_v11  ;;  %v955_v11 = vrot.slane %v1958_v36, 5  ;;  %v172_v10 = vld [vmem:[%s1617_s16 + $0x74] sm:$0x1] }
 0x10e   : > { %v918_v37 = vpop.f32.mrf.mxu0 }
 0x10f   : > { %v957_v50 = vrot.slane %v955_v11, 4  ;;  %v956_v54 = vsel %vm1805_vm7, %v1508_v46, %v955_v11 }
 0x110   : > { %v813_v15 = vpop.f32.mrf.mxu3 }
 0x111   : > { %v843_v3 = vadd.f32 %v813_v15, %v765_v6  ;;  %1528 = vmatmul.msk.bf16.gmra.mxu2 %vm395_vm3, %v1990_v5  ;;  %v959_v57 = vsel %vm1805_vm7, %v957_v50, %v958_v63  ;;  %v171_v6 = vld [vmem:[%s1617_s16 + $0x70] sm:$0xf] }
 0x112   : > { %v576_v39 = vpop.f32.mrf.mxu1  ;;  %v963_v14 = vunpack.c.l.b16 %v959_v57  ;;  %v1217_v7 = vrot.slane %v171_v6, 5  ;;  %v1128_v52 = vshrl.u32 %v171_v6, 16 }
 0x113   : > { %v2093_v27 = vadd.f32 %v913_v20, %v843_v3  ;;  %v577_v49 = vadd.f32 %v576_v39, %v2004_v42  ;;  %v962_v42 = vunpack.c.l.b16 %v956_v54  ;;  %v1561_v39 = vld [vmem:[%s1617_s16 + $0x6c] sm:$0xff] }
 0x114   : > { %v743_v34 = vpop.f32.mrf.mxu2  ;;  %v1219_v26 = vrot.slane %v1217_v7, 4  ;;  %v1130_v11 = vrot.slane %v1128_v52, 4 }
 0x115   : > { %1536 = vmatmul.msk.bf16.gmra.mxu3 %vm395_vm3, %v1790_v25  ;;  %v768_v41 = vadd.f32 %v743_v34, %v575_v33  ;;  %v964_v8 = vpack.c.b16 %v963_v14, %v962_v42  ;;  %v1117_v33 = vrot.slane %v1115_v38, 4 }
 0x116   : > { %v921_v12 = vpop.f32.mrf.mxu0 }
 0x118   : > { %v816_v21 = vpop.f32.mrf.mxu3 }
 0x119   : > { %v844_v29 = vadd.f32 %v816_v21, %v766_v48  ;;  %1547 = vmatmul.msk.bf16.gmra.mxu0 %vm395_vm3, %v1998_v22  ;;  %v1218_v48 = vsel %vm1805_vm7, %v1540_v18, %v1217_v7 }
 0x11a   : > { %v579_v5 = vpop.f32.mrf.mxu1 }
 0x11b   : > { %v2104_v17 = vadd.f32 %v916_v59, %v844_v29  ;;  %v1124_v59 = vshll.u32 %v171_v6, 16 }
 0x11c   : > { %v745_v25 = vpop.f32.mrf.mxu2 }
 0x11d   : > { %v769_v4 = vadd.f32 %v745_v25, %v577_v49  ;;  %1516 = vmatmul.msk.bf16.gmra.mxu1 %vm395_vm3, %v1998_v22  ;;  %v580_v22 = vadd.f32 %v579_v5, %v2014_v32  ;;  %v1118_v32 = vshll.u32 %v170_v35, 16  ;;  %v1134_v49 = vshll.u32 %v172_v10, 16 }
 0x11e   : > { %v923_v36 = vpop.f32.mrf.mxu0 }
 0x11f   : > { %v1120_v34 = vrot.slane %v1118_v32, 5  ;;  %v1136_v14 = vrot.slane %v1134_v49, 5 }
 0x120   : > { %v818_v55 = vpop.f32.mrf.mxu3 }
 0x121   : > { %v845_v43 = vadd.f32 %v818_v55, %v767_v2  ;;  %1529 = vmatmul.msk.bf16.gmra.mxu2 %vm395_vm3, %v2025_v58  ;;  %v1121_v46 = vor.u32 %v1120_v34, %v1117_v33 }
 0x122   : > { %v581_v45 = vpop.f32.mrf.mxu1 }
 0x123   : > { %v2115_v60 = vadd.f32 %v918_v37, %v845_v43  ;;  %v582_v2 = vadd.f32 %v581_v45, %v2022_v40 }
 0x124   : > { %v748_v62 = vpop.f32.mrf.mxu2 }
 0x125   : > { %1537 = vmatmul.msk.bf16.gmra.mxu3 %vm395_vm3, %v1824_v13  ;;  %v770_v61 = vadd.f32 %v748_v62, %v580_v22  ;;  %v1220_v13 = vrot.slane %v172_v10, 5 }
 0x126   : > { %v926_v20 = vpop.f32.mrf.mxu0 }
 0x127   : > { %v1221_v21 = vsel %vm1805_vm7, %v1219_v26, %v1220_v13 }
 0x128   : > { %v821_v44 = vpop.f32.mrf.mxu3  ;;  %v1225_v63 = vunpack.c.l.b16 %v1221_v21 }
 0x129   : > { %v846_v58 = vadd.f32 %v821_v44, %v768_v41  ;;  %1548 = vmatmul.msk.bf16.gmra.mxu0 %vm395_vm3, %v964_v8  ;;  %v1126_v41 = vrot.slane %v1124_v59, 5 }
 0x12a   : > { %v584_v1 = vpop.f32.mrf.mxu1 }
 0x12b   : > { %v2124_v37 = vadd.f32 %v921_v12, %v846_v58  ;;  %v1224_v12 = vunpack.c.l.b16 %v1218_v48  ;;  %v1131_v50 = vor.u32 %v1130_v11, %v1126_v41  ;;  %v585_v25 = vadd.f32 %v584_v1, %v2031_v53 }
 0x12c   : > { %v750_v15 = vpop.f32.mrf.mxu2 }
 0x12d   : > { %v771_v3 = vadd.f32 %v750_v15, %v582_v2  ;;  %1517 = vmatmul.msk.bf16.gmra.mxu1 %vm395_vm3, %v964_v8  ;;  %v1226_v55 = vpack.c.b16 %v1225_v63, %v1224_v12  ;;  %v1132_v42 = vrot.slane %v1131_v50, 4 }
 0x12e   : > { %v928_v9 = vpop.f32.mrf.mxu0 }
 0x130   : > { %v823_v29 = vpop.f32.mrf.mxu3 }
 0x131   : > { %v847_v40 = vadd.f32 %v823_v29, %v769_v4  ;;  %1530 = vmatmul.msk.bf16.gmra.mxu2 %vm395_vm3, %v1561_v39  ;;  %v1122_v4 = vrot.slane %v1121_v46, 4 }
 0x132   : > { %v586_v5 = vpop.f32.mrf.mxu1 }
 0x133   : > { %v2134_v54 = vadd.f32 %v923_v36, %v847_v40  ;;  %v1127_v53 = vsel %vm1655_vm4, %v1122_v4, %v1126_v41  ;;  %v1137_v36 = vsel %vm1655_vm4, %v1132_v42, %v1136_v14  ;;  %v587_v8 = vadd.f32 %v586_v5, %v2038_v16 }
 0x134   : > { %v753_v57 = vpop.f32.mrf.mxu2  ;;  %v1140_v44 = vunpack.c.l.b16 %v1127_v53  ;;  %v1141_v58 = vunpack.c.l.b16 %v1137_v36 }
 0x135   : > { %1538 = vmatmul.msk.bf16.gmra.mxu3 %vm395_vm3, %v2012_v30  ;;  %v772_v47 = vadd.f32 %v753_v57, %v585_v25 }
 0x136   : > { %v931_v43 = vpop.f32.mrf.mxu0  ;;  %v1142_v32 = vpack.c.b16 %v1141_v58, %v1140_v44 }
 0x138   : > { %v826_v45 = vpop.f32.mrf.mxu3 }
 0x139   : > { %v848_v22 = vadd.f32 %v826_v45, %v770_v61  ;;  %1549 = vmatmul.msk.bf16.gmra.mxu0 %vm395_vm3, %v1226_v55 }
 0x13a   : > { %v980_v62 = vpop.f32.mrf.mxu1 }
 0x13b   : > { %v1020_v30 = vadd.f32 %v980_v62, %v2047_v19  ;;  %v2145_v6 = vadd.f32 %v926_v20, %v848_v22 }
 0x13c   : > { %v755_v35 = vpop.f32.mrf.mxu2 }
 0x13d   : > { %v773_v7 = vadd.f32 %v755_v35, %v587_v8 }
 0x13e   : > { %v933_v61 = vpop.f32.mrf.mxu0 }
 0x140   : > { %v828_v10 = vpop.f32.mrf.mxu3 }
 0x141   : > { %v849_v38 = vadd.f32 %v828_v10, %v771_v3 }
 0x142   : > { %v982_v59 = vpop.f32.mrf.mxu1 }
 0x143   : > { %v1021_v1 = vadd.f32 %v982_v59, %v2053_v31  ;;  %v2148_v52 = vadd.f32 %v928_v9, %v849_v38 }
 0x144   : > { %v1058_v28 = vpop.f32.mrf.mxu2 }
 0x145   : > { %1539 = vmatmul.msk.bf16.gmra.mxu3 %vm395_vm3, %v1142_v32  ;;  %v1098_v16 = vadd.f32 %v1058_v28, %v1020_v30 }
 0x146   : > { %v1242_v19 = vpop.f32.mrf.mxu0 }
 0x148   : > { %v831_v20 = vpop.f32.mrf.mxu3 }
 0x149   : > { %v850_v18 = vadd.f32 %v831_v20, %v772_v47 }
 0x14a   : > { %v985_v26 = vpop.f32.mrf.mxu1 }
 0x14b   : > { %v1022_v13 = vadd.f32 %v985_v26, %v2060_v51  ;;  %v2152_v2 = vadd.f32 %v931_v43, %v850_v18 }
 0x14c   : > { %v1060_v15 = vpop.f32.mrf.mxu2 }
 0x14d   : > { %v1099_v3 = vadd.f32 %v1060_v15, %v1021_v1 }
 0x14e   : > { %v1244_v39 = vpop.f32.mrf.mxu0 }
 0x150   : > { %v833_v33 = vpop.f32.mrf.mxu3 }
 0x151   : > { %v851_v34 = vadd.f32 %v833_v33, %v773_v7 }
 0x152   : > { %v987_v31 = vpop.f32.mrf.mxu1 }
 0x153   : > { %v1023_v9 = vadd.f32 %v987_v31, %v2067_v56  ;;  %v2155_v41 = vadd.f32 %v933_v61, %v851_v34 }
 0x154   : > { %v1063_v11 = vpop.f32.mrf.mxu2 }
 0x155   : > { %v1100_v48 = vadd.f32 %v1063_v11, %v1022_v13 }
 0x156   : > { %v1247_v21 = vpop.f32.mrf.mxu0 }
 0x158   : > { %v1158_v29 = vpop.f32.mrf.mxu3 }
 0x159   : > { %v1198_v40 = vadd.f32 %v1158_v29, %v1098_v16 }
 0x15a   : > { %v990_v12 = vpop.f32.mrf.mxu1 }
 0x15b   : > { %v2157_v63 = vadd.f32 %v1242_v19, %v1198_v40  ;;  %v1024_v51 = vadd.f32 %v990_v12, %v2073_v23 }
 0x15c   : > { %v1065_v5 = vpop.f32.mrf.mxu2 }
 0x15d   : > { %v1101_v46 = vadd.f32 %v1065_v5, %v1023_v9 }
 0x15e   : > { %v1249_v50 = vpop.f32.mrf.mxu0 }
 0x160   : > { %v1160_v49 = vpop.f32.mrf.mxu3 }
 0x161   : > { %v1199_v25 = vadd.f32 %v1160_v49, %v1099_v3 }
 0x162   : > { %v992_v57 = vpop.f32.mrf.mxu1 }
 0x163   : > { %v2160_v47 = vadd.f32 %v1244_v39, %v1199_v25  ;;  %v1025_v56 = vadd.f32 %v992_v57, %v2080_v0 }
 0x164   : > { %v1068_v55 = vpop.f32.mrf.mxu2 }
 0x165   : > { %v1102_v43 = vadd.f32 %v1068_v55, %v1024_v51 }
 0x166   : > { %v1252_v4 = vpop.f32.mrf.mxu0 }
 0x168   : > { %v1163_v42 = vpop.f32.mrf.mxu3 }
 0x169   : > { %v1200_v14 = vadd.f32 %v1163_v42, %v1100_v48 }
 0x16a   : > { %v995_v45 = vpop.f32.mrf.mxu1 }
 0x16b   : > { %v2163_v22 = vadd.f32 %v1247_v21, %v1200_v14  ;;  %v1026_v23 = vadd.f32 %v995_v45, %v2086_v24 }
 0x16c   : > { %v1070_v62 = vpop.f32.mrf.mxu2 }
 0x16d   : > { %v1103_v53 = vadd.f32 %v1070_v62, %v1025_v56 }
 0x16e   : > { %v1254_v36 = vpop.f32.mrf.mxu0 }
 0x170   : > { %v1165_v8 = vpop.f32.mrf.mxu3 }
 0x171   : > { %v1201_v30 = vadd.f32 %v1165_v8, %v1101_v46 }
 0x172   : > { %v997_v35 = vpop.f32.mrf.mxu1 }
 0x173   : > { %v2166_v7 = vadd.f32 %v1249_v50, %v1201_v30  ;;  %v1027_v0 = vadd.f32 %v997_v35, %v2093_v27 }
 0x174   : > { %v1073_v44 = vpop.f32.mrf.mxu2 }
 0x175   : > { %v1104_v58 = vadd.f32 %v1073_v44, %v1026_v23 }
 0x176   : > { %v1257_v10 = vpop.f32.mrf.mxu0 }
 0x178   : > { %v1168_v61 = vpop.f32.mrf.mxu3 }
 0x179   : > { %v1202_v38 = vadd.f32 %v1168_v61, %v1102_v43 }
 0x17a   : > { %v1000_v32 = vpop.f32.mrf.mxu1 }
 0x17b   : > { %v2169_v59 = vadd.f32 %v1252_v4, %v1202_v38  ;;  %v1028_v24 = vadd.f32 %v1000_v32, %v2104_v17 }
 0x17c   : > { %v1075_v1 = vpop.f32.mrf.mxu2 }
 0x17d   : > { %v1105_v28 = vadd.f32 %v1075_v1, %v1027_v0 }
 0x17e   : > { %v1259_v20 = vpop.f32.mrf.mxu0 }
 0x180   : > { %v1170_v16 = vpop.f32.mrf.mxu3 }
 0x181   : > { %v1203_v19 = vadd.f32 %v1170_v16, %v1103_v53 }
 0x182   : > { %v1002_v33 = vpop.f32.mrf.mxu1 }
 0x183   : > { %v2172_v18 = vadd.f32 %v1254_v36, %v1203_v19 }
 0x184   : > { %v1078_v26 = vpop.f32.mrf.mxu2 }
 0x185   : > { %v1106_v13 = vadd.f32 %v1078_v26, %v1028_v24 }
 0x186   : > { %v1262_v39 = vpop.f32.mrf.mxu0 }
 0x188   : > { %v1173_v27 = vpop.f32.mrf.mxu3 }
 0x189   : > { %v1204_v15 = vadd.f32 %v1173_v27, %v1104_v58 }
 0x18a   : > { %v1005_v48 = vpop.f32.mrf.mxu1 }
 0x18b   : > { %v2174_v3 = vadd.f32 %v1257_v10, %v1204_v15  ;;  %v1030_v26 = vadd.f32 %v1005_v48, %v2124_v37 }
 0x18c   : > { %v1080_v34 = vpop.f32.mrf.mxu2 }
 0x18e   : > { %v2178_v17 = vpop.f32.mrf.mxu0 }
 0x190   : > { %v1175_v31 = vpop.f32.mrf.mxu3 }
 0x191   : > { %v1205_v9 = vadd.f32 %v1175_v31, %v1105_v28 }
 0x192   : > { %v1007_v46 = vpop.f32.mrf.mxu1 }
 0x193   : > { %v2176_v11 = vadd.f32 %v1259_v20, %v1205_v9  ;;  %v1031_v28 = vadd.f32 %v1007_v46, %v2134_v54 }
 0x194   : > { %v1083_v40 = vpop.f32.mrf.mxu2 }
 0x196   : > { %v1267_v5 = vpop.f32.mrf.mxu0 }
 0x198   : > { %v1178_v21 = vpop.f32.mrf.mxu3 }
 0x199   : > { %v1206_v29 = vadd.f32 %v1178_v21, %v1106_v13 }
 0x19a   : > { %v1010_v57 = vpop.f32.mrf.mxu1 }
 0x19b   : > { %v2180_v12 = vadd.f32 %v1262_v39, %v1206_v29  ;;  %v1032_v10 = vadd.f32 %v1010_v57, %v2145_v6  ;;  %v1108_v39 = vadd.f32 %v1083_v40, %v1030_v26 }
 0x19c   : > { %v1085_v50 = vpop.f32.mrf.mxu2 }
 0x19d   : > { %v1109_v13 = vadd.f32 %v1085_v50, %v1031_v28 }
 0x19e   : > { %v1269_v25 = vpop.f32.mrf.mxu0 }
 0x1a0   : > { %v1180_v51 = vpop.f32.mrf.mxu3 }
 0x1a2   : > { %v1012_v4 = vpop.f32.mrf.mxu1 }
 0x1a3   : > { %v1033_v44 = vadd.f32 %v1012_v4, %v2148_v52 }
 0x1a4   : > { %v1088_v56 = vpop.f32.mrf.mxu2 }
 0x1a5   : > { %v1110_v16 = vadd.f32 %v1088_v56, %v1032_v10  ;;  %v1583_v56 = vmov 1.0  }
 0x1a6   : > { %v1272_v43 = vpop.f32.mrf.mxu0 }
 0x1a8   : > { %v1183_v49 = vpop.f32.mrf.mxu3 }
 0x1a9   : > { %v1208_v29 = vadd.f32 %v1183_v49, %v1108_v39 }
 0x1aa   : > { %v1015_v23 = vpop.f32.mrf.mxu1 }
 0x1ab   : > { %v1034_v35 = vadd.f32 %v1015_v23, %v2152_v2  ;;  %v1292_v50 = vadd.f32 %v1267_v5, %v1208_v29  ;;  %v1324_v5 = vmul.f32 %v2174_v3, %v2174_v3 }
 0x1ac   : > { %v1090_v42 = vpop.f32.mrf.mxu2 }
 0x1ad   : > { %v1111_v38 = vadd.f32 %v1090_v42, %v1033_v44 }
 0x1ae   : > { %v1274_v45 = vpop.f32.mrf.mxu0 }
 0x1b0   : > { %v1185_v55 = vpop.f32.mrf.mxu3 }
 0x1b1   : > { %v1209_v6 = vadd.f32 %v1185_v55, %v1109_v13 }
 0x1b2   : > { %v1017_v30 = vpop.f32.mrf.mxu1 }
 0x1b3   : > { %v1035_v61 = vadd.f32 %v1017_v30, %v2155_v41  ;;  %v1029_v41 = vadd.f32 %v1002_v33, %v2115_v60  ;;  %v1293_v37 = vadd.f32 %v1269_v25, %v1209_v6  ;;  %v1323_v25 = vmul.f32 %v2172_v18, %v2172_v18 }
 0x1b4   : > { %v1093_v53 = vpop.f32.mrf.mxu2 }
 0x1b5   : > { %v1112_v58 = vadd.f32 %v1093_v53, %v1034_v35  ;;  %v1107_v21 = vadd.f32 %v1080_v34, %v1029_v41  ;;  %v1329_v40 = vmul.f32 %v1293_v37, %v1293_v37  ;;  %v1328_v34 = vmul.f32 %v1292_v50, %v1292_v50 }
 0x1b6   : > { %v1277_v36 = vpop.f32.mrf.mxu0 }
 0x1b7   : > { %v1207_v57 = vadd.f32 %v1180_v51, %v1107_v21  ;;  %v1326_v51 = vmul.f32 %v2180_v12, %v2180_v12 }
 0x1b8   : > { %v1188_v14 = vpop.f32.mrf.mxu3 }
 0x1b9   : > { %v1210_v27 = vadd.f32 %v1188_v14, %v1110_v16  ;;  %v1291_v33 = vadd.f32 %v2178_v17, %v1207_v57  ;;  %v1325_v17 = vmul.f32 %v2176_v11, %v2176_v11 }
 0x1bb   : > { %v1294_v54 = vadd.f32 %v1272_v43, %v1210_v27  ;;  %v1327_v49 = vmul.f32 %v1291_v33, %v1291_v33 }
 0x1bc   : > { %v1095_v0 = vpop.f32.mrf.mxu2 }
 0x1bd   : > { %v1113_v32 = vadd.f32 %v1095_v0, %v1035_v61  ;;  %v1330_v60 = vmul.f32 %v1294_v54, %v1294_v54 }
 0x1be   : > { %v1279_v2 = vpop.f32.mrf.mxu0 }
 0x1c0   : > { %v1190_v62 = vpop.f32.mrf.mxu3 }
 0x1c1   : > { %v1211_v19 = vadd.f32 %v1190_v62, %v1111_v38 }
 0x1c3   : > { %v1295_v31 = vadd.f32 %v1274_v45, %v1211_v19 }
 0x1c5   : > { %v1331_v48 = vmul.f32 %v1295_v31, %v1295_v31 }
 0x1c8   : > { %v1193_v8 = vpop.f32.mrf.mxu3 }
 0x1c9   : > { %v1212_v24 = vadd.f32 %v1193_v8, %v1112_v58 }
 0x1cb   : > { %v1296_v52 = vadd.f32 %v1277_v36, %v1212_v24 }
 0x1cd   : > { %v1332_v46 = vmul.f32 %v1296_v52, %v1296_v52 }
 0x1d0   : > { %v1195_v1 = vpop.f32.mrf.mxu3 }
 0x1d1   : > { %v1213_v20 = vadd.f32 %v1195_v1, %v1113_v32 }
 0x1d3   : > { %v1297_v15 = vadd.f32 %v1279_v2, %v1213_v20 }
 0x1d5   : > { %v1333_v9 = vmul.f32 %v1297_v15, %v1297_v15  ;;  %1298 = vmatpush.msrb.mxu1 %v1297_v15 }
 0x1d7   : > { %1299 = vmatpush.msrb.mxu1 %v1296_v52  ;;  %1334 = vmatpush.msrb.mxu2 %v1333_v9 }
 0x1d9   : > { %1300 = vmatpush.msrb.mxu1 %v1295_v31  ;;  %1335 = vmatpush.msrb.mxu2 %v1332_v46 }
 0x1db   : > { %1301 = vmatpush.msrb.mxu1 %v1294_v54  ;;  %1336 = vmatpush.msrb.mxu2 %v1331_v48 }
 0x1dd   : > { %1302 = vmatpush.msrb.mxu1 %v1293_v37  ;;  %1337 = vmatpush.msrb.mxu2 %v1330_v60 }
 0x1df   : > { %1303 = vmatpush.msrb.mxu1 %v1292_v50  ;;  %1338 = vmatpush.msrb.mxu2 %v1329_v40 }
 0x1e1   : > { %1304 = vmatpush.msrb.mxu1 %v1291_v33  ;;  %1339 = vmatpush.msrb.mxu2 %v1328_v34 }
 0x1e3   : > { %1305 = vmatpush.msrb.mxu1 %v2180_v12  ;;  %1340 = vmatpush.msrb.mxu2 %v1327_v49  ;;  %v1322_v12 = vmul.f32 %v2169_v59, %v2169_v59 }
 0x1e5   : > { %1306 = vmatpush.msrb.mxu1 %v2176_v11  ;;  %1341 = vmatpush.msrb.mxu2 %v1326_v51  ;;  %v1321_v11 = vmul.f32 %v2166_v7, %v2166_v7 }
 0x1e7   : > { %1307 = vmatpush.msrb.mxu1 %v2174_v3  ;;  %1342 = vmatpush.msrb.mxu2 %v1325_v17  ;;  %v1320_v3 = vmul.f32 %v2163_v22, %v2163_v22 }
 0x1e9   : > { %1308 = vmatpush.msrb.mxu1 %v2172_v18  ;;  %1343 = vmatpush.msrb.mxu2 %v1324_v5  ;;  %v1319_v18 = vmul.f32 %v2160_v47, %v2160_v47 }
 0x1eb   : > { %1309 = vmatpush.msrb.mxu1 %v2169_v59  ;;  %1344 = vmatpush.msrb.mxu2 %v1323_v25  ;;  %v1318_v59 = vmul.f32 %v2157_v63, %v2157_v63 }
 0x1ed   : > { %1310 = vmatpush.msrb.mxu1 %v2166_v7  ;;  %1345 = vmatpush.msrb.mxu2 %v1322_v12 }
 0x1ef   : > { %1311 = vmatpush.msrb.mxu1 %v2163_v22  ;;  %1346 = vmatpush.msrb.mxu2 %v1321_v11 }
 0x1f1   : > { %1312 = vmatpush.msrb.mxu1 %v2160_v47  ;;  %1347 = vmatpush.msrb.mxu2 %v1320_v3 }
 0x1f3   : > { %1313 = vmatpush.msrb.mxu1 %v2157_v63  ;;  %1348 = vmatpush.msrb.mxu2 %v1319_v18 }
 0x1f4   : > { %1314 = vmatmul.f32.vlgmr.msrb.gmra.mxu1 %v1583_v56 }
 0x1f5   : > { %1349 = vmatpush.msrb.mxu2 %v1318_v59 }
 0x1f6   : > { %1350 = vmatmul.f32.vlgmr.msrb.gmra.mxu2 %v1583_v56 }
 0x271   : > { %v1315_v55 = vpop.f32.mrf.mxu1 }
 0x279   : > { %v1351_v7 = vpop.f32.mrf.mxu2 }
 0x27a   : > { %v1355_v22 = vrot.slane %v1351_v7, 7 }
 0x27c   : > { %v1358_v47 = vsel %vm1357_vm8, %v1315_v55, %v1355_v22 }
 0x27d   : > { %1359 = vst [vmem:[%s141_s8] sm:$0x3] %v1358_v47 }
 0x27e PF: > { %s12_s9 = sadd.s32 1, %s1581_s9  }
 0x27f   : > { %p9_p4 = scmp.ge.s32.totalorder %s12_s9, 6  }
 0x281   :  { %11 = sbr.rel (!%p9_p4) target bundleno = 1 (0x1), region = 66 }

// kernel: unet_block_forward.7
= control target key start
LH: loop header
LB: loop body
LE: loop exit
PB: predicated region body
PF: predicated region fallthrough
CT: control target
= control target key end

     0   :  { %s1679_s15 = smov 0   ;;  %s2325_s0 = inlined_call_operand.vmem [shape: bf16[4,10,18,8], index: 0, kind: input, shape index: {}]   ;;  %s2326_s1 = inlined_call_operand.vmem [shape: bf16[9,8,128], index: 1, kind: input, shape index: {}]   ;;  %s2327_s2 = inlined_call_operand.vmem [shape: f32[1,128], index: 2, kind: input, shape index: {}]   ;;  %s2328_s3 = inlined_call_operand.vmem [shape: f32[1,128], index: 3, kind: input, shape index: {}]   ;;  %s2329_s4 = inlined_call_operand.vmem [shape: f32[4,128,128], index: 4, kind: output, shape index: {}]  }
   0x1 LB: > { %s1481_s16 = sadd.s32 4294967295, %s1652_s15   ;;  %p1485_p0 = scmp.ge.s32.totalorder %s1652_s15, 1  ;;  %s1652_s15 = sphi %s1679_s15, %s14_s15  }
   0x2   : > { %p162_p1 = scmp.lt.s32.totalorder %s1652_s15, 5 }
   0x4   : > { %p163_p2 = pnand %p1485_p0, %p162_p1 }
   0x5   : > { %p188_p3 = scmp.lt.s32.totalorder (!%p163_p2), %s1481_s16, 3 }
   0x6   : > { %166 = sbr.rel (%p163_p2) target bundleno = 465 (0x1d1), region = 36 }
   0xb   : > { %v1489_v0 = vld [vmem:[%s2326_s1 + $0x4] sm:$0xf]  ;;  %vm476_vm0 = vcmask 1043456   ;;  %v1546_v2 = vld [vmem:[%s2326_s1 + $0x8] sm:$0xf]  ;;  %s2335_s16 = smov (!%p188_p3, %s1481_s16), 3 }
   0xc   : > { %v478_v1 = vsel %vm476_vm0, %v1489_v0, 0  ;;  %v763_v3 = vsel %vm476_vm0, %v1546_v2, 0  ;;  %v1555_v4 = vld [vmem:[%s2326_s1 + $0xc] sm:$0xf]  ;;  %v229_v5 = vld [vmem:[%s2326_s1] sm:$0xf] }
   0xd   : > { %1632 = vmatpush.bf16.msra.mxu1 %v478_v1  ;;  %1633 = vmatpush.bf16.msra.mxu2 %v478_v1  ;;  %v1568_v6 = vld [vmem:[%s2326_s1 + $0x10] sm:$0xf]  ;;  %s1635_s27 = smul.u32 120, %s2335_s16  ;;  %v841_v7 = vsel %vm476_vm0, %v1555_v4, 0  ;;  %v594_v8 = vsel %vm476_vm0, %v229_v5, 0  ;;  %vm451_vm3 = vcmask 64512  }
   0xe   : > { %1634 = vmatpush.bf16.msra.mxu3 %v478_v1  ;;  %487 = vmatpush.bf16.msra.mxu0 %v478_v1  ;;  %v941_v9 = vsel %vm476_vm0, %v1568_v6, 0  ;;  %vm230_vm1 = vsmask.f32 3328  ;;  %vm231_vm2 = vsmask.f32 7440  ;;  %vm653_vm5 = vcmask 1042432  }
   0xf   : > { %s1713_s30 = scalar_lea.vmem %s2325_s0, %s1635_s27  ;;  %vm1751_vm4 = vmor %vm230_vm1, %vm231_vm2  ;;  %vm654_vm6 = vcmask 1046532   ;;  %s1621_s19 = sshll.u32 %s2335_s16, 7 }
  0x10   : > { %v1716_v10 = vld [vmem:[%s1713_s30 + $0x18] sm:$0xf]  ;;  %v1719_v11 = vld [vmem:[%s1713_s30 + $0x1c] sm:$0xf]  ;;  %v1722_v12 = vld [vmem:[%s1713_s30 + $0x20] sm:$0x1]  ;;  %s2260_s22 = scalar_lea.vmem %s2329_s4, %s1621_s19 }
  0x11   : > { %772 = vmatpush.bf16.msrb.mxu2 %v763_v3  ;;  %603 = vmatpush.bf16.msrb.mxu1 %v594_v8  ;;  %v282_v13 = vshrl.u32 %v1716_v10, 16  ;;  %v285_v14 = vshll.u32 %v1716_v10, 16  ;;  %v291_v15 = vshll.u32 %v1719_v11, 16  ;;  %v295_v16 = vshrl.u32 %v1719_v11, 16  ;;  %v1729_v17 = vld [vmem:[%s1713_s30 + $0x30] sm:$0xf]  ;;  %vm1905_vm7 = vmor %vm653_vm5, %vm654_vm6 }
  0x12   : > { %850 = vmatpush.bf16.msrb.mxu3 %v841_v7  ;;  %950 = vmatpush.bf16.msrb.mxu0 %v941_v9  ;;  %v301_v18 = vshll.u32 %v1722_v12, 16  ;;  %v1733_v19 = vld [vmem:[%s1713_s30 + $0x34] sm:$0xf]  ;;  %v1736_v20 = vld [vmem:[%s1713_s30 + $0x38] sm:$0x1]  ;;  %v330_v21 = vshrl.u32 %v1729_v17, 16 }
  0x13   : > { %v284_v22 = vrot.slane %v282_v13, 4  ;;  %v287_v23 = vrot.slane %v285_v14, 5  ;;  %v293_v24 = vrot.slane %v291_v15, 5  ;;  %v297_v25 = vrot.slane %v295_v16, 4  ;;  %v1740_v26 = vld [vmem:[%s1713_s30 + $0x48] sm:$0xf] }
  0x14   : > { %v303_v27 = vrot.slane %v301_v18, 5  ;;  %v332_v28 = vrot.slane %v330_v21, 4  ;;  %v333_v29 = vshll.u32 %v1729_v17, 16  ;;  %v339_v30 = vshll.u32 %v1733_v19, 16  ;;  %v1747_v35 = vld [vmem:[%s1713_s30 + $0x4c] sm:$0xf] }
  0x15   : > { %v288_v31 = vor.u32 %v287_v23, %v284_v22  ;;  %v298_v32 = vor.u32 %v297_v25, %v293_v24  ;;  %v343_v33 = vshrl.u32 %v1733_v19, 16  ;;  %v349_v34 = vshll.u32 %v1736_v20, 16  ;;  %v1758_v46 = vld [vmem:[%s1713_s30 + $0x50] sm:$0x1]  ;;  %v1767_v54 = vld [vmem:[%s1713_s30] sm:$0xf] }
  0x16   : > { %v335_v37 = vrot.slane %v333_v29, 5  ;;  %v341_v38 = vrot.slane %v339_v30, 5  ;;  %v378_v39 = vshrl.u32 %v1740_v26, 16  ;;  %v381_v40 = vshll.u32 %v1740_v26, 16  ;;  %v1775_v2 = vld [vmem:[%s1713_s30 + $0x4] sm:$0xf] }
  0x17   : > { %v289_v41 = vrot.slane %v288_v31, 4  ;;  %v299_v42 = vrot.slane %v298_v32, 4  ;;  %v345_v43 = vrot.slane %v343_v33, 4  ;;  %v351_v44 = vrot.slane %v349_v34, 5  ;;  %v1781_v8 = vld [vmem:[%s1713_s30 + $0x8] sm:$0x1] }
  0x18   : > { %v336_v45 = vor.u32 %v335_v37, %v332_v28  ;;  %v380_v47 = vrot.slane %v378_v39, 4  ;;  %v383_v48 = vrot.slane %v381_v40, 5  ;;  %v387_v49 = vshll.u32 %v1747_v35, 16  ;;  %v1789_v16 = vld [vmem:[%s1713_s30 + $0x24] sm:$0xf] }
  0x19   : > { %v294_v50 = vsel %vm1751_vm4, %v289_v41, %v293_v24  ;;  %v304_v51 = vsel %vm1751_vm4, %v299_v42, %v303_v27  ;;  %v346_v52 = vor.u32 %v345_v43, %v341_v38  ;;  %v391_v53 = vshrl.u32 %v1747_v35, 16  ;;  %v1798_v29 = vld [vmem:[%s1713_s30 + $0x28] sm:$0xf]  ;;  %v1803_v33 = vld [vmem:[%s1713_s30 + $0x2c] sm:$0x1] }
  0x1a   : > { %v431_v55 = vunpack.c.l.b16 %v294_v50  ;;  %v432_v56 = vunpack.c.l.b16 %v304_v51  ;;  %v337_v57 = vrot.slane %v336_v45, 4  ;;  %v384_v58 = vor.u32 %v383_v48, %v380_v47  ;;  %v1810_v41 = vld [vmem:[%s1713_s30 + $0x3c] sm:$0xf] }
  0x1b   : > { %v347_v59 = vrot.slane %v346_v52, 4  ;;  %v389_v60 = vrot.slane %v387_v49, 5  ;;  %v393_v61 = vrot.slane %v391_v53, 4  ;;  %v397_v62 = vshll.u32 %v1758_v46, 16 }
  0x1c   : > { %v1770_v63 = vpack.c.b16 %v432_v56, %v431_v55  ;;  %v342_v0 = vsel %vm1751_vm4, %v337_v57, %v341_v38  ;;  %v385_v1 = vrot.slane %v384_v58, 4  ;;  %v234_v3 = vshrl.u32 %v1767_v54, 16  ;;  %v1818_v55 = vld [vmem:[%s1713_s30 + $0x40] sm:$0xf] }
  0x1d   : > { %v352_v4 = vsel %vm1751_vm4, %v347_v59, %v351_v44  ;;  %v435_v5 = vunpack.c.l.b16 %v342_v0  ;;  %v394_v6 = vor.u32 %v393_v61, %v389_v60  ;;  %v399_v7 = vrot.slane %v397_v62, 5  ;;  %v1830_v62 = vld [vmem:[%s1713_s30 + $0x54] sm:$0xf] }
  0x1e   : > { %1492 = vmatmul.msk.bf16.vlgmr.msra.gmra.mxu1 %vm451_vm3, %v1770_v63  ;;  %v436_v9 = vunpack.c.l.b16 %v352_v4  ;;  %v390_v13 = vsel %vm1751_vm4, %v385_v1, %v389_v60  ;;  %v236_v14 = vrot.slane %v234_v3, 4  ;;  %v237_v15 = vshll.u32 %v1767_v54, 16  ;;  %v1826_v60 = vld [vmem:[%s1713_s30 + $0x44] sm:$0x1] }
  0x1f   : > { %v395_v18 = vrot.slane %v394_v6, 4  ;;  %v439_v21 = vunpack.c.l.b16 %v390_v13  ;;  %v243_v22 = vshll.u32 %v1775_v2, 16  ;;  %v247_v23 = vshrl.u32 %v1775_v2, 16 }
  0x20   : > { %v1793_v24 = vpack.c.b16 %v436_v9, %v435_v5  ;;  %v239_v25 = vrot.slane %v237_v15, 5  ;;  %v253_v27 = vshll.u32 %v1781_v8, 16  ;;  %v661_v28 = vrot.slane %v1781_v8, 5 }
  0x21   : > { %v400_v30 = vsel %vm1751_vm4, %v395_v18, %v399_v7  ;;  %v245_v31 = vrot.slane %v243_v22, 5  ;;  %v249_v32 = vrot.slane %v247_v23, 4  ;;  %v306_v34 = vshrl.u32 %v1789_v16, 16 }
  0x22   : > { %1494 = vmatmul.msk.bf16.vlgmr.msra.gmra.mxu2 %vm451_vm3, %v1793_v24  ;;  %v440_v37 = vunpack.c.l.b16 %v400_v30  ;;  %v240_v38 = vor.u32 %v239_v25, %v236_v14  ;;  %v255_v39 = vrot.slane %v253_v27, 5  ;;  %v309_v40 = vshll.u32 %v1789_v16, 16  ;;  %v1841_v27 = vld [vmem:[%s1713_s30 + $0x58] sm:$0xf]  ;;  %v1844_v30 = vld [vmem:[%s1713_s30 + $0x5c] sm:$0x1] }
  0x23   : > { %v250_v42 = vor.u32 %v249_v32, %v245_v31  ;;  %v308_v43 = vrot.slane %v306_v34, 4  ;;  %v315_v44 = vshll.u32 %v1798_v29, 16  ;;  %v319_v45 = vshrl.u32 %v1798_v29, 16 }
  0x24   : > { %v1814_v47 = vpack.c.b16 %v440_v37, %v439_v21  ;;  %v241_v48 = vrot.slane %v240_v38, 4  ;;  %v311_v49 = vrot.slane %v309_v40, 5  ;;  %v325_v50 = vshll.u32 %v1803_v33, 16  ;;  %v1849_v38 = vld [vmem:[%s1713_s30 + $0xc] sm:$0xf] }
  0x25   : > { %v251_v51 = vrot.slane %v250_v42, 4  ;;  %v317_v52 = vrot.slane %v315_v44, 5  ;;  %v321_v53 = vrot.slane %v319_v45, 4  ;;  %v354_v56 = vshrl.u32 %v1810_v41, 16 }
  0x26   : > { %1496 = vmatmul.msk.bf16.vlgmr.msra.gmra.mxu3 %vm451_vm3, %v1814_v47  ;;  %v246_v57 = vsel %vm1751_vm4, %v241_v48, %v245_v31  ;;  %v312_v58 = vor.u32 %v311_v49, %v308_v43  ;;  %v327_v59 = vrot.slane %v325_v50, 5  ;;  %v357_v61 = vshll.u32 %v1810_v41, 16 }
  0x27   : > { %v256_v0 = vsel %vm1751_vm4, %v251_v51, %v255_v39  ;;  %v427_v1 = vunpack.c.l.b16 %v246_v57  ;;  %v322_v3 = vor.u32 %v321_v53, %v317_v52  ;;  %v356_v4 = vrot.slane %v354_v56, 4  ;;  %v1861_v53 = vld [vmem:[%s1713_s30 + $0x10] sm:$0xf] }
  0x28   : > { %v428_v5 = vunpack.c.l.b16 %v256_v0  ;;  %v313_v6 = vrot.slane %v312_v58, 4  ;;  %v359_v7 = vrot.slane %v357_v61, 5  ;;  %v363_v9 = vshll.u32 %v1818_v55, 16  ;;  %v1865_v0 = vld [vmem:[%s1713_s30 + $0x14] sm:$0x1] }
  0x29   : > { %v323_v13 = vrot.slane %v322_v3, 4  ;;  %v367_v14 = vshrl.u32 %v1818_v55, 16  ;;  %v373_v15 = vshll.u32 %v1826_v60, 16  ;;  %v402_v18 = vshrl.u32 %v1830_v62, 16 }
  0x2a   : > { %v443_v21 = vpack.c.b16 %v428_v5, %v427_v1  ;;  %v318_v22 = vsel %vm1751_vm4, %v313_v6, %v317_v52  ;;  %v360_v23 = vor.u32 %v359_v7, %v356_v4  ;;  %v365_v25 = vrot.slane %v363_v9, 5 }
  0x2b   : > { %v328_v31 = vsel %vm1751_vm4, %v323_v13, %v327_v59  ;;  %v433_v32 = vunpack.c.l.b16 %v318_v22  ;;  %v369_v34 = vrot.slane %v367_v14, 4  ;;  %v375_v37 = vrot.slane %v373_v15, 5 }
  0x2c   : > { %1490 = vmatmul.msk.bf16.vlgmr.msra.gmra.mxu0 %vm451_vm3, %v443_v21  ;;  %v434_v39 = vunpack.c.l.b16 %v328_v31  ;;  %v361_v40 = vrot.slane %v360_v23, 4  ;;  %v404_v42 = vrot.slane %v402_v18, 4  ;;  %v405_v43 = vshll.u32 %v1830_v62, 16  ;;  %v1587_v31 = vld [vmem:[%s2326_s1 + $0x18] sm:$0xf] }
  0x2d   : > { %v370_v44 = vor.u32 %v369_v34, %v365_v25  ;;  %v411_v45 = vshll.u32 %v1841_v27, 16  ;;  %v415_v48 = vshrl.u32 %v1841_v27, 16  ;;  %v421_v49 = vshll.u32 %v1844_v30, 16 }
  0x2e   : > { %v1856_v50 = vpack.c.b16 %v434_v39, %v433_v32  ;;  %v366_v51 = vsel %vm1751_vm4, %v361_v40, %v365_v25  ;;  %v407_v52 = vrot.slane %v405_v43, 5  ;;  %v258_v56 = vshrl.u32 %v1849_v38, 16  ;;  %v1600_v40 = vld [vmem:[%s2326_s1 + $0x1c] sm:$0xf] }
  0x2f   : > { %v371_v57 = vrot.slane %v370_v44, 4  ;;  %v437_v58 = vunpack.c.l.b16 %v366_v51  ;;  %v413_v59 = vrot.slane %v411_v45, 5  ;;  %v417_v61 = vrot.slane %v415_v48, 4 }
  0x30   : > { %1493 = vmatmul.msk.bf16.gmra.mxu1 %vm451_vm3, %v1856_v50  ;;  %v408_v1 = vor.u32 %v407_v52, %v404_v42  ;;  %v423_v3 = vrot.slane %v421_v49, 5  ;;  %v260_v4 = vrot.slane %v258_v56, 4  ;;  %v261_v5 = vshll.u32 %v1849_v38, 16  ;;  %v1578_v42 = vld [vmem:[%s2326_s1 + $0x14] sm:$0xf] }
  0x31   : > { %v376_v6 = vsel %vm1751_vm4, %v371_v57, %v375_v37  ;;  %v418_v7 = vor.u32 %v417_v61, %v413_v59  ;;  %v267_v9 = vshll.u32 %v1861_v53, 16  ;;  %v271_v13 = vshrl.u32 %v1861_v53, 16  ;;  %v1610_v56 = vld [vmem:[%s2326_s1 + $0x20] sm:$0xf] }
  0x32   : > { %v438_v14 = vunpack.c.l.b16 %v376_v6  ;;  %v409_v15 = vrot.slane %v408_v1, 4  ;;  %v263_v18 = vrot.slane %v261_v5, 5  ;;  %v277_v21 = vshll.u32 %v1865_v0, 16 }
  0x33   : > { %v419_v22 = vrot.slane %v418_v7, 4  ;;  %v269_v23 = vrot.slane %v267_v9, 5  ;;  %v273_v25 = vrot.slane %v271_v13, 4  ;;  %v1538_v51 = vrot.slane %v1767_v54, 9 }
  0x34   : > { %v1878_v32 = vpack.c.b16 %v438_v14, %v437_v58  ;;  %v414_v34 = vsel %vm1751_vm4, %v409_v15, %v413_v59  ;;  %v264_v37 = vor.u32 %v263_v18, %v260_v4  ;;  %v279_v39 = vrot.slane %v277_v21, 5  ;;  %v1622_v15 = vld [vmem:[%s1713_s30] sm:$0xff] }
  0x35   : > { %v424_v43 = vsel %vm1751_vm4, %v419_v22, %v423_v3  ;;  %v441_v44 = vunpack.c.l.b16 %v414_v34  ;;  %v274_v45 = vor.u32 %v273_v25, %v269_v23  ;;  %v658_v52 = vrot.slane %v1775_v2, 5 }
  0x36   : > { %1495 = vmatmul.msk.bf16.gmra.mxu2 %vm451_vm3, %v1878_v32  ;;  %v442_v48 = vunpack.c.l.b16 %v424_v43  ;;  %v265_v49 = vrot.slane %v264_v37, 4  ;;  %v1103_v58 = vsel %vm476_vm0, %v1587_v31, 0  ;;  %v1203_v59 = vsel %vm476_vm0, %v1600_v40, 0 }
  0x37   : > { %v275_v57 = vrot.slane %v274_v45, 4  ;;  %v1025_v61 = vsel %vm476_vm0, %v1578_v42, 0  ;;  %v660_v2 = vrot.slane %v658_v52, 4  ;;  %1112 = vmatpush.bf16.msra.mxu2 %v1103_v58  ;;  %1212 = vmatpush.bf16.msra.mxu3 %v1203_v59  ;;  %v1287_v6 = vsel %vm476_vm0, %v1610_v56, 0  ;;  %v1623_v42 = vld [vmem:[%s1713_s30 + $0xc] sm:$0xff] }
  0x38   : > { %v1900_v1 = vpack.c.b16 %v442_v48, %v441_v44  ;;  %v270_v3 = vsel %vm1751_vm4, %v265_v49, %v269_v23  ;;  %1034 = vmatpush.bf16.msra.mxu1 %v1025_v61  ;;  %1296 = vmatpush.bf16.msra.mxu0 %v1287_v6  ;;  %v659_v9 = vsel %vm1905_vm7, %v1538_v51, %v658_v52  ;;  %v1540_v22 = vrot.slane %v1716_v10, 9 }
  0x39   : > { %v280_v4 = vsel %vm1751_vm4, %v275_v57, %v279_v39  ;;  %v429_v5 = vunpack.c.l.b16 %v270_v3  ;;  %v662_v13 = vsel %vm1905_vm7, %v660_v2, %v661_v28  ;;  %v714_v18 = vunpack.c.l.b16 %v659_v9  ;;  %v1981_v3 = vld [vmem:[%s1713_s30 + $0x30] sm:$0xff] }
  0x3a   : > { %1497 = vmatmul.msk.bf16.gmra.mxu3 %vm451_vm3, %v1900_v1  ;;  %v430_v7 = vunpack.c.l.b16 %v280_v4  ;;  %v715_v21 = vunpack.c.l.b16 %v662_v13  ;;  %v672_v23 = vrot.slane %v1719_v11, 5  ;;  %v675_v25 = vrot.slane %v1722_v12, 5  ;;  %v2001_v13 = vld [vmem:[%s1713_s30 + $0x3c] sm:$0xff] }
  0x3b   : > { %v665_v34 = vrot.slane %v1861_v53, 5  ;;  %v1539_v10 = vrot.slane %v1849_v38, 9  ;;  %v668_v12 = vrot.slane %v1865_v0, 5  ;;  %v1541_v38 = vrot.slane %v1789_v16, 9  ;;  %v1956_v16 = vld [vmem:[%s1713_s30 + $0x18] sm:$0xff] }
  0x3c   : > { %v444_v14 = vpack.c.b16 %v430_v7, %v429_v5  ;;  %v730_v31 = vpack.c.b16 %v715_v21, %v714_v18  ;;  %v673_v8 = vsel %vm1905_vm7, %v1540_v22, %v672_v23  ;;  %v674_v28 = vrot.slane %v672_v23, 4 }
  0x3d   : > { %v718_v37 = vunpack.c.l.b16 %v673_v8  ;;  %v667_v11 = vrot.slane %v665_v34, 4  ;;  %v666_v53 = vsel %vm1905_vm7, %v1539_v10, %v665_v34  ;;  %v679_v0 = vrot.slane %v1798_v29, 5 }
  0x3e   : > { %1491 = vmatmul.msk.bf16.gmra.mxu0 %vm451_vm3, %v444_v14  ;;  %v676_v39 = vsel %vm1905_vm7, %v674_v28, %v675_v25  ;;  %v716_v45 = vunpack.c.l.b16 %v666_v53  ;;  %v682_v49 = vrot.slane %v1803_v33, 5  ;;  %v1969_v33 = vld [vmem:[%s1713_s30 + $0x24] sm:$0xff]  ;;  %v686_v61 = vrot.slane %v1733_v19, 5 }
  0x3f   : > { %v719_v40 = vunpack.c.l.b16 %v676_v39  ;;  %v669_v44 = vsel %vm1905_vm7, %v667_v11, %v668_v12  ;;  %v680_v52 = vsel %vm1905_vm7, %v1541_v38, %v679_v0  ;;  %v681_v56 = vrot.slane %v679_v0, 4  ;;  %v2021_v25 = vld [vmem:[%s1713_s30 + $0x48] sm:$0xff]  ;;  %v2057_v38 = vld [vmem:[%s1713_s30 + $0x54] sm:$0xff] }
  0x40   : > { %1530 = vmatmul.msk.bf16.vlgmr.msrb.gmra.mxu1 %vm451_vm3, %v1622_v15  ;;  %v717_v48 = vunpack.c.l.b16 %v669_v44  ;;  %v720_v57 = vunpack.c.l.b16 %v680_v52  ;;  %v1542_v2 = vrot.slane %v1729_v17, 9  ;;  %v688_v4 = vrot.slane %v686_v61, 4 }
  0x41   : > { %v1935_v43 = vpack.c.b16 %v719_v40, %v718_v37  ;;  %v683_v58 = vsel %vm1905_vm7, %v681_v56, %v682_v49  ;;  %v689_v5 = vrot.slane %v1736_v20, 5  ;;  %v693_v20 = vrot.slane %v1818_v55, 5  ;;  %v2036_v40 = vld [vmem:[%s1713_s30 + $0x60] sm:$0xf] }
  0x42   : > { %v1947_v51 = vpack.c.b16 %v717_v48, %v716_v45  ;;  %v721_v59 = vunpack.c.l.b16 %v683_v58  ;;  %v687_v6 = vsel %vm1905_vm7, %v1542_v2, %v686_v61  ;;  %v696_v18 = vrot.slane %v1826_v60, 5  ;;  %v2062_v61 = vld [vmem:[%s1713_s30 + $0x68] sm:$0x1] }
  0x43   : > { %v690_v19 = vsel %vm1905_vm7, %v688_v4, %v689_v5  ;;  %v722_v7 = vunpack.c.l.b16 %v687_v6  ;;  %v695_v15 = vrot.slane %v693_v20, 4  ;;  %v700_v60 = vrot.slane %v1747_v35, 5 }
  0x44   : > { %v1958_v29 = vpack.c.b16 %v721_v59, %v720_v57  ;;  %v723_v9 = vunpack.c.l.b16 %v690_v19  ;;  %v703_v28 = vrot.slane %v1758_v46, 5  ;;  %v2039_v46 = vld [vmem:[%s1713_s30 + $0x64] sm:$0xf]  ;;  %v909_v10 = vshrl.u32 %v2036_v40, 16 }
  0x45   : > { %v697_v55 = vsel %vm1905_vm7, %v695_v15, %v696_v18  ;;  %v702_v8 = vrot.slane %v700_v60, 4  ;;  %v912_v11 = vshll.u32 %v2036_v40, 16  ;;  %v918_v12 = vshll.u32 %v2039_v46, 16 }
  0x46   : > { %1547 = vmatmul.msk.bf16.vlgmr.msrb.gmra.mxu2 %vm451_vm3, %v730_v31  ;;  %v1995_v17 = vpack.c.b16 %v723_v9, %v722_v7  ;;  %v725_v23 = vunpack.c.l.b16 %v697_v55  ;;  %v1544_v31 = vrot.slane %v1740_v26, 9  ;;  %v707_v44 = vrot.slane %v1841_v27, 5 }
  0x47   : > { %v704_v35 = vsel %vm1905_vm7, %v702_v8, %v703_v28  ;;  %v922_v45 = vshrl.u32 %v2039_v46, 16  ;;  %v911_v0 = vrot.slane %v909_v10, 4  ;;  %v914_v49 = vrot.slane %v912_v11, 5  ;;  %v2094_v8 = vld [vmem:[%s1713_s30 + $0x60] sm:$0xff] }
  0x48   : > { %v701_v37 = vsel %vm1905_vm7, %v1544_v31, %v700_v60  ;;  %v727_v26 = vunpack.c.l.b16 %v704_v35  ;;  %v920_v52 = vrot.slane %v918_v12, 5  ;;  %v1545_v56 = vrot.slane %v1830_v62, 9 }
  0x49   : > { %v726_v39 = vunpack.c.l.b16 %v701_v37  ;;  %v709_v57 = vrot.slane %v707_v44, 4  ;;  %v710_v58 = vrot.slane %v1844_v30, 5  ;;  %v924_v59 = vrot.slane %v922_v45, 4 }
  0x4a   : > { %1560 = vmatmul.msk.bf16.vlgmr.msrb.gmra.mxu3 %vm451_vm3, %v1623_v42  ;;  %v915_v4 = vor.u32 %v914_v49, %v911_v0  ;;  %v708_v5 = vsel %vm1905_vm7, %v1545_v56, %v707_v44  ;;  %v928_v19 = vshll.u32 %v2062_v61, 16 }
  0x4b   : > { %v711_v6 = vsel %vm1905_vm7, %v709_v57, %v710_v58  ;;  %v925_v62 = vor.u32 %v924_v59, %v920_v52  ;;  %v728_v7 = vunpack.c.l.b16 %v708_v5 }
  0x4c   : > { %v729_v9 = vunpack.c.l.b16 %v711_v6  ;;  %v930_v18 = vrot.slane %v928_v19, 5 }
  0x4d   : > { %v926_v15 = vrot.slane %v925_v62, 4 }
  0x4e   : > { %1569 = vmatmul.msk.bf16.vlgmr.msrb.gmra.mxu0 %vm451_vm3, %v444_v14  ;;  %v1543_v14 = vrot.slane %v1810_v41, 9  ;;  %v2081_v55 = vpack.c.b16 %v729_v9, %v728_v7 }
  0x4f   : > { %v931_v60 = vsel %vm1751_vm4, %v926_v15, %v930_v18 }
  0x50   : > { %1531 = vmatmul.msk.bf16.gmra.mxu1 %vm451_vm3, %v1623_v42  ;;  %v694_v21 = vsel %vm1905_vm7, %v1543_v14, %v693_v20  ;;  %v2043_v42 = vpack.c.b16 %v727_v26, %v726_v39  ;;  %v916_v14 = vrot.slane %v915_v4, 4  ;;  %v935_v37 = vunpack.c.l.b16 %v931_v60 }
  0x51   : > { %v724_v22 = vunpack.c.l.b16 %v694_v21 }
  0x53   : > { %v2015_v41 = vpack.c.b16 %v725_v23, %v724_v22  ;;  %v921_v23 = vsel %vm1751_vm4, %v916_v14, %v920_v52 }
  0x54   : > { %v934_v28 = vunpack.c.l.b16 %v921_v23 }
  0x56   : > { %1548 = vmatmul.msk.bf16.gmra.mxu2 %vm451_vm3, %v1947_v51  ;;  %v2100_v39 = vpack.c.b16 %v935_v37, %v934_v28 }
  0x5a   : > { %1561 = vmatmul.msk.bf16.gmra.mxu3 %vm451_vm3, %v1956_v16 }
  0x5e   : > { %1570 = vmatmul.msk.bf16.gmra.mxu0 %vm451_vm3, %v1770_v63 }
  0x60   : > { %1532 = vmatmul.msk.bf16.gmra.mxu1 %vm451_vm3, %v1956_v16 }
  0x66   : > { %1549 = vmatmul.msk.bf16.gmra.mxu2 %vm451_vm3, %v1935_v43 }
  0x6a   : > { %1562 = vmatmul.msk.bf16.gmra.mxu3 %vm451_vm3, %v1969_v33 }
  0x6e   : > { %1571 = vmatmul.msk.bf16.gmra.mxu0 %vm451_vm3, %v1856_v50 }
  0x70   : > { %1533 = vmatmul.msk.bf16.gmra.mxu1 %vm451_vm3, %v1969_v33 }
  0x76   : > { %1550 = vmatmul.msk.bf16.gmra.mxu2 %vm451_vm3, %v1958_v29 }
  0x7a   : > { %1563 = vmatmul.msk.bf16.gmra.mxu3 %vm451_vm3, %v1981_v3 }
  0x7e   : > { %1572 = vmatmul.msk.bf16.gmra.mxu0 %vm451_vm3, %v1793_v24 }
  0x80   : > { %1534 = vmatmul.msk.bf16.gmra.mxu1 %vm451_vm3, %v1981_v3 }
  0x86   : > { %1551 = vmatmul.msk.bf16.gmra.mxu2 %vm451_vm3, %v1995_v17 }
  0x8a   : > { %1564 = vmatmul.msk.bf16.gmra.mxu3 %vm451_vm3, %v2001_v13 }
  0x8e   : > { %1573 = vmatmul.msk.bf16.gmra.mxu0 %vm451_vm3, %v1878_v32 }
  0x90   : > { %1535 = vmatmul.msk.bf16.gmra.mxu1 %vm451_vm3, %v2001_v13 }
  0x96   : > { %1552 = vmatmul.msk.bf16.gmra.mxu2 %vm451_vm3, %v2015_v41 }
  0x9a   : > { %1565 = vmatmul.msk.bf16.gmra.mxu3 %vm451_vm3, %v2021_v25 }
  0x9b   : > { %v2027_v34 = vpop.f32.mrf.mxu1 }
  0x9e   : > { %1574 = vmatmul.msk.bf16.gmra.mxu0 %vm451_vm3, %v1814_v47 }
  0xa0   : > { %1536 = vmatmul.msk.bf16.gmra.mxu1 %vm451_vm3, %v2021_v25 }
  0xa3   : > { %v2048_v53 = vpop.f32.mrf.mxu1 }
  0xa5   : > { %v2052_v48 = vpop.f32.mrf.mxu2 }
  0xa6   : > { %1553 = vmatmul.msk.bf16.gmra.mxu2 %vm451_vm3, %v2043_v42 }
  0xa9   : > { %v489_v27 = vpop.f32.mrf.mxu0  ;;  %v2064_v2 = vpop.f32.mrf.mxu3 }
  0xaa   : > { %1566 = vmatmul.msk.bf16.gmra.mxu3 %vm451_vm3, %v2057_v38 }
  0xad   : > { %v2073_v30 = vpop.f32.mrf.mxu1  ;;  %v2077_v20 = vpop.f32.mrf.mxu2 }
  0xae   : > { %1575 = vmatmul.msk.bf16.gmra.mxu0 %vm451_vm3, %v1900_v1 }
  0xb0   : > { %1537 = vmatmul.msk.bf16.gmra.mxu1 %vm451_vm3, %v2057_v38 }
  0xb1   : > { %v491_v21 = vpop.f32.mrf.mxu0  ;;  %v2083_v22 = vpop.f32.mrf.mxu3 }
  0xb5   : > { %v2089_v31 = vpop.f32.mrf.mxu1 }
  0xb6   : > { %1554 = vmatmul.msk.bf16.gmra.mxu2 %vm451_vm3, %v2081_v55 }
  0xb9   : > { %v2096_v35 = vpop.f32.mrf.mxu2 }
  0xba   : > { %1567 = vmatmul.msk.bf16.gmra.mxu3 %vm451_vm3, %v2094_v8 }
  0xbb   : > { %v494_v26 = vpop.f32.mrf.mxu0 }
  0xbd   : > { %v2102_v10 = vpop.f32.mrf.mxu3  ;;  %v605_v11 = vpop.f32.mrf.mxu1 }
  0xbe   : > { %1576 = vmatmul.msk.bf16.gmra.mxu0 %vm451_vm3, %v2100_v39  ;;  %v606_v12 = vadd.f32 %v605_v11, %v489_v27 }
  0xc0   : > { %1579 = vmatmul.msk.bf16.vlgmr.msra.gmra.mxu1 %vm451_vm3, %v1947_v51 }
  0xc1   : > { %v2108_v44 = vpop.f32.mrf.mxu2 }
  0xc3   : > { %v496_v45 = vpop.f32.mrf.mxu0 }
  0xc5   : > { %v2110_v0 = vpop.f32.mrf.mxu3  ;;  %v607_v49 = vpop.f32.mrf.mxu1 }
  0xc6   : > { %1592 = vmatmul.msk.bf16.vlgmr.msra.gmra.mxu2 %vm451_vm3, %v1956_v16  ;;  %v608_v52 = vadd.f32 %v607_v49, %v491_v21 }
  0xc9   : > { %v774_v56 = vpop.f32.mrf.mxu2 }
  0xca   : > { %1601 = vmatmul.msk.bf16.vlgmr.msra.gmra.mxu3 %vm451_vm3, %v1770_v63  ;;  %v814_v57 = vadd.f32 %v774_v56, %v606_v12 }
  0xcb   : > { %v952_v58 = vpop.f32.mrf.mxu0 }
  0xcd   : > { %v852_v59 = vpop.f32.mrf.mxu3  ;;  %v610_v27 = vpop.f32.mrf.mxu1 }
  0xce   : > { %1611 = vmatmul.msk.bf16.vlgmr.msra.gmra.mxu0 %vm451_vm3, %v1935_v43  ;;  %v892_v51 = vadd.f32 %v852_v59, %v814_v57  ;;  %v611_v4 = vadd.f32 %v610_v27, %v494_v26 }
  0xd0   : > { %1580 = vmatmul.msk.bf16.gmra.mxu1 %vm451_vm3, %v1935_v43  ;;  %v2120_v5 = vadd.f32 %v952_v58, %v892_v51 }
  0xd1   : > { %v776_v16 = vpop.f32.mrf.mxu2 }
  0xd2   : > { %v815_v6 = vadd.f32 %v776_v16, %v608_v52 }
  0xd3   : > { %v954_v62 = vpop.f32.mrf.mxu0 }
  0xd5   : > { %v854_v19 = vpop.f32.mrf.mxu3  ;;  %v612_v7 = vpop.f32.mrf.mxu1 }
  0xd6   : > { %v893_v63 = vadd.f32 %v854_v19, %v815_v6  ;;  %1593 = vmatmul.msk.bf16.gmra.mxu2 %vm451_vm3, %v1969_v33  ;;  %v613_v9 = vadd.f32 %v612_v7, %v496_v45 }
  0xd8   : > { %v2124_v14 = vadd.f32 %v954_v62, %v893_v63 }
  0xd9   : > { %v779_v15 = vpop.f32.mrf.mxu2 }
  0xda   : > { %1602 = vmatmul.msk.bf16.gmra.mxu3 %vm451_vm3, %v1856_v50  ;;  %v816_v18 = vadd.f32 %v779_v15, %v611_v4 }
  0xdb   : > { %v957_v43 = vpop.f32.mrf.mxu0 }
  0xdd   : > { %v857_v21 = vpop.f32.mrf.mxu3  ;;  %v615_v23 = vpop.f32.mrf.mxu1 }
  0xde   : > { %1612 = vmatmul.msk.bf16.gmra.mxu0 %vm451_vm3, %v1958_v29  ;;  %v894_v60 = vadd.f32 %v857_v21, %v816_v18  ;;  %v616_v28 = vadd.f32 %v615_v23, %v2027_v34 }
  0xe0   : > { %1581 = vmatmul.msk.bf16.gmra.mxu1 %vm451_vm3, %v1958_v29  ;;  %v2133_v33 = vadd.f32 %v957_v43, %v894_v60 }
  0xe1   : > { %v781_v37 = vpop.f32.mrf.mxu2 }
  0xe2   : > { %v817_v26 = vadd.f32 %v781_v37, %v613_v9 }
  0xe3   : > { %v959_v11 = vpop.f32.mrf.mxu0 }
  0xe5   : > { %v859_v12 = vpop.f32.mrf.mxu3  ;;  %v617_v50 = vpop.f32.mrf.mxu1 }
  0xe6   : > { %v895_v45 = vadd.f32 %v859_v12, %v817_v26  ;;  %1594 = vmatmul.msk.bf16.gmra.mxu2 %vm451_vm3, %v1981_v3  ;;  %v618_v49 = vadd.f32 %v617_v50, %v2048_v53 }
  0xe8   : > { %v2138_v52 = vadd.f32 %v959_v11, %v895_v45 }
  0xe9   : > { %v784_v56 = vpop.f32.mrf.mxu2 }
  0xea   : > { %1603 = vmatmul.msk.bf16.gmra.mxu3 %vm451_vm3, %v1793_v24  ;;  %v818_v29 = vadd.f32 %v784_v56, %v616_v28 }
  0xeb   : > { %v962_v34 = vpop.f32.mrf.mxu0 }
  0xed   : > { %v862_v57 = vpop.f32.mrf.mxu3  ;;  %v620_v58 = vpop.f32.mrf.mxu1 }
  0xee   : > { %1613 = vmatmul.msk.bf16.gmra.mxu0 %vm451_vm3, %v1995_v17  ;;  %v896_v59 = vadd.f32 %v862_v57, %v818_v29  ;;  %v621_v27 = vadd.f32 %v620_v58, %v2073_v30 }
  0xf0   : > { %1582 = vmatmul.msk.bf16.gmra.mxu1 %vm451_vm3, %v1995_v17  ;;  %v2147_v3 = vadd.f32 %v962_v34, %v896_v59 }
  0xf1   : > { %v786_v53 = vpop.f32.mrf.mxu2 }
  0xf2   : > { %v819_v51 = vadd.f32 %v786_v53, %v618_v49  ;;  %v2185_v53 = vld [vmem:[%s1713_s30 + $0x6c] sm:$0xf] }
  0xf3   : > { %v964_v4 = vpop.f32.mrf.mxu0 }
  0xf5   : > { %v864_v16 = vpop.f32.mrf.mxu3  ;;  %v622_v24 = vpop.f32.mrf.mxu1 }
  0xf6   : > { %v897_v6 = vadd.f32 %v864_v16, %v819_v51  ;;  %1595 = vmatmul.msk.bf16.gmra.mxu2 %vm451_vm3, %v2001_v13  ;;  %v623_v62 = vadd.f32 %v622_v24, %v2089_v31  ;;  %v2188_v51 = vld [vmem:[%s1713_s30 + $0x70] sm:$0xf]  ;;  %v1171_v24 = vshrl.u32 %v2185_v53, 16 }
  0xf8   : > { %v2152_v19 = vadd.f32 %v964_v4, %v897_v6  ;;  %v1577_v6 = vrot.slane %v2036_v40, 9 }
  0xf9   : > { %v789_v7 = vpop.f32.mrf.mxu2 }
  0xfa   : > { %1604 = vmatmul.msk.bf16.gmra.mxu3 %vm451_vm3, %v1878_v32  ;;  %v820_v17 = vadd.f32 %v789_v7, %v621_v27  ;;  %v1011_v27 = vrot.slane %v2039_v46, 5  ;;  %v1184_v7 = vshrl.u32 %v2188_v51, 16 }
  0xfb   : > { %v967_v30 = vpop.f32.mrf.mxu0 }
  0xfc   : > { %v1013_v46 = vrot.slane %v1011_v27, 4  ;;  %v1012_v40 = vsel %vm1905_vm7, %v1577_v6, %v1011_v27 }
  0xfd   : > { %v867_v63 = vpop.f32.mrf.mxu3  ;;  %v625_v9 = vpop.f32.mrf.mxu1 }
  0xfe   : > { %1614 = vmatmul.msk.bf16.gmra.mxu0 %vm451_vm3, %v2015_v41  ;;  %v898_v15 = vadd.f32 %v867_v63, %v820_v17  ;;  %v626_v32 = vadd.f32 %v625_v9, %v2052_v48  ;;  %v1173_v9 = vrot.slane %v1171_v24, 4  ;;  %v1631_v24 = vld [vmem:[%s1713_s30 + $0x6c] sm:$0xff] }
 0x100   : > { %1583 = vmatmul.msk.bf16.gmra.mxu1 %vm451_vm3, %v2015_v41  ;;  %v2160_v13 = vadd.f32 %v967_v30, %v898_v15 }
 0x101   : > { %v791_v31 = vpop.f32.mrf.mxu2 }
 0x102   : > { %v821_v18 = vadd.f32 %v791_v31, %v623_v62  ;;  %v1180_v62 = vshll.u32 %v2188_v51, 16 }
 0x103   : > { %v969_v43 = vpop.f32.mrf.mxu0 }
 0x105   : > { %v869_v21 = vpop.f32.mrf.mxu3  ;;  %v627_v23 = vpop.f32.mrf.mxu1 }
 0x106   : > { %v899_v60 = vadd.f32 %v869_v21, %v821_v18  ;;  %1596 = vmatmul.msk.bf16.gmra.mxu2 %vm451_vm3, %v2021_v25  ;;  %v628_v45 = vadd.f32 %v627_v23, %v2077_v20  ;;  %v1186_v21 = vrot.slane %v1184_v7, 4  ;;  %v228_v23 = vld [vmem:[%s1713_s30 + $0x74] sm:$0x1] }
 0x108   : > { %v2165_v28 = vadd.f32 %v969_v43, %v899_v60  ;;  %v1182_v43 = vrot.slane %v1180_v62, 5 }
 0x109   : > { %v794_v37 = vpop.f32.mrf.mxu2 }
 0x10a   : > { %1605 = vmatmul.msk.bf16.gmra.mxu3 %vm451_vm3, %v1814_v47  ;;  %v822_v41 = vadd.f32 %v794_v37, %v626_v32 }
 0x10b   : > { %v972_v26 = vpop.f32.mrf.mxu0 }
 0x10d   : > { %v872_v11 = vpop.f32.mrf.mxu3  ;;  %v630_v12 = vpop.f32.mrf.mxu1 }
 0x10e   : > { %1615 = vmatmul.msk.bf16.gmra.mxu0 %vm451_vm3, %v2043_v42  ;;  %v900_v50 = vadd.f32 %v872_v11, %v822_v41  ;;  %v631_v57 = vadd.f32 %v630_v12, %v2096_v35  ;;  %v1190_v11 = vshll.u32 %v228_v23, 16 }
 0x110   : > { %1584 = vmatmul.msk.bf16.gmra.mxu1 %vm451_vm3, %v2043_v42  ;;  %v2174_v25 = vadd.f32 %v972_v26, %v900_v50  ;;  %v1187_v26 = vor.u32 %v1186_v21, %v1182_v43 }
 0x111   : > { %v796_v48 = vpop.f32.mrf.mxu2 }
 0x112   : > { %v823_v49 = vadd.f32 %v796_v48, %v628_v45 }
 0x113   : > { %v974_v47 = vpop.f32.mrf.mxu0 }
 0x115   : > { %v874_v56 = vpop.f32.mrf.mxu3  ;;  %v632_v29 = vpop.f32.mrf.mxu1 }
 0x116   : > { %v901_v34 = vadd.f32 %v874_v56, %v823_v49  ;;  %1597 = vmatmul.msk.bf16.gmra.mxu2 %vm451_vm3, %v2057_v38  ;;  %v1014_v38 = vrot.slane %v2062_v61, 5  ;;  %v633_v17 = vadd.f32 %v632_v29, %v2108_v44  ;;  %v1188_v29 = vrot.slane %v1187_v26, 4 }
 0x118   : > { %v2179_v58 = vadd.f32 %v974_v47, %v901_v34  ;;  %v1015_v18 = vsel %vm1905_vm7, %v1013_v46, %v1014_v38  ;;  %v1192_v34 = vrot.slane %v1190_v11, 5 }
 0x119   : > { %v799_v20 = vpop.f32.mrf.mxu2  ;;  %v1019_v37 = vunpack.c.l.b16 %v1015_v18 }
 0x11a   : > { %1606 = vmatmul.msk.bf16.gmra.mxu3 %vm451_vm3, %v1900_v1  ;;  %v824_v42 = vadd.f32 %v799_v20, %v631_v57  ;;  %v1174_v1 = vshll.u32 %v2185_v53, 16 }
 0x11b   : > { %v977_v59 = vpop.f32.mrf.mxu0 }
 0x11c   : > { %v1176_v15 = vrot.slane %v1174_v1, 5 }
 0x11d   : > { %v877_v4 = vpop.f32.mrf.mxu3  ;;  %v635_v16 = vpop.f32.mrf.mxu1 }
 0x11e   : > { %1616 = vmatmul.msk.bf16.gmra.mxu0 %vm451_vm3, %v2081_v55  ;;  %v902_v35 = vadd.f32 %v877_v4, %v824_v42  ;;  %v1177_v41 = vor.u32 %v1176_v15, %v1173_v9  ;;  %v636_v12 = vadd.f32 %v635_v16, %v2064_v2  ;;  %v1276_v4 = vrot.slane %v228_v23, 5 }
 0x120   : > { %1585 = vmatmul.msk.bf16.gmra.mxu1 %vm451_vm3, %v2081_v55  ;;  %v2201_v61 = vadd.f32 %v977_v59, %v902_v35  ;;  %v1018_v55 = vunpack.c.l.b16 %v1012_v40  ;;  %v1178_v47 = vrot.slane %v1177_v41, 4  ;;  %v1609_v59 = vrot.slane %v2185_v53, 9 }
 0x121   : > { %v801_v30 = vpop.f32.mrf.mxu2 }
 0x122   : > { %v825_v63 = vadd.f32 %v801_v30, %v633_v17  ;;  %v1020_v48 = vpack.c.b16 %v1019_v37, %v1018_v55  ;;  %v1183_v42 = vsel %vm1751_vm4, %v1178_v47, %v1182_v43 }
 0x123   : > { %v979_v31 = vpop.f32.mrf.mxu0  ;;  %v1196_v1 = vunpack.c.l.b16 %v1183_v42 }
 0x125   : > { %v879_v44 = vpop.f32.mrf.mxu3  ;;  %v637_v60 = vpop.f32.mrf.mxu1 }
 0x126   : > { %v903_v32 = vadd.f32 %v879_v44, %v825_v63  ;;  %1598 = vmatmul.msk.bf16.gmra.mxu2 %vm451_vm3, %v2094_v8  ;;  %v1273_v8 = vrot.slane %v2188_v51, 5  ;;  %v638_v16 = vadd.f32 %v637_v60, %v2083_v22 }
 0x128   : > { %v2211_v50 = vadd.f32 %v979_v31, %v903_v32  ;;  %v1275_v27 = vrot.slane %v1273_v8, 4  ;;  %v1274_v36 = vsel %vm1905_vm7, %v1609_v59, %v1273_v8  ;;  %v2251_v8 = vld [vmem:[%s2328_s3] ss:$0 sm:$0xff] }
 0x129   : > { %v804_v45 = vpop.f32.mrf.mxu2  ;;  %v1280_v30 = vunpack.c.l.b16 %v1274_v36 }
 0x12a   : > { %1607 = vmatmul.msk.bf16.gmra.mxu3 %vm451_vm3, %v2100_v39  ;;  %v826_v49 = vadd.f32 %v804_v45, %v636_v12  ;;  %v1193_v39 = vsel %vm1751_vm4, %v1188_v29, %v1192_v34  ;;  %v1277_v53 = vsel %vm1905_vm7, %v1275_v27, %v1276_v4 }
 0x12b   : > { %v982_v56 = vpop.f32.mrf.mxu0  ;;  %v1197_v6 = vunpack.c.l.b16 %v1193_v39  ;;  %v1281_v63 = vunpack.c.l.b16 %v1277_v53 }
 0x12d   : > { %v882_v57 = vpop.f32.mrf.mxu3  ;;  %v640_v20 = vpop.f32.mrf.mxu1  ;;  %v1198_v22 = vpack.c.b16 %v1197_v6, %v1196_v1  ;;  %v1282_v40 = vpack.c.b16 %v1281_v63, %v1280_v30 }
 0x12e   : > { %1617 = vmatmul.msk.bf16.gmra.mxu0 %vm451_vm3, %v1020_v48  ;;  %v904_v2 = vadd.f32 %v882_v57, %v826_v49  ;;  %v641_v9 = vadd.f32 %v640_v20, %v2102_v10 }
 0x130   : > { %1586 = vmatmul.msk.bf16.gmra.mxu1 %vm451_vm3, %v1020_v48  ;;  %v2224_v51 = vadd.f32 %v982_v56, %v904_v2 }
 0x131   : > { %v806_v38 = vpop.f32.mrf.mxu2 }
 0x132   : > { %v827_v35 = vadd.f32 %v806_v38, %v638_v16 }
 0x133   : > { %v984_v46 = vpop.f32.mrf.mxu0 }
 0x135   : > { %v884_v62 = vpop.f32.mrf.mxu3  ;;  %v642_v7 = vpop.f32.mrf.mxu1 }
 0x136   : > { %v905_v17 = vadd.f32 %v884_v62, %v827_v35  ;;  %1599 = vmatmul.msk.bf16.gmra.mxu2 %vm451_vm3, %v1631_v24  ;;  %v643_v44 = vadd.f32 %v642_v7, %v2110_v0  ;;  %v2246_v0 = vld [vmem:[%s2327_s2] ss:$0 sm:$0xff] }
 0x138   : > { %v2233_v15 = vadd.f32 %v984_v46, %v905_v17 }
 0x139   : > { %v809_v31 = vpop.f32.mrf.mxu2 }
 0x13a   : > { %1608 = vmatmul.msk.bf16.gmra.mxu3 %vm451_vm3, %v1198_v22  ;;  %v828_v18 = vadd.f32 %v809_v31, %v641_v9 }
 0x13b   : > { %v987_v43 = vpop.f32.mrf.mxu0 }
 0x13d   : > { %v887_v54 = vpop.f32.mrf.mxu3  ;;  %v1036_v21 = vpop.f32.mrf.mxu1 }
 0x13e   : > { %1618 = vmatmul.msk.bf16.gmra.mxu0 %vm451_vm3, %v1282_v40  ;;  %v906_v23 = vadd.f32 %v887_v54, %v828_v18  ;;  %v1076_v11 = vadd.f32 %v1036_v21, %v2120_v5 }
 0x140   : > { %v2238_v60 = vadd.f32 %v987_v43, %v906_v23 }
 0x141   : > { %v811_v32 = vpop.f32.mrf.mxu2 }
 0x142   : > { %v829_v55 = vadd.f32 %v811_v32, %v643_v44 }
 0x143   : > { %v989_v10 = vpop.f32.mrf.mxu0 }
 0x145   : > { %v889_v37 = vpop.f32.mrf.mxu3  ;;  %v1038_v41 = vpop.f32.mrf.mxu1 }
 0x146   : > { %v907_v26 = vadd.f32 %v889_v37, %v829_v55  ;;  %v1077_v5 = vadd.f32 %v1038_v41, %v2124_v14 }
 0x148   : > { %v2241_v12 = vadd.f32 %v989_v10, %v907_v26 }
 0x149   : > { %v1114_v45 = vpop.f32.mrf.mxu2 }
 0x14a   : > { %v1154_v48 = vadd.f32 %v1114_v45, %v1076_v11 }
 0x14b   : > { %v1298_v49 = vpop.f32.mrf.mxu0 }
 0x14d   : > { %v1214_v47 = vpop.f32.mrf.mxu3  ;;  %v1041_v56 = vpop.f32.mrf.mxu1 }
 0x14e   : > { %v1254_v29 = vadd.f32 %v1214_v47, %v1154_v48  ;;  %v1078_v38 = vadd.f32 %v1041_v56, %v2133_v33 }
 0x150   : > { %v1338_v34 = vadd.f32 %v1298_v49, %v1254_v29 }
 0x151   : > { %v1116_v57 = vpop.f32.mrf.mxu2 }
 0x152   : > { %v1358_v20 = vmul.f32 %v2246_v0, %v1338_v34  ;;  %v1155_v2 = vadd.f32 %v1116_v57, %v1077_v5 }
 0x153   : > { %v1300_v42 = vpop.f32.mrf.mxu0 }
 0x154   : > { %v1378_v39 = vadd.f32 %v2251_v8, %v1358_v20 }
 0x155   : > { %v1216_v59 = vpop.f32.mrf.mxu3  ;;  %v1043_v27 = vpop.f32.mrf.mxu1 }
 0x156   : > { %v1394_v4 = vmax.f32 %v1378_v39, 0.0  ;;  %v1255_v16 = vadd.f32 %v1216_v59, %v1155_v2  ;;  %v1079_v22 = vadd.f32 %v1043_v27, %v2138_v52 }
 0x158   : > { %1410 = vst [vmem:[%s2260_s22] sm:$0xff] %v1394_v4  ;;  %v1339_v14 = vadd.f32 %v1300_v42, %v1255_v16 }
 0x159   : > { %v1119_v35 = vpop.f32.mrf.mxu2 }
 0x15a   : > { %v1359_v24 = vmul.f32 %v2246_v0, %v1339_v14  ;;  %v1156_v1 = vadd.f32 %v1119_v35, %v1078_v38 }
 0x15b   : > { %v1303_v6 = vpop.f32.mrf.mxu0 }
 0x15c   : > { %v1379_v46 = vadd.f32 %v2251_v8, %v1359_v24 }
 0x15d   : > { %v1219_v36 = vpop.f32.mrf.mxu3  ;;  %v1046_v53 = vpop.f32.mrf.mxu1 }
 0x15e   : > { %v1395_v62 = vmax.f32 %v1379_v46, 0.0  ;;  %v1256_v7 = vadd.f32 %v1219_v36, %v1156_v1  ;;  %v1080_v23 = vadd.f32 %v1046_v53, %v2147_v3 }
 0x160   : > { %1411 = vst [vmem:[%s2260_s22 + $0x8] sm:$0xff] %v1395_v62  ;;  %v1340_v17 = vadd.f32 %v1303_v6, %v1256_v7 }
 0x161   : > { %v1121_v30 = vpop.f32.mrf.mxu2 }
 0x162   : > { %v1360_v63 = vmul.f32 %v2246_v0, %v1340_v17  ;;  %v1157_v33 = vadd.f32 %v1121_v30, %v1079_v22 }
 0x163   : > { %v1305_v9 = vpop.f32.mrf.mxu0 }
 0x164   : > { %v1380_v31 = vadd.f32 %v2251_v8, %v1360_v63 }
 0x165   : > { %v1221_v40 = vpop.f32.mrf.mxu3  ;;  %v1048_v18 = vpop.f32.mrf.mxu1 }
 0x166   : > { %v1396_v43 = vmax.f32 %v1380_v31, 0.0  ;;  %v1257_v54 = vadd.f32 %v1221_v40, %v1157_v33  ;;  %v1081_v48 = vadd.f32 %v1048_v18, %v2152_v19 }
 0x168   : > { %1412 = vst [vmem:[%s2260_s22 + $0x10] sm:$0xff] %v1396_v43  ;;  %v1341_v21 = vadd.f32 %v1305_v9, %v1257_v54 }
 0x169   : > { %v1124_v44 = vpop.f32.mrf.mxu2 }
 0x16a   : > { %v1361_v32 = vmul.f32 %v2246_v0, %v1341_v21  ;;  %v1158_v52 = vadd.f32 %v1124_v44, %v1080_v23 }
 0x16b   : > { %v1308_v55 = vpop.f32.mrf.mxu0 }
 0x16c   : > { %v1381_v10 = vadd.f32 %v2251_v8, %v1361_v32 }
 0x16d   : > { %v1224_v37 = vpop.f32.mrf.mxu3  ;;  %v1051_v41 = vpop.f32.mrf.mxu1 }
 0x16e   : > { %v1397_v26 = vmax.f32 %v1381_v10, 0.0  ;;  %v1258_v11 = vadd.f32 %v1224_v37, %v1158_v52  ;;  %v1082_v42 = vadd.f32 %v1051_v41, %v2160_v13 }
 0x170   : > { %1413 = vst [vmem:[%s2260_s22 + $0x18] sm:$0xff] %v1397_v26  ;;  %v1342_v45 = vadd.f32 %v1308_v55, %v1258_v11 }
 0x171   : > { %v1126_v49 = vpop.f32.mrf.mxu2 }
 0x172   : > { %v1362_v47 = vmul.f32 %v2246_v0, %v1342_v45  ;;  %v1159_v3 = vadd.f32 %v1126_v49, %v1081_v48 }
 0x173   : > { %v1310_v56 = vpop.f32.mrf.mxu0 }
 0x174   : > { %v1382_v29 = vadd.f32 %v2251_v8, %v1362_v47 }
 0x175   : > { %v1226_v34 = vpop.f32.mrf.mxu3  ;;  %v1053_v5 = vpop.f32.mrf.mxu1 }
 0x176   : > { %v1398_v57 = vmax.f32 %v1382_v29, 0.0  ;;  %v1259_v20 = vadd.f32 %v1226_v34, %v1159_v3  ;;  %v1083_v1 = vadd.f32 %v1053_v5, %v2165_v28 }
 0x178   : > { %1414 = vst [vmem:[%s2260_s22 + $0x20] sm:$0xff] %v1398_v57  ;;  %v1343_v2 = vadd.f32 %v1310_v56, %v1259_v20 }
 0x179   : > { %v1129_v39 = vpop.f32.mrf.mxu2 }
 0x17a   : > { %v1363_v59 = vmul.f32 %v2246_v0, %v1343_v2  ;;  %v1160_v19 = vadd.f32 %v1129_v39, %v1082_v42 }
 0x17b   : > { %v1313_v27 = vpop.f32.mrf.mxu0 }
 0x17c   : > { %v1383_v4 = vadd.f32 %v2251_v8, %v1363_v59 }
 0x17d   : > { %v1229_v16 = vpop.f32.mrf.mxu3  ;;  %v1056_v14 = vpop.f32.mrf.mxu1 }
 0x17e   : > { %v1399_v38 = vmax.f32 %v1383_v4, 0.0  ;;  %v1260_v35 = vadd.f32 %v1229_v16, %v1160_v19  ;;  %v1084_v63 = vadd.f32 %v1056_v14, %v2174_v25 }
 0x180   : > { %1415 = vst [vmem:[%s2260_s22 + $0x28] sm:$0xff] %v1399_v38  ;;  %v1344_v24 = vadd.f32 %v1313_v27, %v1260_v35 }
 0x181   : > { %v1131_v6 = vpop.f32.mrf.mxu2 }
 0x182   : > { %v1364_v46 = vmul.f32 %v2246_v0, %v1344_v24  ;;  %v1161_v13 = vadd.f32 %v1131_v6, %v1083_v1 }
 0x183   : > { %v1315_v36 = vpop.f32.mrf.mxu0 }
 0x184   : > { %v1384_v53 = vadd.f32 %v2251_v8, %v1364_v46 }
 0x185   : > { %v1231_v62 = vpop.f32.mrf.mxu3  ;;  %v1058_v7 = vpop.f32.mrf.mxu1 }
 0x186   : > { %v1400_v17 = vmax.f32 %v1384_v53, 0.0  ;;  %v1261_v22 = vadd.f32 %v1231_v62, %v1161_v13  ;;  %v1085_v44 = vadd.f32 %v1058_v7, %v2179_v58 }
 0x188   : > { %1416 = vst [vmem:[%s2260_s22 + $0x30] sm:$0xff] %v1400_v17  ;;  %v1345_v30 = vadd.f32 %v1315_v36, %v1261_v22 }
 0x189   : > { %v1134_v33 = vpop.f32.mrf.mxu2 }
 0x18a   : > { %v1365_v9 = vmul.f32 %v2246_v0, %v1345_v30  ;;  %v1162_v28 = vadd.f32 %v1134_v33, %v1084_v63 }
 0x18b   : > { %v1318_v31 = vpop.f32.mrf.mxu0 }
 0x18c   : > { %v1385_v40 = vadd.f32 %v2251_v8, %v1365_v9 }
 0x18d   : > { %v1234_v18 = vpop.f32.mrf.mxu3  ;;  %v1061_v43 = vpop.f32.mrf.mxu1 }
 0x18e   : > { %v1401_v54 = vmax.f32 %v1385_v40, 0.0  ;;  %v1262_v21 = vadd.f32 %v1234_v18, %v1162_v28  ;;  %v1086_v48 = vadd.f32 %v1061_v43, %v2201_v61 }
 0x190   : > { %1417 = vst [vmem:[%s2260_s22 + $0x38] sm:$0xff] %v1401_v54  ;;  %v1346_v23 = vadd.f32 %v1318_v31, %v1262_v21 }
 0x191   : > { %v1136_v32 = vpop.f32.mrf.mxu2 }
 0x192   : > { %v1366_v52 = vmul.f32 %v2246_v0, %v1346_v23  ;;  %v1163_v25 = vadd.f32 %v1136_v32, %v1085_v44 }
 0x193   : > { %v1320_v55 = vpop.f32.mrf.mxu0 }
 0x194   : > { %v1386_v10 = vadd.f32 %v2251_v8, %v1366_v52 }
 0x195   : > { %v1236_v37 = vpop.f32.mrf.mxu3  ;;  %v1063_v41 = vpop.f32.mrf.mxu1 }
 0x196   : > { %v1402_v26 = vmax.f32 %v1386_v10, 0.0  ;;  %v1263_v11 = vadd.f32 %v1236_v37, %v1163_v25  ;;  %v1087_v2 = vadd.f32 %v1063_v41, %v2211_v50 }
 0x198   : > { %1418 = vst [vmem:[%s2260_s22 + $0x40] sm:$0xff] %v1402_v26  ;;  %v1347_v45 = vadd.f32 %v1320_v55, %v1263_v11 }
 0x199   : > { %v1139_v49 = vpop.f32.mrf.mxu2 }
 0x19a   : > { %v1367_v47 = vmul.f32 %v2246_v0, %v1347_v45  ;;  %v1164_v58 = vadd.f32 %v1139_v49, %v1086_v48 }
 0x19b   : > { %v1323_v3 = vpop.f32.mrf.mxu0 }
 0x19c   : > { %v1387_v56 = vadd.f32 %v2251_v8, %v1367_v47 }
 0x19d   : > { %v1239_v29 = vpop.f32.mrf.mxu3  ;;  %v1066_v57 = vpop.f32.mrf.mxu1 }
 0x19e   : > { %v1403_v34 = vmax.f32 %v1387_v56, 0.0  ;;  %v1264_v5 = vadd.f32 %v1239_v29, %v1164_v58  ;;  %v1088_v38 = vadd.f32 %v1066_v57, %v2224_v51 }
 0x1a0   : > { %1419 = vst [vmem:[%s2260_s22 + $0x48] sm:$0xff] %v1403_v34  ;;  %v1348_v20 = vadd.f32 %v1323_v3, %v1264_v5 }
 0x1a1   : > { %v1141_v42 = vpop.f32.mrf.mxu2 }
 0x1a2   : > { %v1368_v39 = vmul.f32 %v2246_v0, %v1348_v20  ;;  %v1165_v61 = vadd.f32 %v1141_v42, %v1087_v2 }
 0x1a3   : > { %v1325_v59 = vpop.f32.mrf.mxu0 }
 0x1a4   : > { %v1388_v19 = vadd.f32 %v2251_v8, %v1368_v39 }
 0x1a5   : > { %v1241_v27 = vpop.f32.mrf.mxu3  ;;  %v1068_v35 = vpop.f32.mrf.mxu1 }
 0x1a6   : > { %v1404_v4 = vmax.f32 %v1388_v19, 0.0  ;;  %v1265_v16 = vadd.f32 %v1241_v27, %v1165_v61  ;;  %v1089_v7 = vadd.f32 %v1068_v35, %v2233_v15 }
 0x1a8   : > { %1420 = vst [vmem:[%s2260_s22 + $0x50] sm:$0xff] %v1404_v4  ;;  %v1349_v14 = vadd.f32 %v1325_v59, %v1265_v16 }
 0x1a9   : > { %v1144_v24 = vpop.f32.mrf.mxu2 }
 0x1aa   : > { %v1369_v1 = vmul.f32 %v2246_v0, %v1349_v14  ;;  %v1166_v50 = vadd.f32 %v1144_v24, %v1088_v38 }
 0x1ab   : > { %v1328_v6 = vpop.f32.mrf.mxu0 }
 0x1ac   : > { %v1389_v46 = vadd.f32 %v2251_v8, %v1369_v1 }
 0x1ad   : > { %v1244_v13 = vpop.f32.mrf.mxu3  ;;  %v1071_v30 = vpop.f32.mrf.mxu1 }
 0x1ae   : > { %v1405_v36 = vmax.f32 %v1389_v46, 0.0  ;;  %v1266_v53 = vadd.f32 %v1244_v13, %v1166_v50  ;;  %v1090_v18 = vadd.f32 %v1071_v30, %v2238_v60 }
 0x1b0   : > { %1421 = vst [vmem:[%s2260_s22 + $0x58] sm:$0xff] %v1405_v36  ;;  %v1350_v62 = vadd.f32 %v1328_v6, %v1266_v53 }
 0x1b1   : > { %v1146_v17 = vpop.f32.mrf.mxu2 }
 0x1b2   : > { %v1370_v22 = vmul.f32 %v2246_v0, %v1350_v62  ;;  %v1167_v51 = vadd.f32 %v1146_v17, %v1089_v7 }
 0x1b3   : > { %v1330_v63 = vpop.f32.mrf.mxu0 }
 0x1b4   : > { %v1390_v33 = vadd.f32 %v2251_v8, %v1370_v22 }
 0x1b5   : > { %v1246_v9 = vpop.f32.mrf.mxu3  ;;  %v1073_v23 = vpop.f32.mrf.mxu1 }
 0x1b6   : > { %v1406_v28 = vmax.f32 %v1390_v33, 0.0  ;;  %v1267_v31 = vadd.f32 %v1246_v9, %v1167_v51  ;;  %v1091_v10 = vadd.f32 %v1073_v23, %v2241_v12 }
 0x1b8   : > { %1422 = vst [vmem:[%s2260_s22 + $0x60] sm:$0xff] %v1406_v28  ;;  %v1351_v40 = vadd.f32 %v1330_v63, %v1267_v31 }
 0x1b9   : > { %v1149_v43 = vpop.f32.mrf.mxu2 }
 0x1ba   : > { %v1371_v54 = vmul.f32 %v2246_v0, %v1351_v40  ;;  %v1168_v15 = vadd.f32 %v1149_v43, %v1090_v18 }
 0x1bb   : > { %v1333_v44 = vpop.f32.mrf.mxu0 }
 0x1bc   : > { %v1391_v21 = vadd.f32 %v2251_v8, %v1371_v54 }
 0x1bd   : > { %v1249_v32 = vpop.f32.mrf.mxu3 }
 0x1be   : > { %v1407_v52 = vmax.f32 %v1391_v21, 0.0  ;;  %v1268_v25 = vadd.f32 %v1249_v32, %v1168_v15 }
 0x1c0   : > { %1423 = vst [vmem:[%s2260_s22 + $0x68] sm:$0xff] %v1407_v52  ;;  %v1352_v55 = vadd.f32 %v1333_v44, %v1268_v25 }
 0x1c1   : > { %v1151_v37 = vpop.f32.mrf.mxu2 }
 0x1c2   : > { %v1372_v60 = vmul.f32 %v2246_v0, %v1352_v55  ;;  %v1169_v41 = vadd.f32 %v1151_v37, %v1091_v10 }
 0x1c3   : > { %v1335_v49 = vpop.f32.mrf.mxu0 }
 0x1c4   : > { %v1392_v26 = vadd.f32 %v2251_v8, %v1372_v60 }
 0x1c5   : > { %v1251_v11 = vpop.f32.mrf.mxu3 }
 0x1c6   : > { %v1408_v45 = vmax.f32 %v1392_v26, 0.0  ;;  %v1269_v48 = vadd.f32 %v1251_v11, %v1169_v41 }
 0x1c8   : > { %1424 = vst [vmem:[%s2260_s22 + $0x70] sm:$0xff] %v1408_v45  ;;  %v1353_v47 = vadd.f32 %v1335_v49, %v1269_v48 }
 0x1ca   : > { %v1373_v58 = vmul.f32 %v2246_v0, %v1353_v47 }
 0x1cc   : > { %v1393_v3 = vadd.f32 %v2251_v8, %v1373_v58 }
 0x1ce   : > { %v1409_v56 = vmax.f32 %v1393_v3, 0.0 }
 0x1d0   : > { %1425 = vst [vmem:[%s2260_s22 + $0x78] sm:$0xff] %v1409_v56 }
 0x1d1 PF: > { %s14_s15 = sadd.s32 1, %s1652_s15  }
 0x1d2   : > { %p11_p4 = scmp.ge.s32.totalorder %s14_s15, 6  }
 0x1d4   :  { %13 = sbr.rel (!%p11_p4) target bundleno = 1 (0x1), region = 74 }

</bundles_post_ra>
